<compile_context>
chip_gen: v7x
topology: tpu7x:2x2x1
jax: 0.10.0
libtpu: 0.0.40
codegen_flags: <defaults>
</compile_context>

<pallas_src>
import math

import jax
import jax.numpy as jnp
from jax.experimental import pallas as pl
from jax.experimental.pallas import tpu as pltpu

# Kernel and reference must agree through two BatchNorms that amplify tiny FP
# differences at small batch; run all f32 matmuls at full precision.
jax.config.update("jax_default_matmul_precision", "highest")

EPS = 1e-5


def gc_block_kernel(xt_ref, w1_ref, a1_ref, g1_ref, be1_ref,
                    w2_ref, a2_ref, g2_ref, be2_ref, p_ref, o_ref):
    xt = xt_ref[...]          # (N, B*F) lane-dense, resident in VMEM
    p_avg = p_ref[...]        # (B*F, B*F) batch-averaging matrix kron(1/B, I_F)

    def graph_conv(y, w_bd, att):
        # support = y @ kron(I_B, W)  : per-batch feature mixing, one MXU dot
        # out     = att @ support     : node mixing, one MXU dot
        # (GraphConvolution bias omitted: exactly cancelled by training-mode BN.)
        sup = jnp.dot(y, w_bd, preferred_element_type=jnp.float32)
        return jnp.dot(att, sup, preferred_element_type=jnp.float32)

    def bn_tanh(y, gamma_t, beta_t):
        # BatchNorm1d over the flattened (N*F) features, training mode:
        # per-(n,f) mean / biased variance across the batch.  In the (N, B*F)
        # layout the batch mean/var are matmuls with the averaging matrix,
        # which keeps everything lane-dense (no cross-lane reduce, no reshape).
        mean_t = jnp.dot(y, p_avg, preferred_element_type=jnp.float32)
        d = y - mean_t
        var_t = jnp.dot(d * d, p_avg, preferred_element_type=jnp.float32)
        return jnp.tanh(d * jax.lax.rsqrt(var_t + EPS) * gamma_t + beta_t)

    # gc1 -> bn1 -> tanh -> (dropout: identity)
    y = bn_tanh(graph_conv(xt, w1_ref[...], a1_ref[...]), g1_ref[...], be1_ref[...])
    # gc2 -> bn2 -> tanh -> (dropout: identity)
    y = bn_tanh(graph_conv(y, w2_ref[...], a2_ref[...]), g2_ref[...], be2_ref[...])
    # residual
    o_ref[...] = y + xt


def gc_block(x, params):
    b, n, f = x.shape
    bf = b * f

    # ---- layout plumbing done once in the wrapper (hoisted out of the kernel)
    xt = x.transpose(1, 0, 2).reshape(n, bf)                        # (N, B*F)
    eye_b = jnp.eye(b, dtype=jnp.float32)
    w1_bd = jnp.kron(eye_b, params["w1"])                           # (B*F, B*F)
    w2_bd = jnp.kron(eye_b, params["w2"])
    p_avg = jnp.kron(jnp.ones((b, b), jnp.float32) / b,
                     jnp.eye(f, dtype=jnp.float32))                 # (B*F, B*F)
    g1t = jnp.tile(params["g1"], (1, b))                            # (N, B*F)
    be1t = jnp.tile(params["be1"], (1, b))
    g2t = jnp.tile(params["g2"], (1, b))
    be2t = jnp.tile(params["be2"], (1, b))

    args = (xt, w1_bd, params["att1"], g1t, be1t,
            w2_bd, params["att2"], g2t, be2t, p_avg)

    # Advisory cost estimate so XLA schedules/overlaps this small custom call.
    flops_per_layer = 6 * n * bf * bf + 2 * n * n * bf   # W_bd + att + 2 BN dots
    cost = pl.CostEstimate(
        flops=2 * flops_per_layer,
        transcendentals=4 * n * bf,                       # 2x tanh + 2x rsqrt
        bytes_accessed=4 * (sum(int(a.size) for a in args) + n * bf))

    vmem = pl.BlockSpec(memory_space=pltpu.MemorySpace.VMEM)
    out_t = pl.pallas_call(
        gc_block_kernel,
        out_shape=jax.ShapeDtypeStruct((n, bf), jnp.float32),
        in_specs=[vmem] * len(args),
        out_specs=vmem,
        cost_estimate=cost,
    )(*args)

    return out_t.reshape(n, b, f).transpose(1, 0, 2)                # back to (B,N,F)


def init_params(key, in_features, node_n):
    # GraphConvolution.reset_parameters: uniform(-stdv, stdv), stdv = 1/sqrt(out_feat).
    # BatchNorm1d default init: gamma=1, beta=0.
    stdv = 1.0 / math.sqrt(in_features)
    ks = jax.random.split(key, 6)

    def u(k, shape):
        return jax.random.uniform(k, shape, jnp.float32, -stdv, stdv)

    return dict(
        w1=u(ks[0], (in_features, in_features)),
        att1=u(ks[1], (node_n, node_n)),
        b1=u(ks[2], (in_features,)),      # used only by the reference (BN cancels it)
        w2=u(ks[3], (in_features, in_features)),
        att2=u(ks[4], (node_n, node_n)),
        b2=u(ks[5], (in_features,)),
        g1=jnp.ones((node_n, in_features), jnp.float32),
        be1=jnp.zeros((node_n, in_features), jnp.float32),
        g2=jnp.ones((node_n, in_features), jnp.float32),
        be2=jnp.zeros((node_n, in_features), jnp.float32),
    )


def ref_forward(x, p):
    """Pure-JAX faithful reference of the torch forward (with bias)."""
    def gc(inp, w, att, bias):
        sup = jnp.einsum("bnf,fg->bng", inp, w)
        return jnp.einsum("nm,bmg->bng", att, sup) + bias
    def bn(y, g, be):
        m = y.mean(axis=0, keepdims=True)
        v = ((y - m) ** 2).mean(axis=0, keepdims=True)
        return (y - m) / jnp.sqrt(v + EPS) * g[None] + be[None]
    y = jnp.tanh(bn(gc(x, p["w1"], p["att1"], p["b1"]), p["g1"], p["be1"]))
    y = jnp.tanh(bn(gc(y, p["w2"], p["att2"], p["b2"]), p["g2"], p["be2"]))
    return y + x


if __name__ == "__main__":
    # node_n=48 (module default), in_features=32; B=4 so B*F = 128 (one full
    # lane width) and the batch variance inside BN is well conditioned.
    B, NODE_N, IN_FEATURES = 4, 48, 32

    key = jax.random.PRNGKey(0)
    kx, kp = jax.random.split(key)
    x = jax.random.normal(kx, (B, NODE_N, IN_FEATURES), dtype=jnp.float32)
    params = init_params(kp, IN_FEATURES, NODE_N)

    out = jax.block_until_ready(gc_block(x, params))
    ref = jax.block_until_ready(ref_forward(x, params))

    assert out.shape == (B, NODE_N, IN_FEATURES)
    # BatchNorm at small batch amplifies tiny FP-ordering differences between
    # the kernel and the einsum reference; 2e-3 on O(1) outputs is still a
    # strict structural check (any real bug shows up as an O(1) error).
    max_abs_err = float(jnp.max(jnp.abs(out - ref)))
    assert jnp.allclose(out, ref, atol=2e-3, rtol=2e-3), max_abs_err

    print("KERNEL_OK")
</pallas_src>

<mosaic_0001>
module attributes {stable_mosaic.version = 11 : i64} {
  func.func @gc_block_kernel(%arg0: memref<48x128xf32, #tpu.memory_space<vmem>>, %arg1: memref<128x128xf32, #tpu.memory_space<vmem>>, %arg2: memref<48x48xf32, #tpu.memory_space<vmem>>, %arg3: memref<48x128xf32, #tpu.memory_space<vmem>>, %arg4: memref<48x128xf32, #tpu.memory_space<vmem>>, %arg5: memref<128x128xf32, #tpu.memory_space<vmem>>, %arg6: memref<48x48xf32, #tpu.memory_space<vmem>>, %arg7: memref<48x128xf32, #tpu.memory_space<vmem>>, %arg8: memref<48x128xf32, #tpu.memory_space<vmem>>, %arg9: memref<128x128xf32, #tpu.memory_space<vmem>>, %arg10: memref<48x128xf32, #tpu.memory_space<vmem>>) attributes {dimension_semantics = [], scalar_prefetch = 0 : i64, scratch_operands = 0 : i64, tpu.core_type = #tpu.core_type<tc>} {
    %c0 = arith.constant 0 : index
    %c0_0 = arith.constant 0 : index
    %0 = vector.load %arg0[%c0, %c0_0] : memref<48x128xf32, #tpu.memory_space<vmem>>, vector<48x128xf32>
    %c0_1 = arith.constant 0 : index
    %c0_2 = arith.constant 0 : index
    %1 = vector.load %arg9[%c0_1, %c0_2] : memref<128x128xf32, #tpu.memory_space<vmem>>, vector<128x128xf32>
    %c0_3 = arith.constant 0 : index
    %c0_4 = arith.constant 0 : index
    %2 = vector.load %arg1[%c0_3, %c0_4] : memref<128x128xf32, #tpu.memory_space<vmem>>, vector<128x128xf32>
    %c0_5 = arith.constant 0 : index
    %c0_6 = arith.constant 0 : index
    %3 = vector.load %arg2[%c0_5, %c0_6] : memref<48x48xf32, #tpu.memory_space<vmem>>, vector<48x48xf32>
    %cst = arith.constant dense<0.000000e+00> : vector<48x128xf32>
    %4 = tpu.matmul %0, %2, %cst {dimension_numbers = #tpu.dot_dimension_numbers<[1], [0], [0], [1], [0, 0, 1, 1], [], []>, precision = #tpu.contract_precision<fp32>} : vector<48x128xf32>, vector<128x128xf32>, vector<48x128xf32> -> vector<48x128xf32>
    %cst_7 = arith.constant dense<0.000000e+00> : vector<48x128xf32>
    %5 = tpu.matmul %3, %4, %cst_7 {dimension_numbers = #tpu.dot_dimension_numbers<[1], [0], [0], [1], [0, 0, 1, 1], [], []>, precision = #tpu.contract_precision<fp32>} : vector<48x48xf32>, vector<48x128xf32>, vector<48x128xf32> -> vector<48x128xf32>
    %c0_8 = arith.constant 0 : index
    %c0_9 = arith.constant 0 : index
    %6 = vector.load %arg3[%c0_8, %c0_9] : memref<48x128xf32, #tpu.memory_space<vmem>>, vector<48x128xf32>
    %c0_10 = arith.constant 0 : index
    %c0_11 = arith.constant 0 : index
    %7 = vector.load %arg4[%c0_10, %c0_11] : memref<48x128xf32, #tpu.memory_space<vmem>>, vector<48x128xf32>
    %cst_12 = arith.constant dense<0.000000e+00> : vector<48x128xf32>
    %8 = tpu.matmul %5, %1, %cst_12 {dimension_numbers = #tpu.dot_dimension_numbers<[1], [0], [0], [1], [0, 0, 1, 1], [], []>, precision = #tpu.contract_precision<fp32>} : vector<48x128xf32>, vector<128x128xf32>, vector<48x128xf32> -> vector<48x128xf32>
    %9 = arith.subf %5, %8 : vector<48x128xf32>
    %10 = arith.mulf %9, %9 : vector<48x128xf32>
    %cst_13 = arith.constant dense<0.000000e+00> : vector<48x128xf32>
    %11 = tpu.matmul %10, %1, %cst_13 {dimension_numbers = #tpu.dot_dimension_numbers<[1], [0], [0], [1], [0, 0, 1, 1], [], []>, precision = #tpu.contract_precision<fp32>} : vector<48x128xf32>, vector<128x128xf32>, vector<48x128xf32> -> vector<48x128xf32>
    %cst_14 = arith.constant 9.99999974E-6 : f32
    %12 = vector.broadcast %cst_14 : f32 to vector<48x128xf32>
    %13 = arith.addf %11, %12 : vector<48x128xf32>
    %14 = math.rsqrt %13 : vector<48x128xf32>
    %15 = arith.mulf %9, %14 : vector<48x128xf32>
    %16 = arith.mulf %15, %6 : vector<48x128xf32>
    %17 = arith.addf %16, %7 : vector<48x128xf32>
    %18 = math.tanh %17 : vector<48x128xf32>
    %c0_15 = arith.constant 0 : index
    %c0_16 = arith.constant 0 : index
    %19 = vector.load %arg5[%c0_15, %c0_16] : memref<128x128xf32, #tpu.memory_space<vmem>>, vector<128x128xf32>
    %c0_17 = arith.constant 0 : index
    %c0_18 = arith.constant 0 : index
    %20 = vector.load %arg6[%c0_17, %c0_18] : memref<48x48xf32, #tpu.memory_space<vmem>>, vector<48x48xf32>
    %cst_19 = arith.constant dense<0.000000e+00> : vector<48x128xf32>
    %21 = tpu.matmul %18, %19, %cst_19 {dimension_numbers = #tpu.dot_dimension_numbers<[1], [0], [0], [1], [0, 0, 1, 1], [], []>, precision = #tpu.contract_precision<fp32>} : vector<48x128xf32>, vector<128x128xf32>, vector<48x128xf32> -> vector<48x128xf32>
    %cst_20 = arith.constant dense<0.000000e+00> : vector<48x128xf32>
    %22 = tpu.matmul %20, %21, %cst_20 {dimension_numbers = #tpu.dot_dimension_numbers<[1], [0], [0], [1], [0, 0, 1, 1], [], []>, precision = #tpu.contract_precision<fp32>} : vector<48x48xf32>, vector<48x128xf32>, vector<48x128xf32> -> vector<48x128xf32>
    %c0_21 = arith.constant 0 : index
    %c0_22 = arith.constant 0 : index
    %23 = vector.load %arg7[%c0_21, %c0_22] : memref<48x128xf32, #tpu.memory_space<vmem>>, vector<48x128xf32>
    %c0_23 = arith.constant 0 : index
    %c0_24 = arith.constant 0 : index
    %24 = vector.load %arg8[%c0_23, %c0_24] : memref<48x128xf32, #tpu.memory_space<vmem>>, vector<48x128xf32>
    %cst_25 = arith.constant dense<0.000000e+00> : vector<48x128xf32>
    %25 = tpu.matmul %22, %1, %cst_25 {dimension_numbers = #tpu.dot_dimension_numbers<[1], [0], [0], [1], [0, 0, 1, 1], [], []>, precision = #tpu.contract_precision<fp32>} : vector<48x128xf32>, vector<128x128xf32>, vector<48x128xf32> -> vector<48x128xf32>
    %26 = arith.subf %22, %25 : vector<48x128xf32>
    %27 = arith.mulf %26, %26 : vector<48x128xf32>
    %cst_26 = arith.constant dense<0.000000e+00> : vector<48x128xf32>
    %28 = tpu.matmul %27, %1, %cst_26 {dimension_numbers = #tpu.dot_dimension_numbers<[1], [0], [0], [1], [0, 0, 1, 1], [], []>, precision = #tpu.contract_precision<fp32>} : vector<48x128xf32>, vector<128x128xf32>, vector<48x128xf32> -> vector<48x128xf32>
    %cst_27 = arith.constant 9.99999974E-6 : f32
    %29 = vector.broadcast %cst_27 : f32 to vector<48x128xf32>
    %30 = arith.addf %28, %29 : vector<48x128xf32>
    %31 = math.rsqrt %30 : vector<48x128xf32>
    %32 = arith.mulf %26, %31 : vector<48x128xf32>
    %33 = arith.mulf %32, %23 : vector<48x128xf32>
    %34 = arith.addf %33, %24 : vector<48x128xf32>
    %35 = math.tanh %34 : vector<48x128xf32>
    %36 = arith.addf %35, %0 : vector<48x128xf32>
    %c0_28 = arith.constant 0 : index
    %c0_29 = arith.constant 0 : index
    %37 = vector.load %arg10[%c0_28, %c0_29] : memref<48x128xf32, #tpu.memory_space<vmem>>, vector<48x128xf32>
    tpu.vector_store %arg10[%c0_28, %c0_29], %36 {strides = array<i32>} : memref<48x128xf32, #tpu.memory_space<vmem>>, vector<48x128xf32>,
    return
  }
}

</mosaic_0001>

<bundles_post_ra>
// kernel: tpu_custom_call.1
= control target key start
LH: loop header
LB: loop body
LE: loop exit
PB: predicated region body
PF: predicated region fallthrough
CT: control target
= control target key end

     0   :  { %15 = vsyncpa [#allocation3], 0  ;;  %s13964_s0 = inlined_call_operand.hbm [shape: f32[48,128], index: 0, kind: input, shape index: {}]   ;;  %s13965_s1 = inlined_call_operand.hbm [shape: f32[128,128], index: 1, kind: input, shape index: {}]   ;;  %s13966_s2 = inlined_call_operand.hbm [shape: f32[48,48], index: 2, kind: input, shape index: {}]   ;;  %s13967_s3 = inlined_call_operand.hbm [shape: f32[48,128], index: 3, kind: input, shape index: {}]   ;;  %s13968_s4 = inlined_call_operand.hbm [shape: f32[48,128], index: 4, kind: input, shape index: {}]   ;;  %s13969_s5 = inlined_call_operand.hbm [shape: f32[128,128], index: 5, kind: input, shape index: {}]   ;;  %s13970_s6 = inlined_call_operand.hbm [shape: f32[48,48], index: 6, kind: input, shape index: {}]   ;;  %s13971_s7 = inlined_call_operand.hbm [shape: f32[48,128], index: 7, kind: input, shape index: {}]   ;;  %s13972_s8 = inlined_call_operand.hbm [shape: f32[48,128], index: 8, kind: input, shape index: {}]   ;;  %s13973_s9 = inlined_call_operand.hbm [shape: f32[128,128], index: 9, kind: input, shape index: {}]   ;;  %s13974_s10 = inlined_call_operand.hbm [shape: f32[48,128], index: 10, kind: output, shape index: {}]  }
   0x1   :  { %16 = vsyncpa [#allocation6], 0 }
   0x2   :  { %17 = vsyncpa [#allocation9], 0 }
   0x3   :  { %18 = vsyncpa [#allocation12], 0 }
   0x4   :  { %19 = vsyncpa [#allocation15], 0 }
   0x5   :  { %20 = vsyncpa [#allocation18], 0 }
   0x6   :  { %21 = vsyncpa [#allocation4], 0  ;;  %s11540_s13 = smov [#allocation5]   ;;  %s11541_s15 = smov [#allocation8]  }
   0x7   :  { %s39_s14 = sshll.u32 %s11540_s13, 4  ;;  %s63_s16 = sshll.u32 %s11541_s15, 4  ;;  %s40_s14 = int_to_ptr.vmem [resolvable:$true] %s39_s14  ;;  %s11608_s16 = int_to_ptr.vmem [resolvable:$true] %s63_s16 }
   0x8   :  { %s11284_s19 = scalar_lea.hbm %s13965_s1, 2048 }
   0x9   :  { %p11285_p0 = scmp.ne.s32.totalorder %s13965_s1, %s11284_s19  ;;  %p11288_p1 = scmp.lt.u32.totalorder %s11284_s19, %s13965_s1 }
   0xb   :  { %p11290_p2 = pnand %p11288_p1, %p11285_p0 }
   0xd   :  { %11293 = shalt.err (!%p11290_p2)
}
   0xe   :  { %s11294_s24 = scalar_lea.vmem %s40_s14, 2048  ;;  %p11299_p4 = scmp.lt.s32.totalorder %s40_s14, %s40_s14 }
   0xf   :  { %p11295_p3 = scmp.ne.s32.totalorder %s40_s14, %s11294_s24  ;;  %p11300_p5 = scmp.lt.s32.totalorder %s11294_s24, %s11294_s24 }
  0x11   :  { %p11301_p6 = por %p11300_p5, %p11299_p4 }
  0x13   :  { %p11302_p7 = pnand %p11301_p6, %p11295_p3 }
  0x15   :  { %11305 = shalt.err (!%p11302_p7)
}
  0x16   :  { %s11542_s25 = smov 128   ;;  %s11543_s26 = smov 8  }
  0x17   :  { %45 = dma.hbm_to_vmem [thread:$0]  %s13965_s1, 2048, %s40_s14, [#allocation6], %s11542_s25, %s11542_s25, %s11543_s26  }
  0x18   :  { %s11306_s11 = scalar_lea.hbm %s13967_s3, 768 }
  0x19   :  { %p11307_p8 = scmp.ne.s32.totalorder %s13967_s3, %s11306_s11  ;;  %p11310_p9 = scmp.lt.u32.totalorder %s11306_s11, %s13967_s3 }
  0x1b   :  { %p11312_p10 = pnand %p11310_p9, %p11307_p8 }
  0x1d   :  { %11315 = shalt.err (!%p11312_p10)
}
  0x1e   :  { %s11316_s18 = scalar_lea.vmem %s11608_s16, 768  ;;  %p11321_p12 = scmp.lt.s32.totalorder %s11608_s16, %s11608_s16 }
  0x1f   :  { %p11317_p11 = scmp.ne.s32.totalorder %s11608_s16, %s11316_s18  ;;  %p11322_p13 = scmp.lt.s32.totalorder %s11316_s18, %s11316_s18 }
  0x21   :  { %p11323_p0 = por %p11322_p13, %p11321_p12 }
  0x23   :  { %p11324_p1 = pnand %p11323_p0, %p11317_p11 }
  0x25   :  { %11327 = shalt.err (!%p11324_p1)
}
  0x26   :  { %69 = dma.hbm_to_vmem [thread:$0]  %s13967_s3, 768, %s11608_s16, [#allocation9], %s11542_s25, %s11542_s25, %s11543_s26  }
  0x27   :  { %s11544_s19 = smov [#allocation11]   ;;  %s11545_s21 = smov [#allocation14]  }
  0x28   :  { %s87_s20 = sshll.u32 %s11544_s19, 4  ;;  %s111_s22 = sshll.u32 %s11545_s21, 4  ;;  %s88_s20 = int_to_ptr.vmem [resolvable:$true] %s87_s20  ;;  %s11645_s22 = int_to_ptr.vmem [resolvable:$true] %s111_s22 }
  0x29   :  { %s11328_s27 = scalar_lea.hbm %s13969_s5, 2048 }
  0x2a   :  { %p11329_p2 = scmp.ne.s32.totalorder %s13969_s5, %s11328_s27  ;;  %p11332_p3 = scmp.lt.u32.totalorder %s11328_s27, %s13969_s5 }
  0x2c   :  { %p11334_p4 = pnand %p11332_p3, %p11329_p2 }
  0x2e   :  { %11337 = shalt.err (!%p11334_p4)
}
  0x2f   :  { %s11338_s3 = scalar_lea.vmem %s88_s20, 2048  ;;  %p11343_p6 = scmp.lt.s32.totalorder %s88_s20, %s88_s20 }
  0x30   :  { %p11339_p5 = scmp.ne.s32.totalorder %s88_s20, %s11338_s3  ;;  %p11344_p7 = scmp.lt.s32.totalorder %s11338_s3, %s11338_s3 }
  0x32   :  { %p11345_p8 = por %p11344_p7, %p11343_p6 }
  0x34   :  { %p11346_p9 = pnand %p11345_p8, %p11339_p5 }
  0x36   :  { %11349 = shalt.err (!%p11346_p9)
}
  0x37   :  { %93 = dma.hbm_to_vmem [thread:$0]  %s13969_s5, 2048, %s88_s20, [#allocation12], %s11542_s25, %s11542_s25, %s11543_s26  }
  0x38   :  { %s11350_s17 = scalar_lea.hbm %s13971_s7, 768 }
  0x39   :  { %p11351_p10 = scmp.ne.s32.totalorder %s13971_s7, %s11350_s17  ;;  %p11354_p11 = scmp.lt.u32.totalorder %s11350_s17, %s13971_s7 }
  0x3b   :  { %p11356_p12 = pnand %p11354_p11, %p11351_p10 }
  0x3d   :  { %11359 = shalt.err (!%p11356_p12)
}
  0x3e   :  { %s11360_s21 = scalar_lea.vmem %s11645_s22, 768  ;;  %p11365_p0 = scmp.lt.s32.totalorder %s11645_s22, %s11645_s22 }
  0x3f   :  { %p11361_p13 = scmp.ne.s32.totalorder %s11645_s22, %s11360_s21  ;;  %p11366_p1 = scmp.lt.s32.totalorder %s11360_s21, %s11360_s21 }
  0x41   :  { %p11367_p2 = por %p11366_p1, %p11365_p0 }
  0x43   :  { %p11368_p3 = pnand %p11367_p2, %p11361_p13 }
  0x45   :  { %11371 = shalt.err (!%p11368_p3)
}
  0x46   :  { %117 = dma.hbm_to_vmem [thread:$0]  %s13971_s7, 768, %s11645_s22, [#allocation15], %s11542_s25, %s11542_s25, %s11543_s26  }
  0x47   :  { %s11546_s23 = smov [#allocation2]   ;;  %s11547_s27 = smov [#allocation7]  }
  0x48   :  { %s27_s24 = sshll.u32 %s11546_s23, 4  ;;  %s51_s28 = sshll.u32 %s11547_s27, 4  ;;  %s28_s24 = int_to_ptr.vmem [resolvable:$true] %s27_s24  ;;  %s11682_s28 = int_to_ptr.vmem [resolvable:$true] %s51_s28 }
  0x49   :  { %s11372_s11 = scalar_lea.hbm %s13964_s0, 768 }
  0x4a   :  { %p11373_p4 = scmp.ne.s32.totalorder %s13964_s0, %s11372_s11  ;;  %p11376_p5 = scmp.lt.u32.totalorder %s11372_s11, %s13964_s0 }
  0x4c   :  { %p11378_p6 = pnand %p11376_p5, %p11373_p4 }
  0x4e   :  { %11381 = shalt.err (!%p11378_p6)
}
  0x4f   :  { %s11382_s7 = scalar_lea.vmem %s28_s24, 768  ;;  %p11387_p8 = scmp.lt.s32.totalorder %s28_s24, %s28_s24 }
  0x50   :  { %p11383_p7 = scmp.ne.s32.totalorder %s28_s24, %s11382_s7  ;;  %p11388_p9 = scmp.lt.s32.totalorder %s11382_s7, %s11382_s7 }
  0x52   :  { %p11389_p10 = por %p11388_p9, %p11387_p8 }
  0x54   :  { %p11390_p11 = pnand %p11389_p10, %p11383_p7 }
  0x56   :  { %11393 = shalt.err (!%p11390_p11)
}
  0x57   :  { %33 = dma.hbm_to_vmem [thread:$0]  %s13964_s0, 768, %s28_s24, [#allocation3], %s11542_s25, %s11542_s25, %s11543_s26  }
  0x58   :  { %s11394_s1 = scalar_lea.hbm %s13966_s2, 768 }
  0x59   :  { %p11395_p12 = scmp.ne.s32.totalorder %s13966_s2, %s11394_s1  ;;  %p11398_p13 = scmp.lt.u32.totalorder %s11394_s1, %s13966_s2 }
  0x5b   :  { %p11400_p0 = pnand %p11398_p13, %p11395_p12 }
  0x5d   :  { %11403 = shalt.err (!%p11400_p0)
}
  0x5e   :  { %s11404_s20 = scalar_lea.vmem %s11682_s28, 768  ;;  %p11409_p2 = scmp.lt.s32.totalorder %s11682_s28, %s11682_s28 }
  0x5f   :  { %p11405_p1 = scmp.ne.s32.totalorder %s11682_s28, %s11404_s20  ;;  %p11410_p3 = scmp.lt.s32.totalorder %s11404_s20, %s11404_s20 }
  0x61   :  { %p11411_p4 = por %p11410_p3, %p11409_p2 }
  0x63   :  { %p11412_p5 = pnand %p11411_p4, %p11405_p1 }
  0x65   :  { %11415 = shalt.err (!%p11412_p5)
}
  0x66   :  { %57 = dma.hbm_to_vmem [thread:$0]  %s13966_s2, 768, %s11682_s28, [#allocation6], %s11542_s25, %s11542_s25, %s11543_s26  }
  0x67   :  { %s11548_s24 = smov [#allocation10]   ;;  %s11549_s29 = smov [#allocation13]  }
  0x68   :  { %s75_s27 = sshll.u32 %s11548_s24, 4  ;;  %s99_s30 = sshll.u32 %s11549_s29, 4  ;;  %s76_s27 = int_to_ptr.vmem [resolvable:$true] %s75_s27  ;;  %s11719_s30 = int_to_ptr.vmem [resolvable:$true] %s99_s30 }
  0x69   :  { %s11416_s16 = scalar_lea.hbm %s13968_s4, 768 }
  0x6a   :  { %p11417_p6 = scmp.ne.s32.totalorder %s13968_s4, %s11416_s16  ;;  %p11420_p7 = scmp.lt.u32.totalorder %s11416_s16, %s13968_s4 }
  0x6c   :  { %p11422_p8 = pnand %p11420_p7, %p11417_p6 }
  0x6e   :  { %11425 = shalt.err (!%p11422_p8)
}
  0x6f   :  { %s11426_s2 = scalar_lea.vmem %s76_s27, 768  ;;  %p11431_p10 = scmp.lt.s32.totalorder %s76_s27, %s76_s27 }
  0x70   :  { %p11427_p9 = scmp.ne.s32.totalorder %s76_s27, %s11426_s2  ;;  %p11432_p11 = scmp.lt.s32.totalorder %s11426_s2, %s11426_s2 }
  0x72   :  { %p11433_p12 = por %p11432_p11, %p11431_p10 }
  0x74   :  { %p11434_p13 = pnand %p11433_p12, %p11427_p9 }
  0x76   :  { %11437 = shalt.err (!%p11434_p13)
}
  0x77   :  { %81 = dma.hbm_to_vmem [thread:$0]  %s13968_s4, 768, %s76_s27, [#allocation9], %s11542_s25, %s11542_s25, %s11543_s26  }
  0x78   :  { %s11438_s1 = scalar_lea.hbm %s13970_s6, 768 }
  0x79   :  { %p11439_p0 = scmp.ne.s32.totalorder %s13970_s6, %s11438_s1  ;;  %p11442_p1 = scmp.lt.u32.totalorder %s11438_s1, %s13970_s6 }
  0x7b   :  { %p11444_p2 = pnand %p11442_p1, %p11439_p0 }
  0x7d   :  { %11447 = shalt.err (!%p11444_p2)
}
  0x7e   :  { %s11448_s20 = scalar_lea.vmem %s11719_s30, 768  ;;  %p11453_p4 = scmp.lt.s32.totalorder %s11719_s30, %s11719_s30 }
  0x7f   :  { %p11449_p3 = scmp.ne.s32.totalorder %s11719_s30, %s11448_s20  ;;  %p11454_p5 = scmp.lt.s32.totalorder %s11448_s20, %s11448_s20 }
  0x81   :  { %p11455_p6 = por %p11454_p5, %p11453_p4 }
  0x83   :  { %p11456_p7 = pnand %p11455_p6, %p11449_p3 }
  0x85   :  { %11459 = shalt.err (!%p11456_p7)
}
  0x86   :  { %105 = dma.hbm_to_vmem [thread:$0]  %s13970_s6, 768, %s11719_s30, [#allocation12], %s11542_s25, %s11542_s25, %s11543_s26  }
  0x87   :  { %s11550_s23 = smov [#allocation16]   ;;  %s11551_s27 = smov [#allocation17]  }
  0x88   :  { %s123_s24 = sshll.u32 %s11550_s23, 4  ;;  %s135_s29 = sshll.u32 %s11551_s27, 4  ;;  %s124_s24 = int_to_ptr.vmem [resolvable:$true] %s123_s24  ;;  %s11756_s29 = int_to_ptr.vmem [resolvable:$true] %s135_s29 }
  0x89   :  { %s11460_s16 = scalar_lea.hbm %s13972_s8, 768 }
  0x8a   :  { %p11461_p8 = scmp.ne.s32.totalorder %s13972_s8, %s11460_s16  ;;  %p11464_p9 = scmp.lt.u32.totalorder %s11460_s16, %s13972_s8 }
  0x8c   :  { %p11466_p10 = pnand %p11464_p9, %p11461_p8 }
  0x8e   :  { %11469 = shalt.err (!%p11466_p10)
}
  0x8f   :  { %s11470_s6 = scalar_lea.vmem %s124_s24, 768  ;;  %p11475_p12 = scmp.lt.s32.totalorder %s124_s24, %s124_s24 }
  0x90   :  { %p11471_p11 = scmp.ne.s32.totalorder %s124_s24, %s11470_s6  ;;  %p11476_p13 = scmp.lt.s32.totalorder %s11470_s6, %s11470_s6 }
  0x92   :  { %p11477_p0 = por %p11476_p13, %p11475_p12 }
  0x94   :  { %p11478_p1 = pnand %p11477_p0, %p11471_p11 }
  0x96   :  { %11481 = shalt.err (!%p11478_p1)
}
  0x97   :  { %129 = dma.hbm_to_vmem [thread:$0]  %s13972_s8, 768, %s124_s24, [#allocation15], %s11542_s25, %s11542_s25, %s11543_s26  }
  0x98   :  { %s11482_s17 = scalar_lea.hbm %s13973_s9, 2048 }
  0x99   :  { %p11483_p2 = scmp.ne.s32.totalorder %s13973_s9, %s11482_s17  ;;  %p11486_p3 = scmp.lt.u32.totalorder %s11482_s17, %s13973_s9 }
  0x9b   :  { %p11488_p4 = pnand %p11486_p3, %p11483_p2 }
  0x9d   :  { %11491 = shalt.err (!%p11488_p4)
}
  0x9e   :  { %s11492_s21 = scalar_lea.vmem %s11756_s29, 2048  ;;  %p11497_p6 = scmp.lt.s32.totalorder %s11756_s29, %s11756_s29 }
  0x9f   :  { %p11493_p5 = scmp.ne.s32.totalorder %s11756_s29, %s11492_s21  ;;  %p11498_p7 = scmp.lt.s32.totalorder %s11492_s21, %s11492_s21 }
  0xa1   :  { %p11499_p8 = por %p11498_p7, %p11497_p6 }
  0xa3   :  { %p11500_p9 = pnand %p11499_p8, %p11493_p5 }
  0xa5   :  { %11503 = shalt.err (!%p11500_p9)
}
  0xa6   :  { %141 = dma.hbm_to_vmem [thread:$0]  %s13973_s9, 2048, %s11756_s29, [#allocation18], %s11542_s25, %s11542_s25, %s11543_s26  }
  0xa7   :  { %11526 = dma.done.wait [#allocation3], 768  }
  0xa8   :  { %11527 = vsyncadd [#allocation3], 4294966528 }
  0xa9   :  { %11528 = dma.done.wait [#allocation6], 2816  }
  0xaa   :  { %11529 = vsyncadd [#allocation6], 4294964480 }
  0xab   :  { %11530 = dma.done.wait [#allocation9], 1536  }
  0xac   :  { %11531 = vsyncadd [#allocation9], 4294965760 }
  0xad   :  { %11532 = dma.done.wait [#allocation12], 2816  }
  0xae   :  { %11533 = vsyncadd [#allocation12], 4294964480 }
  0xaf   :  { %11534 = dma.done.wait [#allocation15], 1536  }
  0xb0   :  { %11535 = vsyncadd [#allocation15], 4294965760 }
  0xb1   :  { %11536 = dma.done.wait [#allocation18], 2048  }
  0xb2   :  { %11537 = vsyncadd [#allocation18], 4294965248  ;;  %v194_v0 = vld [vmem:[#allocation5] sm:$0xff]  ;;  %v195_v1 = vld [vmem:[#allocation5 + $0x8] sm:$0xff]  ;;  %vm1072_vm0 = vcmask 392192   ;;  %s11552_s9 = smov [#allocation19]  }
  0xb3   :  { %v196_v2 = vld [vmem:[#allocation5 + $0x10] sm:$0xff]  ;;  %v217_v3 = vand.u32 4294901760, %v194_v0  ;;  %v220_v4 = vand.u32 4294901760, %v195_v1  ;;  %v197_v5 = vld [vmem:[#allocation5 + $0x18] sm:$0xff]  ;;  %v198_v7 = vld [vmem:[#allocation5 + $0x20] sm:$0xff]  ;;  %s6988_s20 = sshll.u32 %s11552_s9, 4  ;;  %s6989_s20 = int_to_ptr.vmem [resolvable:$true] %s6988_s20 }
  0xb4   :  { %v223_v6 = vand.u32 4294901760, %v196_v2  ;;  %v199_v8 = vld [vmem:[#allocation5 + $0x28] sm:$0xff]  ;;  %v226_v9 = vand.u32 4294901760, %v197_v5  ;;  %v229_v11 = vand.u32 4294901760, %v198_v7  ;;  %v11797_v14 = vld [vmem:[#allocation5 + $0x30] sm:$0xff]  ;;  %v11799_v15 = vld [vmem:[#allocation5 + $0x38] sm:$0xff]  ;;  %p11509_p11 = scmp.lt.s32.totalorder %s6989_s20, %s6989_s20 }
  0xb5   :  { %v11793_v10 = vpack.c.bf16 %v220_v4, %v217_v3  ;;  %v232_v12 = vand.u32 4294901760, %v199_v8  ;;  %v172_v16 = vld [vmem:[#allocation2] sm:$0xff]  ;;  %v235_v19 = vand.u32 4294901760, %v11797_v14  ;;  %v238_v20 = vand.u32 4294901760, %v11799_v15  ;;  %v173_v21 = vld [vmem:[#allocation2 + $0x8] sm:$0xff]  ;;  %v11810_v22 = vld [vmem:[#allocation5 + $0x40] sm:$0xff] }
  0xb6   :  { %v11795_v13 = vpack.c.bf16 %v226_v9, %v223_v6  ;;  %v11803_v17 = vand.u32 4294901760, %v172_v16  ;;  %v11812_v23 = vld [vmem:[#allocation5 + $0x48] sm:$0xff]  ;;  %v11817_v25 = vsub.f32 %v194_v0, %v217_v3  ;;  %v11819_v26 = vsub.f32 %v195_v1, %v220_v4  ;;  %v11834_v32 = vld [vmem:[#allocation5 + $0x50] sm:$0xff]  ;;  %v11836_v33 = vld [vmem:[#allocation5 + $0x58] sm:$0xff]  ;;  %s11504_s4 = scalar_lea.vmem %s6989_s20, 768 }
  0xb7   :  { %9670 = vmatprep.subr.bf16.mxu0 %v11793_v10  ;;  %v11806_v18 = vpack.c.bf16 %v232_v12, %v229_v11  ;;  %v11823_v28 = vand.u32 4294901760, %v173_v21  ;;  %v11830_v29 = vpack.c.bf16 %v238_v20, %v235_v19  ;;  %v241_v30 = vand.u32 4294901760, %v11810_v22  ;;  %v206_v45 = vld [vmem:[#allocation5 + $0x60] sm:$0xff]  ;;  %v207_v46 = vld [vmem:[#allocation5 + $0x68] sm:$0xff]  ;;  %v208_v47 = vld [vmem:[#allocation5 + $0x70] sm:$0xff]  ;;  %p11505_p10 = scmp.ne.s32.totalorder %s6989_s20, %s11504_s4  ;;  %p11510_p12 = scmp.lt.s32.totalorder %s11504_s4, %s11504_s4 }
  0xb8   :  { %9672 = vmatpush3.bf16.msra.mxu0 %v11793_v10  ;;  %v11815_v24 = vsub.f32 %v172_v16, %v11803_v17  ;;  %v244_v31 = vand.u32 4294901760, %v11812_v23  ;;  %v360_v35 = vand.u32 4294901760, %v11817_v25  ;;  %v367_v36 = vand.u32 4294901760, %v11819_v26  ;;  %v11862_v48 = vld [vmem:[#allocation5 + $0x78] sm:$0xff]  ;;  %v174_v53 = vld [vmem:[#allocation2 + $0x10] sm:$0xff] }
  0xb9   :  { %9674 = vmatprep.subr.bf16.mxu0 %v11795_v13  ;;  %v11843_v37 = vsub.f32 %v196_v2, %v223_v6  ;;  %v11845_v38 = vsub.f32 %v197_v5, %v226_v9  ;;  %v11847_v39 = vsub.f32 %v198_v7, %v229_v11  ;;  %v11851_v41 = vsub.f32 %v173_v21, %v11823_v28  ;;  %v175_v6 = vld [vmem:[#allocation2 + $0x18] sm:$0xff]  ;;  %p11511_p13 = por %p11510_p12, %p11509_p11 }
  0xba   :  { %v13976_v27 = vand.u32 4294901760, %v11815_v24  ;;  %v11858_v42 = vpack.c.bf16 %v244_v31, %v241_v30  ;;  %v247_v43 = vand.u32 4294901760, %v11834_v32  ;;  %v250_v44 = vand.u32 4294901760, %v11836_v33 }
  0xbb   :  { %v361_v49 = vsub.f32 %v11817_v25, %v360_v35  ;;  %v368_v50 = vsub.f32 %v11819_v26, %v367_v36  ;;  %v374_v51 = vand.u32 4294901760, %v11843_v37  ;;  %v11871_v52 = vsub.f32 %v199_v8, %v232_v12  ;;  %v176_v8 = vld [vmem:[#allocation2 + $0x20] sm:$0xff]  ;;  %p11512_p0 = pnand %p11511_p13, %p11505_p10 }
  0xbc   :  { %9676 = vmatpush3.bf16.msra.mxu0 %v11795_v13  ;;  %v300_v34 = vsub.f32 %v11815_v24, %v13976_v27  ;;  %14109 = vst [vmem:[#allocation27_spill] sm:$0xff] %v11858_v42  ;;  %v381_v54 = vand.u32 4294901760, %v11845_v38  ;;  %v388_v55 = vand.u32 4294901760, %v11847_v39  ;;  %v253_v56 = vand.u32 4294901760, %v206_v45  ;;  %v177_v27 = vld [vmem:[#allocation2 + $0x28] sm:$0xff] }
  0xbd   :  { %9678 = vmatprep.subr.bf16.mxu0 %v11806_v18  ;;  %v256_v57 = vand.u32 4294901760, %v207_v46  ;;  %v13975_v58 = vand.u32 4294901760, %v11851_v41  ;;  %v11878_v59 = vpack.c.bf16 %v250_v44, %v247_v43  ;;  %v259_v60 = vand.u32 4294901760, %v208_v47 }
  0xbe   :  { %v301_v40 = vand.u32 4294901760, %v300_v34  ;;  %v262_v61 = vand.u32 4294901760, %v11862_v48  ;;  %v11881_v62 = vand.u32 4294901760, %v174_v53  ;;  %v362_v63 = vand.u32 4294901760, %v361_v49 }
  0xbf   :  { %14110 = vst [vmem:[#allocation28_spill] sm:$0xff] %v11878_v59  ;;  %v369_v0 = vand.u32 4294901760, %v368_v50  ;;  %v375_v1 = vsub.f32 %v11843_v37, %v374_v51  ;;  %v13978_v2 = vand.u32 4294901760, %v11871_v52  ;;  %v382_v3 = vsub.f32 %v11845_v38, %v381_v54 }
  0xc0   :  { %9680 = vmatpush3.bf16.msra.mxu0 %v11806_v18  ;;  %7973 = vmatprep.mubr.f32.mxu0 %v301_v40  ;;  %v11893_v4 = vsub.f32 %v11847_v39, %v388_v55  ;;  %v11896_v5 = vsub.f32 %v174_v53, %v11881_v62  ;;  %v11902_v7 = vsub.f32 %v11851_v41, %v13975_v58  ;;  %v11917_v40 = vand.u32 4294901760, %v175_v6 }
  0xc1   :  { %9682 = vmatprep.subr.bf16.mxu0 %v11830_v29  ;;  %v11905_v9 = vpack.c.bf16 %v256_v57, %v253_v56  ;;  %v11907_v11 = vpack.c.bf16 %v262_v61, %v259_v60  ;;  %v11912_v12 = vsub.f32 %v11797_v14, %v235_v19  ;;  %v9701_v16 = vpack.c.bf16 %v369_v0, %v362_v63 }
  0xc2   :  { %v376_v21 = vand.u32 4294901760, %v375_v1  ;;  %v396_v34 = vsub.f32 %v11871_v52, %v13978_v2  ;;  %v383_v49 = vand.u32 4294901760, %v382_v3  ;;  %v390_v50 = vand.u32 4294901760, %v11893_v4 }
  0xc3   :  { %14111 = vst [vmem:[#allocation29_spill] sm:$0xff] %v11905_v9  ;;  %14112 = vst [vmem:[#allocation30_spill] sm:$0xff] %v11907_v11  ;;  %v13977_v53 = vand.u32 4294901760, %v11896_v5  ;;  %v11921_v58 = vand.u32 4294901760, %v176_v8  ;;  %v311_v14 = vand.u32 4294901760, %v11902_v7  ;;  %v11928_v19 = vsub.f32 %v11799_v15, %v238_v20 }
  0xc4   :  { %9684 = vmatpush3.bf16.msra.mxu0 %v11830_v29  ;;  %v11933_v63 = vsub.f32 %v11810_v22, %v241_v30  ;;  %v11936_v0 = vsub.f32 %v175_v6, %v11917_v40  ;;  %v402_v1 = vand.u32 4294901760, %v11912_v12  ;;  %v11943_v3 = vsub.f32 %v11812_v23, %v244_v31 }
  0xc5   :  { %9686 = vmatprep.subr.bf16.mxu0 %v11858_v42  ;;  %v11946_v15 = vsub.f32 %v11834_v32, %v247_v43  ;;  %v11949_v20 = vsub.f32 %v176_v8, %v11921_v58  ;;  %v11952_v22 = vsub.f32 %v11836_v33, %v250_v44  ;;  %v11954_v30 = vsub.f32 %v206_v45, %v253_v56 }
  0xc6   :  { %v11956_v4 = vsub.f32 %v207_v46, %v256_v57  ;;  %v11958_v6 = vand.u32 4294901760, %v177_v27  ;;  %v397_v7 = vand.u32 4294901760, %v396_v34  ;;  %v320_v23 = vsub.f32 %v11896_v5, %v13977_v53 }
  0xc7   :  { %v13979_v31 = vand.u32 4294901760, %v11936_v0  ;;  %v11964_v32 = vsub.f32 %v208_v47, %v259_v60  ;;  %v9705_v43 = vpack.c.bf16 %v383_v49, %v376_v21  ;;  %v13980_v33 = vand.u32 4294901760, %v11949_v20 }
  0xc8   :  { %9688 = vmatpush3.bf16.msra.mxu0 %v11858_v42  ;;  %v11969_v44 = vsub.f32 %v11862_v48, %v262_v61  ;;  %v11972_v45 = vsub.f32 %v177_v27, %v11958_v6  ;;  %v403_v46 = vsub.f32 %v11912_v12, %v402_v1  ;;  %v409_v56 = vand.u32 4294901760, %v11928_v19 }
  0xc9   :  { %9690 = vmatprep.subr.bf16.mxu0 %v11878_v59  ;;  %v416_v47 = vand.u32 4294901760, %v11933_v63  ;;  %v423_v57 = vand.u32 4294901760, %v11943_v3  ;;  %v430_v60 = vand.u32 4294901760, %v11946_v15  ;;  %v437_v8 = vand.u32 4294901760, %v11952_v22 }
  0xca   :  { %v444_v48 = vand.u32 4294901760, %v11954_v30  ;;  %v451_v61 = vand.u32 4294901760, %v11956_v4  ;;  %v321_v27 = vand.u32 4294901760, %v320_v23  ;;  %v330_v21 = vsub.f32 %v11936_v0, %v13979_v31 }
  0xcb   :  { %v458_v34 = vand.u32 4294901760, %v11964_v32  ;;  %v340_v53 = vsub.f32 %v11949_v20, %v13980_v33  ;;  %v465_v2 = vand.u32 4294901760, %v11969_v44  ;;  %v11997_v23 = vpack.c.bf16 %v367_v36, %v360_v35 }
  0xcc   :  { %9692 = vmatpush3.bf16.msra.mxu0 %v11878_v59  ;;  %v12003_v31 = vpack.c.bf16 %v381_v54, %v374_v51  ;;  %v410_v49 = vsub.f32 %v11928_v19, %v409_v56  ;;  %v14115_v33 = vand.u32 4294901760, %v11871_v52  ;;  %v12014_v59 = vpack.c.bf16 %v423_v57, %v416_v47 }
  0xcd   :  { %9694 = vmatprep.subr.bf16.mxu0 %v11905_v9  ;;  %14113 = vst [vmem:[#allocation31_spill] sm:$0xff] %v11997_v23  ;;  %v12016_v35 = vpack.c.bf16 %v437_v8, %v430_v60  ;;  %v12018_v36 = vpack.c.bf16 %v451_v61, %v444_v48  ;;  %v12020_v23 = vpack.c.bf16 %v465_v2, %v458_v34  ;;  %v331_v51 = vand.u32 4294901760, %v330_v21 }
  0xce   :  { %14114 = vst [vmem:[#allocation32_spill] sm:$0xff] %v12003_v31  ;;  %v14118_v54 = vand.u32 4294901760, %v11972_v45  ;;  %v9709_v42 = vpack.c.bf16 %v397_v7, %v390_v50  ;;  %v438_v21 = vsub.f32 %v11952_v22, %v437_v8 }
  0xcf   :  { %14116 = vst [vmem:[#allocation33_spill] sm:$0xff] %v12016_v35  ;;  %14117 = vst [vmem:[#allocation34_spill] sm:$0xff] %v12018_v36  ;;  %v424_v35 = vsub.f32 %v11943_v3, %v423_v57 }
  0xd0   :  { %9696 = vmatpush3.bf16.msra.mxu0 %v11905_v9  ;;  %v12012_v9 = vpack.c.bf16 %v409_v56, %v402_v1  ;;  %v350_v31 = vsub.f32 %v11972_v45, %v14118_v54  ;;  %v404_v1 = vand.u32 4294901760, %v403_v46  ;;  %v417_v56 = vsub.f32 %v11933_v63, %v416_v47 }
  0xd1   :  { %9698 = vmatprep.subr.bf16.mxu0 %v11907_v11  ;;  %v425_v7 = vand.u32 4294901760, %v424_v35  ;;  %v439_v46 = vand.u32 4294901760, %v438_v21 }
  0xd2   :  { %v351_v36 = vand.u32 4294901760, %v350_v31  ;;  %v418_v50 = vand.u32 4294901760, %v417_v56  ;;  %v445_v31 = vsub.f32 %v11954_v30, %v444_v48  ;;  %v9733_v48 = vpack.c.bf16 %v11819_v26, %v11817_v25  ;;  %v12176_v56 = vld [vmem:[#allocation17 + $0x38] sm:$0xff] }
  0xd3   :  { %v9745_v25 = vpack.c.bf16 %v11928_v19, %v11912_v12  ;;  %v9749_v26 = vpack.c.bf16 %v11943_v3, %v11933_v63  ;;  %v14120_v12 = vld [vmem:[#allocation27_spill] sm:$0xff]  ;;  %v14121_v19 = vld [vmem:[#allocation28_spill] sm:$0xff]  ;;  %v14122_v63 = vld [vmem:[#allocation29_spill] sm:$0xff] }
  0xd4   :  { %9700 = vmatpush3.bf16.msra.mxu0 %v11907_v11  ;;  %v12010_v11 = vpack.c.bf16 %v14115_v33, %v388_v55  ;;  %v341_v55 = vand.u32 4294901760, %v340_v53  ;;  %v411_v33 = vand.u32 4294901760, %v410_v49  ;;  %v9717_v47 = vpack.c.bf16 %v425_v7, %v418_v50  ;;  %v14123_v3 = vld [vmem:[#allocation30_spill] sm:$0xff]  ;;  %v12188_v50 = vld [vmem:[#allocation17 + $0x40] sm:$0xff] }
  0xd5   :  { %9702 = vmatprep.subr.bf16.mxu0 %v9701_v16  ;;  %v466_v49 = vsub.f32 %v11969_v44, %v465_v2  ;;  %v9741_v2 = vpack.c.bf16 %v11871_v52, %v11847_v39  ;;  %v9761_v39 = vpack.c.bf16 %v11969_v44, %v11964_v32  ;;  %v14119_v52 = vand.u32 4294901760, %v11815_v24  ;;  %v12190_v7 = vld [vmem:[#allocation17 + $0x48] sm:$0xff] }
  0xd7   :  { %7974 = vmatmul.mubr.f32.vlgmr.msra.gmra.mrb[0].mxu0 %v311_v14  ;;  %v431_v14 = vsub.f32 %v11946_v15, %v430_v60  ;;  %v446_v60 = vand.u32 4294901760, %v445_v31 }
  0xd8   :  { %9704 = vmatpush3.bf16.msra.mxu0 %v9701_v16  ;;  %7976 = vmatprep.mubr.f32.mxu0 %v321_v27  ;;  %v9713_v16 = vpack.c.bf16 %v411_v33, %v404_v1  ;;  %v459_v27 = vsub.f32 %v11964_v32, %v458_v34  ;;  %v14129_v32 = vand.u32 4294901760, %v11949_v20  ;;  %v12157_v34 = vld [vmem:[#allocation17 + $0x28] sm:$0xff]  ;;  %v12174_v33 = vld [vmem:[#allocation17 + $0x30] sm:$0xff] }
  0xd9   :  { %9706 = vmatprep.subr.bf16.mxu0 %v9705_v43  ;;  %v432_v53 = vand.u32 4294901760, %v431_v14  ;;  %v13997_v1 = vand.u32 4294901760, %v12157_v34  ;;  %v13996_v21 = vand.u32 4294901760, %v12174_v33 }
  0xda   :  { %v460_v35 = vand.u32 4294901760, %v459_v27  ;;  %v213_v27 = vld [vmem:[#allocation7 + $0x18] sm:$0xff] }
  0xdb   :  { %7977 = vmatmul.mubr.f32.gmra.mrb[2].mxu0 %v331_v51  ;;  %v9721_v57 = vpack.c.bf16 %v439_v46, %v432_v53  ;;  %v13994_v46 = vand.u32 4294901760, %v12188_v50 }
  0xdc   :  { %9708 = vmatpush3.bf16.msra.mxu0 %v9705_v43  ;;  %7979 = vmatprep.mubr.f32.mxu0 %v341_v55  ;;  %v452_v43 = vsub.f32 %v11956_v4, %v451_v61  ;;  %v9737_v61 = vpack.c.bf16 %v11845_v38, %v11843_v37  ;;  %v9753_v37 = vpack.c.bf16 %v11952_v22, %v11946_v15  ;;  %v14125_v15 = vand.u32 4294901760, %v11851_v41 }
  0xdd   :  { %9710 = vmatprep.subr.bf16.mxu0 %v9709_v42  ;;  %v9757_v38 = vpack.c.bf16 %v11956_v4, %v11954_v30  ;;  %v14126_v22 = vand.u32 4294901760, %v11896_v5  ;;  %v14127_v30 = vld [vmem:[#allocation32_spill] sm:$0xff]  ;;  %v14128_v4 = vand.u32 4294901760, %v11936_v0 }
  0xde   :  { %v453_v8 = vand.u32 4294901760, %v452_v43  ;;  %v211_v43 = vld [vmem:[#allocation7 + $0x8] sm:$0xff] }
  0xdf   :  { %7980 = vmatmul.mubr.f32.gmra.mrb[4].mxu0 %v351_v36  ;;  %v467_v36 = vand.u32 4294901760, %v466_v49 }
  0xe0   :  { %9712 = vmatpush3.bf16.msra.mxu0 %v9709_v42  ;;  %8014 = vmatprep.mubr.f32.mxu0 %v11803_v17  ;;  %v9725_v42 = vpack.c.bf16 %v453_v8, %v446_v60  ;;  %v212_v8 = vld [vmem:[#allocation7 + $0x10] sm:$0xff] }
  0xe1   :  { %9714 = vmatprep.subr.bf16.mxu0 %v9713_v16  ;;  %v9729_v51 = vpack.c.bf16 %v467_v36, %v460_v35  ;;  %v1083_v35 = vsel %vm1072_vm0, %v213_v27, 0 }
  0xe4   :  { %9716 = vmatpush3.bf16.msra.mxu0 %v9713_v16  ;;  %v13995_v16 = vand.u32 4294901760, %v12176_v56 }
  0xe5   :  { %9718 = vmatprep.subr.bf16.mxu0 %v9717_v47 }
  0xe6   :  { %v12198_v53 = vpack.c.bf16 %v13995_v16, %v13996_v21 }
  0xe8   :  { %9720 = vmatpush3.bf16.msra.mxu0 %v9717_v47  ;;  %14136 = vst [vmem:[#allocation30_spill] sm:$0xff] %v12198_v53  ;;  %v13993_v47 = vand.u32 4294901760, %v12190_v7 }
  0xe9   :  { %9722 = vmatprep.subr.bf16.mxu0 %v9721_v57 }
  0xea   :  { %v12208_v31 = vpack.c.bf16 %v13993_v47, %v13994_v46 }
  0xec   :  { %9724 = vmatpush3.bf16.msra.mxu0 %v9721_v57  ;;  %v1077_v57 = vsel %vm1072_vm0, %v211_v43, 0 }
  0xed   :  { %9726 = vmatprep.subr.bf16.mxu0 %v9725_v42  ;;  %v12214_v60 = vand.u32 4294901760, %v1077_v57 }
  0xef   :  { %v12217_v49 = vsub.f32 %v1077_v57, %v12214_v60 }
  0xf0   :  { %9728 = vmatpush3.bf16.msra.mxu0 %v9725_v42  ;;  %v1080_v42 = vsel %vm1072_vm0, %v212_v8, 0 }
  0xf1   :  { %9730 = vmatprep.subr.bf16.mxu0 %v9729_v51  ;;  %v12221_v36 = vand.u32 4294901760, %v1080_v42 }
  0xf4   :  { %9732 = vmatpush3.bf16.msra.mxu0 %v9729_v51  ;;  %v214_v51 = vld [vmem:[#allocation7 + $0x20] sm:$0xff] }
  0xf5   :  { %9734 = vmatprep.subr.bf16.mxu0 %v9733_v48 }
  0xf7   :  { %8015 = vmatmul.mubr.f32.vlgmr.msra.gmra.mrb[0].mxu0 %v11823_v28 }
  0xf8   :  { %9736 = vmatpush3.bf16.msra.mxu0 %v9733_v48  ;;  %8017 = vmatprep.mubr.f32.mxu0 %v11881_v62  ;;  %v1174_v48 = vand.u32 4294901760, %v12217_v49 }
  0xf9   :  { %9738 = vmatprep.subr.bf16.mxu0 %v9737_v61 }
  0xfb   :  { %8018 = vmatmul.mubr.f32.gmra.mrb[2].mxu0 %v11917_v40 }
  0xfc   :  { %9740 = vmatpush3.bf16.msra.mxu0 %v9737_v61  ;;  %8020 = vmatprep.mubr.f32.mxu0 %v11921_v58  ;;  %v12224_v61 = vand.u32 4294901760, %v1083_v35 }
  0xfd   :  { %9742 = vmatprep.subr.bf16.mxu0 %v9741_v2 }
  0xff   :  { %8021 = vmatmul.mubr.f32.gmra.mrb[4].mxu0 %v11958_v6 }
 0x100   :  { %9744 = vmatpush3.bf16.msra.mxu0 %v9741_v2  ;;  %8055 = vmatprep.mubr.f32.mxu0 %v11815_v24  ;;  %v14124_v24 = vld [vmem:[#allocation31_spill] sm:$0xff]  ;;  %v215_v2 = vld [vmem:[#allocation7 + $0x28] sm:$0xff] }
 0x101   :  { %9746 = vmatprep.subr.bf16.mxu0 %v9745_v25  ;;  %14137 = vst [vmem:[#allocation31_spill] sm:$0xff] %v12208_v31 }
 0x104   :  { %9748 = vmatpush3.bf16.msra.mxu0 %v9745_v25 }
 0x105   :  { %9750 = vmatprep.subr.bf16.mxu0 %v9749_v26 }
 0x108   :  { %9752 = vmatpush3.bf16.msra.mxu0 %v9749_v26  ;;  %v1086_v26 = vsel %vm1072_vm0, %v214_v51, 0 }
 0x109   :  { %9754 = vmatprep.subr.bf16.mxu0 %v9753_v37 }
 0x10c   :  { %9756 = vmatpush3.bf16.msra.mxu0 %v9753_v37 }
 0x10d   :  { %9758 = vmatprep.subr.bf16.mxu0 %v9757_v38 }
 0x110   :  { %9760 = vmatpush3.bf16.msra.mxu0 %v9757_v38 }
 0x111   :  { %9762 = vmatprep.subr.bf16.mxu0 %v9761_v39 }
 0x114   :  { %9764 = vmatpush3.bf16.msra.mxu0 %v9761_v39  ;;  %v12228_v39 = vsub.f32 %v1080_v42, %v12221_v36 }
 0x115   :  { %9766 = vmatprep.subr.bf16.mxu0 %v11793_v10 }
 0x117   :  { %8056 = vmatmul.mubr.f32.vlgmr.msra.gmra.mrb[0].mxu0 %v11851_v41  ;;  %v14130_v41 = vmov %v14118_v54 }
 0x118   :  { %9768 = vmatpush3.bf16.msra.mxu0 %v11793_v10  ;;  %8058 = vmatprep.mubr.f32.mxu0 %v11896_v5  ;;  %v14131_v5 = vld [vmem:[#allocation33_spill] sm:$0xff] }
 0x119   :  { %9770 = vmatprep.subr.bf16.mxu0 %v11795_v13 }
 0x11b   :  { %8059 = vmatmul.mubr.f32.gmra.mrb[2].mxu0 %v11936_v0  ;;  %v14132_v0 = vld [vmem:[#allocation34_spill] sm:$0xff] }
 0x11c   :  { %9772 = vmatpush3.bf16.msra.mxu0 %v11795_v13  ;;  %8061 = vmatprep.mubr.f32.mxu0 %v11949_v20  ;;  %v12151_v20 = vld [vmem:[#allocation17 + $0x18] sm:$0xff] }
 0x11d   :  { %9774 = vmatprep.subr.bf16.mxu0 %v11806_v18  ;;  %v13999_v44 = vand.u32 4294901760, %v12151_v20 }
 0x11f   :  { %8062 = vmatmul.mubr.f32.gmra.mrb[4].mxu0 %v11972_v45  ;;  %v12155_v45 = vld [vmem:[#allocation17 + $0x20] sm:$0xff] }
 0x120   :  { %9776 = vmatpush3.bf16.msra.mxu0 %v11806_v18  ;;  %8096 = vmatprep.mubr.f32.mxu0 %v14119_v52  ;;  %v13998_v55 = vand.u32 4294901760, %v12155_v45 }
 0x121   :  { %9778 = vmatprep.subr.bf16.mxu0 %v11830_v29 }
 0x122   :  { %v12184_v14 = vpack.c.bf16 %v13997_v1, %v13998_v55 }
 0x124   :  { %9780 = vmatpush3.bf16.msra.mxu0 %v11830_v29  ;;  %14135 = vst [vmem:[#allocation29_spill] sm:$0xff] %v12184_v14 }
 0x125   :  { %9782 = vmatprep.subr.bf16.mxu0 %v14120_v12 }
 0x128   :  { %9784 = vmatpush3.bf16.msra.mxu0 %v14120_v12 }
 0x129   :  { %9786 = vmatprep.subr.bf16.mxu0 %v14121_v19 }
 0x12c   :  { %9788 = vmatpush3.bf16.msra.mxu0 %v14121_v19 }
 0x12d   :  { %9790 = vmatprep.subr.bf16.mxu0 %v14122_v63 }
 0x130   :  { %9792 = vmatpush3.bf16.msra.mxu0 %v14122_v63 }
 0x131   :  { %9794 = vmatprep.subr.bf16.mxu0 %v14123_v3 }
 0x134   :  { %9796 = vmatpush3.bf16.msra.mxu0 %v14123_v3 }
 0x135   :  { %9798 = vmatprep.subr.bf16.mxu0 %v14124_v24 }
 0x137   :  { %8097 = vmatmul.mubr.f32.vlgmr.msra.gmra.mrb[0].mxu0 %v14125_v15 }
 0x138   :  { %9800 = vmatpush3.bf16.msra.mxu0 %v14124_v24  ;;  %8099 = vmatprep.mubr.f32.mxu0 %v14126_v22  ;;  %v12239_v24 = vand.u32 4294901760, %v1086_v26 }
 0x139   :  { %9802 = vmatprep.subr.bf16.mxu0 %v14127_v30 }
 0x13a   :  { %v12253_v27 = vsub.f32 %v1086_v26, %v12239_v24 }
 0x13b   :  { %8100 = vmatmul.mubr.f32.gmra.mrb[2].mxu0 %v14128_v4 }
 0x13c   :  { %9804 = vmatpush3.bf16.msra.mxu0 %v14127_v30  ;;  %8102 = vmatprep.mubr.f32.mxu0 %v14129_v32 }
 0x13d   :  { %9806 = vmatprep.subr.bf16.mxu0 %v12010_v11 }
 0x13f   :  { %8103 = vmatmul.mubr.f32.gmra.mrb[4].mxu0 %v14130_v41 }
 0x140   :  { %9808 = vmatpush3.bf16.msra.mxu0 %v12010_v11  ;;  %8137 = vmatprep.mubr.f32.mxu0 %v11803_v17 }
 0x141   :  { %9810 = vmatprep.subr.bf16.mxu0 %v12012_v9 }
 0x144   :  { %9812 = vmatpush3.bf16.msra.mxu0 %v12012_v9  ;;  %v12147_v9 = vld [vmem:[#allocation17 + $0x10] sm:$0xff] }
 0x145   :  { %9814 = vmatprep.subr.bf16.mxu0 %v12014_v59 }
 0x148   :  { %9816 = vmatpush3.bf16.msra.mxu0 %v12014_v59 }
 0x149   :  { %9818 = vmatprep.subr.bf16.mxu0 %v14131_v5 }
 0x14c   :  { %9820 = vmatpush3.bf16.msra.mxu0 %v14131_v5  ;;  %v1184_v5 = vand.u32 4294901760, %v12228_v39 }
 0x14d   :  { %9822 = vmatprep.subr.bf16.mxu0 %v14132_v0 }
 0x150   :  { %9824 = vmatpush3.bf16.msra.mxu0 %v14132_v0 }
 0x151   :  { %9826 = vmatprep.subr.bf16.mxu0 %v12020_v23 }
 0x154   :  { %9828 = vmatpush3.bf16.msra.mxu0 %v12020_v23 }
 0x155   :  { %9830 = vmatprep.subr.bf16.mxu0 %v11793_v10 }
 0x157   :  { %8138 = vmatmul.mubr.f32.vlgmr.msra.gmra.mrb[0].mxu0 %v11823_v28 }
 0x158   :  { %9832 = vmatpush3.bf16.msra.mxu0 %v11793_v10  ;;  %8140 = vmatprep.mubr.f32.mxu0 %v11881_v62  ;;  %v210_v10 = vld [vmem:[#allocation7] sm:$0xff] }
 0x159   :  { %9834 = vmatprep.subr.bf16.mxu0 %v11795_v13 }
 0x15b   :  { %8141 = vmatmul.mubr.f32.gmra.mrb[2].mxu0 %v11917_v40 }
 0x15c   :  { %9836 = vmatpush3.bf16.msra.mxu0 %v11795_v13  ;;  %8143 = vmatprep.mubr.f32.mxu0 %v11921_v58  ;;  %v1074_v13 = vsel %vm1072_vm0, %v210_v10, 0 }
 0x15d   :  { %9838 = vmatprep.subr.bf16.mxu0 %v11806_v18 }
 0x15f   :  { %8144 = vmatmul.mubr.f32.gmra.mrb[4].mxu0 %v11958_v6 }
 0x160   :  { %9840 = vmatpush3.bf16.msra.mxu0 %v11806_v18  ;;  %8178 = vmatprep.mubr.f32.mxu0 %v11803_v17  ;;  %v12134_v17 = vand.u32 4294901760, %v1074_v13 }
 0x161   :  { %9842 = vmatprep.subr.bf16.mxu0 %v11830_v29 }
 0x162   :  { %v12137_v18 = vsub.f32 %v1074_v13, %v12134_v17 }
 0x164   :  { %9844 = vmatpush3.bf16.msra.mxu0 %v11830_v29  ;;  %v1164_v29 = vand.u32 4294901760, %v12137_v18 }
 0x165   :  { %9846 = vmatprep.subr.bf16.mxu0 %v14120_v12 }
 0x168   :  { %9848 = vmatpush3.bf16.msra.mxu0 %v14120_v12  ;;  %v12233_v12 = vsub.f32 %v12217_v49, %v1174_v48 }
 0x169   :  { %9850 = vmatprep.subr.bf16.mxu0 %v14121_v19 }
 0x16c   :  { %9852 = vmatpush3.bf16.msra.mxu0 %v14121_v19  ;;  %v1089_v19 = vsel %vm1072_vm0, %v215_v2, 0 }
 0x16d   :  { %9854 = vmatprep.subr.bf16.mxu0 %v14122_v63  ;;  %v12244_v0 = vand.u32 4294901760, %v1089_v19 }
 0x170   :  { %9856 = vmatpush3.bf16.msra.mxu0 %v14122_v63 }
 0x171   :  { %9858 = vmatprep.subr.bf16.mxu0 %v14123_v3 }
 0x174   :  { %9860 = vmatpush3.bf16.msra.mxu0 %v14123_v3  ;;  %v12237_v3 = vsub.f32 %v1083_v35, %v12224_v61 }
 0x176   :  { %v1194_v8 = vand.u32 4294901760, %v12237_v3 }
 0x177   :  { %8179 = vmatmul.mubr.f32.vlgmr.msra.gmra.mrb[0].mxu0 %v11823_v28  ;;  %v1165_v28 = vsub.f32 %v12137_v18, %v1164_v29 }
 0x178   :  { %8181 = vmatprep.mubr.f32.mxu0 %v11881_v62  ;;  %v12145_v62 = vld [vmem:[#allocation17 + $0x8] sm:$0xff] }
 0x179   :  { %v1166_v59 = vand.u32 4294901760, %v1165_v28  ;;  %v1176_v28 = vand.u32 4294901760, %v12233_v12 }
 0x17b   :  { %8182 = vmatmul.mubr.f32.gmra.mrb[2].mxu0 %v11917_v40  ;;  %8199 = vmatprep.mubr.f32.mxu1 %v1166_v59  ;;  %v1833_v40 = vand.u32 4294901760, %v12145_v62 }
 0x17c   :  { %8184 = vmatprep.mubr.f32.mxu0 %v11921_v58  ;;  %v12143_v58 = vld [vmem:[#allocation17] sm:$0xff] }
 0x17d   :  { %v1830_v11 = vand.u32 4294901760, %v12143_v58 }
 0x17f   :  { %8185 = vmatmul.mubr.f32.gmra.mrb[4].mxu0 %v11958_v6  ;;  %v14000_v6 = vand.u32 4294901760, %v12147_v9  ;;  %v12163_v23 = vpack.c.bf16 %v1833_v40, %v1830_v11 }
 0x181   :  { %14133 = vst [vmem:[#allocation27_spill] sm:$0xff] %v12163_v23  ;;  %v12169_v54 = vpack.c.bf16 %v13999_v44, %v14000_v6  ;;  %10126 = vmatprep.subr.bf16.mxu0 %v12163_v23 }
 0x182   :  { %10128 = vmatpush3.bf16.msra.mxu0 %v12163_v23 }
 0x183   :  { %14134 = vst [vmem:[#allocation28_spill] sm:$0xff] %v12169_v54  ;;  %10130 = vmatprep.subr.bf16.mxu0 %v12169_v54 }
 0x186   :  { %10132 = vmatpush3.bf16.msra.mxu0 %v12169_v54 }
 0x187   :  { %10134 = vmatprep.subr.bf16.mxu0 %v12184_v14 }
 0x18a   :  { %10136 = vmatpush3.bf16.msra.mxu0 %v12184_v14 }
 0x18b   :  { %10138 = vmatprep.subr.bf16.mxu0 %v12198_v53 }
 0x18e   :  { %10140 = vmatpush3.bf16.msra.mxu0 %v12198_v53 }
 0x18f   :  { %10142 = vmatprep.subr.bf16.mxu0 %v12208_v31 }
 0x192   :  { %10144 = vmatpush3.bf16.msra.mxu0 %v12208_v31 }
 0x24a   :  { %v8180_v25 = vpop.f32.mrb[0].mxu0 }
 0x24b   :  { %v1095_v37 = vand.u32 4294901760, %v8180_v25  ;;  %v1038_v38 = vpop.f32.mrb[1].mxu0 }
 0x24c   :  { %v1092_v52 = vand.u32 4294901760, %v1038_v38 }
 0x24d   :  { %v1231_v63 = vsub.f32 %v8180_v25, %v1095_v37 }
 0x24e   :  { %v12241_v15 = vpack.c.bf16 %v1095_v37, %v1092_v52  ;;  %v1224_v22 = vsub.f32 %v1038_v38, %v1092_v52  ;;  %v8183_v30 = vpop.f32.mrb[2].mxu0 }
 0x24f   :  { %v1232_v4 = vand.u32 4294901760, %v1231_v63  ;;  %v1101_v32 = vand.u32 4294901760, %v8183_v30  ;;  %v1050_v41 = vpop.f32.mrb[3].mxu0 }
 0x250   :  { %v1225_v10 = vand.u32 4294901760, %v1224_v22  ;;  %v1098_v13 = vand.u32 4294901760, %v1050_v41  ;;  %9862 = vmatprep.subr.bf16.mxu1 %v12241_v15  ;;  %v12248_v59 = vpack.c.bf16 %v1231_v63, %v1224_v22 }
 0x251   :  { %v1233_v43 = vsub.f32 %v1231_v63, %v1232_v4  ;;  %v1245_v57 = vsub.f32 %v8183_v30, %v1101_v32  ;;  %9864 = vmatpush3.bf16.msra.mxu1 %v12241_v15  ;;  %v12260_v63 = vsub.f32 %v1089_v19, %v12244_v0 }
 0x252   :  { %v1226_v42 = vsub.f32 %v1224_v22, %v1225_v10  ;;  %v12255_v35 = vpack.c.bf16 %v1101_v32, %v1098_v13  ;;  %v1238_v51 = vsub.f32 %v1050_v41, %v1098_v13  ;;  %v8186_v2 = vpop.f32.mrb[4].mxu0  ;;  %v12257_v25 = vpack.c.bf16 %v1232_v4, %v1225_v10 }
 0x253   :  { %v1246_v37 = vand.u32 4294901760, %v1245_v57  ;;  %v1107_v38 = vand.u32 4294901760, %v8186_v2  ;;  %v1062_v52 = vpop.f32.mrb[5].mxu0  ;;  %v1234_v12 = vand.u32 4294901760, %v1233_v43  ;;  %v1185_v4 = vsub.f32 %v12228_v39, %v1184_v5 }
 0x254   :  { %v1239_v30 = vand.u32 4294901760, %v1238_v51  ;;  %v1104_v47 = vand.u32 4294901760, %v1062_v52  ;;  %9866 = vmatprep.subr.bf16.mxu1 %v12255_v35  ;;  %v1227_v26 = vand.u32 4294901760, %v1226_v42  ;;  %v9889_v46 = vpack.c.bf16 %v1245_v57, %v1238_v51 }
 0x255   :  { %v1247_v22 = vsub.f32 %v1245_v57, %v1246_v37  ;;  %v1259_v32 = vsub.f32 %v8186_v2, %v1107_v38  ;;  %9868 = vmatpush3.bf16.msra.mxu1 %v12255_v35  ;;  %v1204_v41 = vand.u32 4294901760, %v12253_v27  ;;  %v1195_v57 = vsub.f32 %v12237_v3, %v1194_v8 }
 0x256   :  { %v1240_v10 = vsub.f32 %v1238_v51, %v1239_v30  ;;  %v12268_v13 = vpack.c.bf16 %v1107_v38, %v1104_v47  ;;  %v1252_v19 = vsub.f32 %v1062_v52, %v1104_v47  ;;  %v9873_v43 = vpack.c.bf16 %v1234_v12, %v1227_v26 }
 0x257   :  { %v1260_v16 = vand.u32 4294901760, %v1259_v32  ;;  %v1248_v21 = vand.u32 4294901760, %v1247_v22  ;;  %v9913_v42 = vpack.c.bf16 %v1246_v37, %v1239_v30  ;;  %v1214_v55 = vand.u32 4294901760, %v12260_v63 }
 0x258   :  { %v1253_v2 = vand.u32 4294901760, %v1252_v19  ;;  %9870 = vmatprep.subr.bf16.mxu1 %v12268_v13  ;;  %v1241_v1 = vand.u32 4294901760, %v1240_v10  ;;  %v9893_v44 = vpack.c.bf16 %v1259_v32, %v1252_v19  ;;  %v1186_v51 = vand.u32 4294901760, %v1185_v4 }
 0x259   :  { %v1261_v6 = vsub.f32 %v1259_v32, %v1260_v16  ;;  %9872 = vmatpush3.bf16.msra.mxu1 %v12268_v13  ;;  %v1205_v47 = vsub.f32 %v12253_v27, %v1204_v41  ;;  %v1196_v30 = vand.u32 4294901760, %v1195_v57  ;;  %v1215_v22 = vsub.f32 %v12260_v63, %v1214_v55 }
 0x25a   :  { %v1254_v38 = vsub.f32 %v1252_v19, %v1253_v2  ;;  %9874 = vmatprep.subr.bf16.mxu1 %v9873_v43  ;;  %v9877_v52 = vpack.c.bf16 %v1248_v21, %v1241_v1  ;;  %v9917_v12 = vpack.c.bf16 %v1260_v16, %v1253_v2  ;;  %v191_v1 = vld [vmem:[#allocation17 + $0x68] sm:$0xff] }
 0x25b   :  { %v1262_v37 = vand.u32 4294901760, %v1261_v6  ;;  %v1206_v32 = vand.u32 4294901760, %v1205_v47  ;;  %v1216_v4 = vand.u32 4294901760, %v1215_v22  ;;  %v1869_v16 = vand.u32 4294901760, %v191_v1 }
 0x25c   :  { %8200 = vmatmul.mubr.f32.vlgmr.msra.gmra.mrb[0].mxu1 %v1176_v28  ;;  %v1255_v26 = vand.u32 4294901760, %v1254_v38 }
 0x25d   :  { %9876 = vmatpush3.bf16.msra.mxu1 %v9873_v43  ;;  %8202 = vmatprep.mubr.f32.mxu1 %v1186_v51 }
 0x25e   :  { %9878 = vmatprep.subr.bf16.mxu1 %v9877_v52  ;;  %v9881_v10 = vpack.c.bf16 %v1262_v37, %v1255_v26 }
 0x260   :  { %8203 = vmatmul.mubr.f32.gmra.mrb[2].mxu1 %v1196_v30 }
 0x261   :  { %9880 = vmatpush3.bf16.msra.mxu1 %v9877_v52  ;;  %8205 = vmatprep.mubr.f32.mxu1 %v1206_v32 }
 0x262   :  { %9882 = vmatprep.subr.bf16.mxu1 %v9881_v10 }
 0x264   :  { %8206 = vmatmul.mubr.f32.gmra.mrb[4].mxu1 %v1216_v4 }
 0x265   :  { %9884 = vmatpush3.bf16.msra.mxu1 %v9881_v10  ;;  %8220 = vmatprep.mubr.f32.mxu1 %v12134_v17 }
 0x266   :  { %9886 = vmatprep.subr.bf16.mxu1 %v12248_v59 }
 0x268   :  { %8221 = vmatmul.mubr.f32.vlgmr.msra.gmra.mrb[0].mxu1 %v12214_v60 }
 0x269   :  { %9888 = vmatpush3.bf16.msra.mxu1 %v12248_v59  ;;  %8223 = vmatprep.mubr.f32.mxu1 %v12221_v36 }
 0x26a   :  { %9890 = vmatprep.subr.bf16.mxu1 %v9889_v46 }
 0x26c   :  { %8224 = vmatmul.mubr.f32.gmra.mrb[2].mxu1 %v12224_v61 }
 0x26d   :  { %9892 = vmatpush3.bf16.msra.mxu1 %v9889_v46  ;;  %8226 = vmatprep.mubr.f32.mxu1 %v12239_v24 }
 0x26e   :  { %9894 = vmatprep.subr.bf16.mxu1 %v9893_v44 }
 0x270   :  { %8227 = vmatmul.mubr.f32.gmra.mrb[4].mxu1 %v12244_v0 }
 0x271   :  { %9896 = vmatpush3.bf16.msra.mxu1 %v9893_v44  ;;  %8241 = vmatprep.mubr.f32.mxu1 %v12137_v18  ;;  %v189_v18 = vld [vmem:[#allocation17 + $0x58] sm:$0xff] }
 0x272   :  { %9898 = vmatprep.subr.bf16.mxu1 %v12241_v15  ;;  %v1863_v6 = vand.u32 4294901760, %v189_v18 }
 0x274   :  { %8242 = vmatmul.mubr.f32.vlgmr.msra.gmra.mrb[0].mxu1 %v12217_v49  ;;  %v12356_v49 = vsub.f32 %v12145_v62, %v1833_v40  ;;  %v12382_v28 = vsub.f32 %v189_v18, %v1863_v6 }
 0x275   :  { %9900 = vmatpush3.bf16.msra.mxu1 %v12241_v15  ;;  %8244 = vmatprep.mubr.f32.mxu1 %v12228_v39 }
 0x276   :  { %9902 = vmatprep.subr.bf16.mxu1 %v12255_v35 }
 0x278   :  { %8245 = vmatmul.mubr.f32.gmra.mrb[2].mxu1 %v12237_v3 }
 0x279   :  { %9904 = vmatpush3.bf16.msra.mxu1 %v12255_v35  ;;  %8247 = vmatprep.mubr.f32.mxu1 %v12253_v27 }
 0x27a   :  { %9906 = vmatprep.subr.bf16.mxu1 %v12268_v13 }
 0x27c   :  { %8248 = vmatmul.mubr.f32.gmra.mrb[4].mxu1 %v12260_v63  ;;  %v12394_v63 = vsub.f32 %v191_v1, %v1869_v16 }
 0x27d   :  { %9908 = vmatpush3.bf16.msra.mxu1 %v12268_v13  ;;  %8262 = vmatprep.mubr.f32.mxu1 %v1164_v29 }
 0x27e   :  { %9910 = vmatprep.subr.bf16.mxu1 %v12257_v25  ;;  %v14003_v43 = vand.u32 4294901760, %v12394_v63 }
 0x280   :  { %8263 = vmatmul.mubr.f32.vlgmr.msra.gmra.mrb[0].mxu1 %v1174_v48  ;;  %v193_v48 = vld [vmem:[#allocation17 + $0x78] sm:$0xff]  ;;  %v2065_v2 = vsub.f32 %v12394_v63, %v14003_v43 }
 0x281   :  { %9912 = vmatpush3.bf16.msra.mxu1 %v12257_v25  ;;  %8265 = vmatprep.mubr.f32.mxu1 %v1184_v5  ;;  %v1875_v39 = vand.u32 4294901760, %v193_v48 }
 0x282   :  { %9914 = vmatprep.subr.bf16.mxu1 %v9913_v42  ;;  %v2066_v52 = vand.u32 4294901760, %v2065_v2 }
 0x283   :  { %v12408_v47 = vsub.f32 %v193_v48, %v1875_v39 }
 0x284   :  { %8266 = vmatmul.mubr.f32.gmra.mrb[2].mxu1 %v1194_v8  ;;  %v14005_v8 = vand.u32 4294901760, %v12382_v28 }
 0x285   :  { %9916 = vmatpush3.bf16.msra.mxu1 %v9913_v42  ;;  %8268 = vmatprep.mubr.f32.mxu1 %v1204_v41  ;;  %v14001_v37 = vand.u32 4294901760, %v12408_v47 }
 0x286   :  { %9918 = vmatprep.subr.bf16.mxu1 %v9917_v12 }
 0x287   :  { %v2079_v22 = vsub.f32 %v12408_v47, %v14001_v37 }
 0x288   :  { %8269 = vmatmul.mubr.f32.gmra.mrb[4].mxu1 %v1214_v55  ;;  %v190_v55 = vld [vmem:[#allocation17 + $0x60] sm:$0xff] }
 0x289   :  { %9920 = vmatpush3.bf16.msra.mxu1 %v9917_v12  ;;  %8283 = vmatprep.mubr.f32.mxu1 %v12134_v17  ;;  %v1866_v21 = vand.u32 4294901760, %v190_v55  ;;  %v2080_v10 = vand.u32 4294901760, %v2079_v22 }
 0x28a   :  { %9922 = vmatprep.subr.bf16.mxu1 %v12241_v15 }
 0x28b   :  { %v12346_v46 = vpack.c.bf16 %v1869_v16, %v1866_v21  ;;  %v12392_v25 = vsub.f32 %v190_v55, %v1866_v21  ;;  %v14149_v55 = vand.u32 4294901760, %v12147_v9  ;;  %v14150_v21 = vand.u32 4294901760, %v12151_v20 }
 0x28c   :  { %8284 = vmatmul.mubr.f32.vlgmr.msra.gmra.mrb[0].mxu1 %v12214_v60 }
 0x28d   :  { %9924 = vmatpush3.bf16.msra.mxu1 %v12241_v15  ;;  %8286 = vmatprep.mubr.f32.mxu1 %v12221_v36  ;;  %14139 = vst [vmem:[#allocation33_spill] sm:$0xff] %v12346_v46  ;;  %v14004_v19 = vand.u32 4294901760, %v12392_v25  ;;  %v12441_v1 = vsub.f32 %v12147_v9, %v14149_v55  ;;  %v12446_v16 = vsub.f32 %v12151_v20, %v14150_v21 }
 0x28e   :  { %9926 = vmatprep.subr.bf16.mxu1 %v12255_v35 }
 0x28f   :  { %v2058_v42 = vsub.f32 %v12392_v25, %v14004_v19  ;;  %v14010_v48 = vand.u32 4294901760, %v12446_v16  ;;  %v14158_v19 = vand.u32 4294901760, %v12190_v7 }
 0x290   :  { %8287 = vmatmul.mubr.f32.gmra.mrb[2].mxu1 %v12224_v61 }
 0x291   :  { %9928 = vmatpush3.bf16.msra.mxu1 %v12255_v35  ;;  %8289 = vmatprep.mubr.f32.mxu1 %v12239_v24  ;;  %v2051_v35 = vsub.f32 %v12382_v28, %v14005_v8  ;;  %v2059_v38 = vand.u32 4294901760, %v2058_v42  ;;  %v1995_v20 = vsub.f32 %v12446_v16, %v14010_v48  ;;  %v12533_v8 = vsub.f32 %v12190_v7, %v14158_v19 }
 0x292   :  { %9930 = vmatprep.subr.bf16.mxu1 %v12268_v13 }
 0x293   :  { %v12412_v30 = vpack.c.bf16 %v2066_v52, %v2059_v38 }
 0x294   :  { %8290 = vmatmul.mubr.f32.gmra.mrb[4].mxu1 %v12244_v0 }
 0x295   :  { %9932 = vmatpush3.bf16.msra.mxu1 %v12268_v13  ;;  %8304 = vmatprep.mubr.f32.mxu1 %v12134_v17  ;;  %v188_v17 = vld [vmem:[#allocation17 + $0x50] sm:$0xff]  ;;  %v2052_v13 = vand.u32 4294901760, %v2051_v35  ;;  %14143 = vst [vmem:[#allocation37_spill] sm:$0xff] %v12412_v30 }
 0x296   :  { %9934 = vmatprep.subr.bf16.mxu1 %v12163_v23  ;;  %v1860_v29 = vand.u32 4294901760, %v188_v17 }
 0x298   :  { %8305 = vmatmul.mubr.f32.vlgmr.msra.gmra.mrb[0].mxu1 %v12214_v60  ;;  %v12340_v44 = vpack.c.bf16 %v1863_v6, %v1860_v29  ;;  %v12351_v60 = vsub.f32 %v12143_v58, %v1830_v11 }
 0x299   :  { %8307 = vmatprep.mubr.f32.mxu1 %v12221_v36  ;;  %9936 = vmatpush3.bf16.msra.mxu1 %v12163_v23  ;;  %v192_v36 = vld [vmem:[#allocation17 + $0x70] sm:$0xff] }
 0x29a   :  { %9938 = vmatprep.subr.bf16.mxu1 %v12169_v54  ;;  %14138 = vst [vmem:[#allocation32_spill] sm:$0xff] %v12340_v44  ;;  %10146 = vmatprep.subr.bf16.mxu0 %v12340_v44  ;;  %v14013_v3 = vand.u32 4294901760, %v12351_v60 }
 0x29b   :  { %10148 = vmatpush3.bf16.msra.mxu0 %v12340_v44 }
 0x29c   :  { %8308 = vmatmul.mubr.f32.gmra.mrb[2].mxu1 %v12224_v61  ;;  %v1872_v61 = vand.u32 4294901760, %v192_v36  ;;  %10150 = vmatprep.subr.bf16.mxu0 %v12346_v46  ;;  %v1974_v62 = vsub.f32 %v12351_v60, %v14013_v3 }
 0x29d   :  { %8310 = vmatprep.mubr.f32.mxu1 %v12239_v24  ;;  %9940 = vmatpush3.bf16.msra.mxu1 %v12169_v54  ;;  %v14012_v24 = vand.u32 4294901760, %v12356_v49 }
 0x29e   :  { %9942 = vmatprep.subr.bf16.mxu1 %v12184_v14  ;;  %v12364_v58 = vpack.c.bf16 %v1875_v39, %v1872_v61  ;;  %v1975_v40 = vand.u32 4294901760, %v1974_v62  ;;  %v12406_v51 = vsub.f32 %v192_v36, %v1872_v61  ;;  %v14011_v36 = vand.u32 4294901760, %v12441_v1 }
 0x29f   :  { %10152 = vmatpush3.bf16.msra.mxu0 %v12346_v46  ;;  %v1981_v11 = vsub.f32 %v12356_v49, %v14012_v24  ;;  %v14151_v61 = vand.u32 4294901760, %v12155_v45  ;;  %v14152_v62 = vand.u32 4294901760, %v12157_v34 }
 0x2a0   :  { %8311 = vmatmul.mubr.f32.gmra.mrb[4].mxu1 %v12244_v0  ;;  %14140 = vst [vmem:[#allocation34_spill] sm:$0xff] %v12364_v58  ;;  %10154 = vmatprep.subr.bf16.mxu0 %v12364_v58  ;;  %v12380_v0 = vsub.f32 %v188_v17, %v1860_v29  ;;  %v14002_v12 = vand.u32 4294901760, %v12406_v51  ;;  %v12424_v17 = vpack.c.bf16 %v12356_v49, %v12351_v60 }
 0x2a1   :  { %9944 = vmatpush3.bf16.msra.mxu1 %v12184_v14  ;;  %v1982_v15 = vand.u32 4294901760, %v1981_v11  ;;  %v12432_v29 = vpack.c.bf16 %v12394_v63, %v12392_v25  ;;  %v12436_v6 = vpack.c.bf16 %v12408_v47, %v12406_v51  ;;  %v12453_v39 = vsub.f32 %v12155_v45, %v14151_v61 }
 0x2a2   :  { %9946 = vmatprep.subr.bf16.mxu1 %v12198_v53  ;;  %v14006_v59 = vand.u32 4294901760, %v12380_v0  ;;  %v2072_v26 = vsub.f32 %v12406_v51, %v14002_v12  ;;  %14145 = vst [vmem:[#allocation39_spill] sm:$0xff] %v12424_v17  ;;  %v12428_v18 = vpack.c.bf16 %v12382_v28, %v12380_v0  ;;  %v12458_v11 = vsub.f32 %v12157_v34, %v14152_v62 }
 0x2a3   :  { %10156 = vmatpush3.bf16.msra.mxu0 %v12364_v58  ;;  %v12376_v5 = vpack.c.bf16 %v1982_v15, %v1975_v40  ;;  %14147 = vst [vmem:[#allocation41_spill] sm:$0xff] %v12432_v29  ;;  %14148 = vst [vmem:[#allocation42_spill] sm:$0xff] %v12436_v6  ;;  %v1988_v9 = vsub.f32 %v12441_v1, %v14011_v36  ;;  %v14008_v15 = vand.u32 4294901760, %v12453_v39  ;;  %v14153_v34 = vand.u32 4294901760, %v12174_v33 }
 0x2a4   :  { %v2044_v27 = vsub.f32 %v12380_v0, %v14006_v59  ;;  %v2073_v32 = vand.u32 4294901760, %v2072_v26  ;;  %14146 = vst [vmem:[#allocation40_spill] sm:$0xff] %v12428_v18  ;;  %v14007_v45 = vand.u32 4294901760, %v12458_v11  ;;  %v1996_v26 = vand.u32 4294901760, %v1995_v20 }
 0x2a5   :  { %9948 = vmatpush3.bf16.msra.mxu1 %v12198_v53  ;;  %14141 = vst [vmem:[#allocation35_spill] sm:$0xff] %v12376_v5  ;;  %10158 = vmatprep.subr.bf16.mxu0 %v12376_v5  ;;  %v1989_v52 = vand.u32 4294901760, %v1988_v9 }
 0x2a6   :  { %9950 = vmatprep.subr.bf16.mxu1 %v12208_v31  ;;  %v2045_v41 = vand.u32 4294901760, %v2044_v27  ;;  %v12420_v4 = vpack.c.bf16 %v2080_v10, %v2073_v32  ;;  %v2009_v32 = vsub.f32 %v12458_v11, %v14007_v45 }
 0x2a7   :  { %v12528_v43 = vpack.c.bf16 %v1996_v26, %v1989_v52 }
 0x2a8   :  { %v12398_v57 = vpack.c.bf16 %v2052_v13, %v2045_v41  ;;  %14144 = vst [vmem:[#allocation38_spill] sm:$0xff] %v12420_v4  ;;  %v12478_v41 = vsub.f32 %v12174_v33, %v14153_v34  ;;  %v14154_v13 = vand.u32 4294901760, %v12176_v56  ;;  %v14156_v34 = vand.u32 4294901760, %v12188_v50 }
 0x2a9   :  { %9952 = vmatpush3.bf16.msra.mxu1 %v12208_v31  ;;  %14157 = vst [vmem:[#allocation44_spill] sm:$0xff] %v12528_v43 }
 0x2aa   :  { %9954 = vmatprep.subr.bf16.mxu1 %v12340_v44  ;;  %14142 = vst [vmem:[#allocation36_spill] sm:$0xff] %v12398_v57  ;;  %v12483_v42 = vsub.f32 %v12176_v56, %v14154_v13  ;;  %v2002_v56 = vsub.f32 %v12453_v39, %v14008_v15  ;;  %v14014_v61 = vand.u32 4294901760, %v12478_v41  ;;  %v12519_v13 = vsub.f32 %v12188_v50, %v14156_v34 }
 0x2ab   :  { %v2010_v15 = vand.u32 4294901760, %v2009_v32 }
 0x2ac   :  { %v14016_v62 = vand.u32 4294901760, %v12483_v42  ;;  %v2003_v45 = vand.u32 4294901760, %v2002_v56  ;;  %v2016_v19 = vsub.f32 %v12478_v41, %v14014_v61 }
 0x2ad   :  { %9956 = vmatpush3.bf16.msra.mxu1 %v12340_v44 }
 0x2ae   :  { %9958 = vmatprep.subr.bf16.mxu1 %v12346_v46 }
 0x2b1   :  { %9960 = vmatpush3.bf16.msra.mxu1 %v12346_v46 }
 0x2b2   :  { %9962 = vmatprep.subr.bf16.mxu1 %v12364_v58 }
 0x2b5   :  { %9964 = vmatpush3.bf16.msra.mxu1 %v12364_v58 }
 0x2b6   :  { %9966 = vmatprep.subr.bf16.mxu1 %v12376_v5 }
 0x36b   :  { %v12466_v40 = vpop.f32.mrb[0].mxu1 }
 0x36c   :  { %v12471_v27 = vand.u32 4294901760, %v12466_v40  ;;  %v12473_v35 = vpop.f32.mrb[1].mxu1 }
 0x36d   :  { %v12486_v2 = vand.u32 4294901760, %v12473_v35 }
 0x36e   :  { %v12490_v38 = vsub.f32 %v12466_v40, %v12471_v27 }
 0x36f   :  { %v12494_v22 = vsub.f32 %v12473_v35, %v12486_v2  ;;  %v12496_v33 = vpop.f32.mrb[2].mxu1 }
 0x370   :  { %v14009_v10 = vand.u32 4294901760, %v12490_v38  ;;  %v12506_v55 = vand.u32 4294901760, %v12496_v33  ;;  %v12508_v21 = vpop.f32.mrb[3].mxu1 }
 0x371   :  { %14155 = vst [vmem:[#allocation43_spill] sm:$0xff] %v12508_v21  ;;  %v12513_v9 = vand.u32 4294901760, %v12508_v21  ;;  %v14015_v20 = vand.u32 4294901760, %v12494_v22 }
 0x372   :  { %v1923_v37 = vsub.f32 %v12490_v38, %v14009_v10  ;;  %v12526_v12 = vsub.f32 %v12496_v33, %v12506_v55  ;;  %v2023_v10 = vsub.f32 %v12483_v42, %v14016_v62 }
 0x373   :  { %v12537_v59 = vsub.f32 %v12508_v21, %v12513_v9  ;;  %v12539_v50 = vpop.f32.mrb[4].mxu1  ;;  %v1913_v34 = vsub.f32 %v12494_v22, %v14015_v20  ;;  %v2017_v20 = vand.u32 4294901760, %v2016_v19 }
 0x374   :  { %14159 = vst [vmem:[#allocation45_spill] sm:$0xff] %v12539_v50  ;;  %v12545_v52 = vand.u32 4294901760, %v12539_v50  ;;  %v12547_v26 = vpop.f32.mrb[5].mxu1  ;;  %v14018_v7 = vand.u32 4294901760, %v12526_v12  ;;  %v1924_v24 = vand.u32 4294901760, %v1923_v37  ;;  %v12576_v37 = vpack.c.bf16 %v2010_v15, %v2003_v45 }
 0x375   :  { %14160 = vst [vmem:[#allocation46_spill] sm:$0xff] %v12547_v26  ;;  %v12557_v48 = vand.u32 4294901760, %v12547_v26  ;;  %v1914_v56 = vand.u32 4294901760, %v1913_v34  ;;  %v14021_v32 = vand.u32 4294901760, %v12537_v59  ;;  %v2024_v21 = vand.u32 4294901760, %v2023_v10 }
 0x376   :  { %v12563_v3 = vsub.f32 %v12539_v50, %v12545_v52  ;;  %v1943_v61 = vsub.f32 %v12526_v12, %v14018_v7  ;;  %14161 = vst [vmem:[#allocation47_spill] sm:$0xff] %v12576_v37  ;;  %v14163_v45 = vand.u32 4294901760, %v12533_v8 }
 0x377   :  { %v12571_v62 = vsub.f32 %v12547_v26, %v12557_v48  ;;  %8345 = vmatprep.mubr.f32.mxu1 %v1914_v56  ;;  %v1933_v34 = vsub.f32 %v12537_v59, %v14021_v32 }
 0x378   :  { %8346 = vmatmul.mubr.f32.vlgmr.msra.gmra.mrb[6].mxu1 %v1924_v24  ;;  %v14022_v36 = vand.u32 4294901760, %v12563_v3  ;;  %v1944_v26 = vand.u32 4294901760, %v1943_v61  ;;  %v14162_v24 = vand.u32 4294901760, %v12519_v13  ;;  %v2037_v32 = vsub.f32 %v12533_v8, %v14163_v45 }
 0x379   :  { %9968 = vmatpush3.bf16.msra.mxu1 %v12376_v5  ;;  %v1934_v50 = vand.u32 4294901760, %v1933_v34  ;;  %v1952_v7 = vand.u32 4294901760, %v12571_v62  ;;  %v12596_v34 = vpack.c.bf16 %v2024_v21, %v2017_v20  ;;  %v12623_v21 = vpack.c.bf16 %v12458_v11, %v12453_v39 }
 0x37a   :  { %9970 = vmatprep.subr.bf16.mxu1 %v12528_v43  ;;  %v1963_v56 = vsub.f32 %v12563_v3, %v14022_v36  ;;  %v2030_v15 = vsub.f32 %v12519_v13, %v14162_v24  ;;  %v2038_v24 = vand.u32 4294901760, %v2037_v32  ;;  %v12631_v20 = vpack.c.bf16 %v12483_v42, %v12478_v41 }
 0x37b   :  { %8348 = vmatprep.mubr.f32.mxu1 %v1934_v50  ;;  %v1953_v10 = vsub.f32 %v12571_v62, %v1952_v7  ;;  %14164 = vst [vmem:[#allocation48_spill] sm:$0xff] %v12596_v34  ;;  %14167 = vst [vmem:[#allocation51_spill] sm:$0xff] %v12623_v21  ;;  %v14170_v32 = vand.u32 4294901760, %v12494_v22  ;;  %v14174_v45 = vand.u32 4294901760, %v12441_v1 }
 0x37c   :  { %8349 = vmatmul.mubr.f32.gmra.mrb[8].mxu1 %v1944_v26  ;;  %v1964_v19 = vand.u32 4294901760, %v1963_v56  ;;  %v2031_v36 = vand.u32 4294901760, %v2030_v15  ;;  %14168 = vst [vmem:[#allocation52_spill] sm:$0xff] %v12631_v20  ;;  %v12639_v26 = vpack.c.bf16 %v12533_v8, %v12519_v13  ;;  %v14172_v56 = vand.u32 4294901760, %v12356_v49 }
 0x37d   :  { %9972 = vmatpush3.bf16.msra.mxu1 %v12528_v43  ;;  %v1954_v61 = vand.u32 4294901760, %v1953_v10  ;;  %v14175_v10 = vand.u32 4294901760, %v12446_v16  ;;  %v14180_v49 = vand.u32 4294901760, %v12458_v11  ;;  %v14188_v11 = vand.u32 4294901760, %v12533_v8 }
 0x37e   :  { %9974 = vmatprep.subr.bf16.mxu1 %v12576_v37  ;;  %v12601_v50 = vpack.c.bf16 %v2038_v24, %v2031_v36  ;;  %v12615_v36 = vpack.c.bf16 %v12446_v16, %v12441_v1  ;;  %14169 = vst [vmem:[#allocation53_spill] sm:$0xff] %v12639_v26  ;;  %v14178_v24 = vand.u32 4294901760, %v12537_v59  ;;  %v14182_v1 = vand.u32 4294901760, %v12526_v12 }
 0x37f   :  { %8351 = vmatprep.mubr.f32.mxu1 %v1954_v61  ;;  %v12684_v61 = vpack.c.bf16 %v14175_v10, %v14174_v45  ;;  %v14184_v16 = vand.u32 4294901760, %v12483_v42  ;;  %v14194_v8 = vand.u32 4294901760, %v12394_v63 }
 0x380   :  { %8352 = vmatmul.mubr.f32.gmra.mrb[10].mxu1 %v1964_v19  ;;  %14165 = vst [vmem:[#allocation49_spill] sm:$0xff] %v12601_v50  ;;  %14166 = vst [vmem:[#allocation50_spill] sm:$0xff] %v12615_v36  ;;  %v14177_v19 = vand.u32 4294901760, %v12490_v38 }
 0x381   :  { %9976 = vmatpush3.bf16.msra.mxu1 %v12576_v37  ;;  %8386 = vmatprep.mubr.f32.mxu1 %v12486_v2  ;;  %14176 = vst [vmem:[#allocation55_spill] sm:$0xff] %v12684_v61 }
 0x382   :  { %9978 = vmatprep.subr.bf16.mxu1 %v12596_v34 }
 0x385   :  { %9980 = vmatpush3.bf16.msra.mxu1 %v12596_v34 }
 0x386   :  { %9982 = vmatprep.subr.bf16.mxu1 %v12601_v50 }
 0x389   :  { %9984 = vmatpush3.bf16.msra.mxu1 %v12601_v50 }
 0x38a   :  { %9986 = vmatprep.subr.bf16.mxu1 %v12398_v57 }
 0x38d   :  { %9988 = vmatpush3.bf16.msra.mxu1 %v12398_v57 }
 0x38e   :  { %9990 = vmatprep.subr.bf16.mxu1 %v12412_v30 }
 0x391   :  { %9992 = vmatpush3.bf16.msra.mxu1 %v12412_v30 }
 0x392   :  { %9994 = vmatprep.subr.bf16.mxu1 %v12420_v4 }
 0x395   :  { %9996 = vmatpush3.bf16.msra.mxu1 %v12420_v4 }
 0x396   :  { %9998 = vmatprep.subr.bf16.mxu1 %v12424_v17 }
 0x398   :  { %8387 = vmatmul.mubr.f32.vlgmr.msra.gmra.mrb[6].mxu1 %v12471_v27 }
 0x399   :  { %8389 = vmatprep.mubr.f32.mxu1 %v12513_v9  ;;  %10000 = vmatpush3.bf16.msra.mxu1 %v12424_v17 }
 0x39a   :  { %10002 = vmatprep.subr.bf16.mxu1 %v12615_v36 }
 0x39c   :  { %8390 = vmatmul.mubr.f32.gmra.mrb[8].mxu1 %v12506_v55 }
 0x39d   :  { %8392 = vmatprep.mubr.f32.mxu1 %v12557_v48  ;;  %10004 = vmatpush3.bf16.msra.mxu1 %v12615_v36 }
 0x39e   :  { %10006 = vmatprep.subr.bf16.mxu1 %v12623_v21 }
 0x3a0   :  { %8393 = vmatmul.mubr.f32.gmra.mrb[10].mxu1 %v12545_v52 }
 0x3a1   :  { %10008 = vmatpush3.bf16.msra.mxu1 %v12623_v21  ;;  %8427 = vmatprep.mubr.f32.mxu1 %v12494_v22  ;;  %v14171_v22 = vand.u32 4294901760, %v12351_v60  ;;  %v14179_v60 = vand.u32 4294901760, %v12453_v39  ;;  %v14186_v39 = vand.u32 4294901760, %v12563_v3 }
 0x3a2   :  { %10010 = vmatprep.subr.bf16.mxu1 %v12631_v20 }
 0x3a3   :  { %v12676_v15 = vpack.c.bf16 %v14172_v56, %v14171_v22 }
 0x3a5   :  { %10012 = vmatpush3.bf16.msra.mxu1 %v12631_v20  ;;  %14173 = vst [vmem:[#allocation54_spill] sm:$0xff] %v12676_v15 }
 0x3a6   :  { %10014 = vmatprep.subr.bf16.mxu1 %v12639_v26 }
 0x3a9   :  { %10016 = vmatpush3.bf16.msra.mxu1 %v12639_v26 }
 0x3aa   :  { %10018 = vmatprep.subr.bf16.mxu1 %v12428_v18 }
 0x3ad   :  { %10020 = vmatpush3.bf16.msra.mxu1 %v12428_v18 }
 0x3ae   :  { %10022 = vmatprep.subr.bf16.mxu1 %v12432_v29 }
 0x3b1   :  { %10024 = vmatpush3.bf16.msra.mxu1 %v12432_v29 }
 0x3b2   :  { %10026 = vmatprep.subr.bf16.mxu1 %v12436_v6 }
 0x3b5   :  { %10028 = vmatpush3.bf16.msra.mxu1 %v12436_v6 }
 0x3b6   :  { %10030 = vmatprep.subr.bf16.mxu1 %v12163_v23 }
 0x3b8   :  { %8428 = vmatmul.mubr.f32.vlgmr.msra.gmra.mrb[6].mxu1 %v12490_v38 }
 0x3b9   :  { %8430 = vmatprep.mubr.f32.mxu1 %v12537_v59  ;;  %10032 = vmatpush3.bf16.msra.mxu1 %v12163_v23  ;;  %v14183_v59 = vand.u32 4294901760, %v12478_v41  ;;  %v14190_v41 = vand.u32 4294901760, %v12380_v0  ;;  %v14196_v0 = vand.u32 4294901760, %v12406_v51 }
 0x3ba   :  { %10034 = vmatprep.subr.bf16.mxu1 %v12169_v54 }
 0x3bb   :  { %v12708_v38 = vpack.c.bf16 %v14184_v16, %v14183_v59 }
 0x3bc   :  { %8431 = vmatmul.mubr.f32.gmra.mrb[8].mxu1 %v12526_v12  ;;  %v14187_v12 = vand.u32 4294901760, %v12519_v13  ;;  %v14193_v13 = vand.u32 4294901760, %v12392_v25 }
 0x3bd   :  { %8433 = vmatprep.mubr.f32.mxu1 %v12571_v62  ;;  %10036 = vmatpush3.bf16.msra.mxu1 %v12169_v54  ;;  %14185 = vst [vmem:[#allocation57_spill] sm:$0xff] %v12708_v38 }
 0x3be   :  { %10038 = vmatprep.subr.bf16.mxu1 %v12184_v14  ;;  %v12719_v62 = vpack.c.bf16 %v14188_v11, %v14187_v12  ;;  %v14201_v12 = vld [vmem:[#allocation46_spill] sm:$0xff] }
 0x3c0   :  { %8434 = vmatmul.mubr.f32.gmra.mrb[10].mxu1 %v12563_v3  ;;  %14189 = vst [vmem:[#allocation58_spill] sm:$0xff] %v12719_v62  ;;  %v14191_v3 = vand.u32 4294901760, %v12382_v28  ;;  %v14197_v28 = vand.u32 4294901760, %v12408_v47 }
 0x3c1   :  { %10040 = vmatpush3.bf16.msra.mxu1 %v12184_v14  ;;  %8468 = vmatprep.mubr.f32.mxu1 %v14170_v32  ;;  %v12696_v32 = vpack.c.bf16 %v14180_v49, %v14179_v60 }
 0x3c2   :  { %10042 = vmatprep.subr.bf16.mxu1 %v12198_v53  ;;  %v12727_v42 = vpack.c.bf16 %v14191_v3, %v14190_v41  ;;  %v12743_v22 = vpack.c.bf16 %v14197_v28, %v14196_v0 }
 0x3c3   :  { %14181 = vst [vmem:[#allocation56_spill] sm:$0xff] %v12696_v32 }
 0x3c4   :  { %14192 = vst [vmem:[#allocation59_spill] sm:$0xff] %v12727_v42  ;;  %14198 = vst [vmem:[#allocation61_spill] sm:$0xff] %v12743_v22 }
 0x3c5   :  { %10044 = vmatpush3.bf16.msra.mxu1 %v12198_v53 }
 0x3c6   :  { %10046 = vmatprep.subr.bf16.mxu1 %v12208_v31 }
 0x3c9   :  { %10048 = vmatpush3.bf16.msra.mxu1 %v12208_v31 }
 0x3ca   :  { %10050 = vmatprep.subr.bf16.mxu1 %v12340_v44 }
 0x3cd   :  { %10052 = vmatpush3.bf16.msra.mxu1 %v12340_v44 }
 0x3ce   :  { %10054 = vmatprep.subr.bf16.mxu1 %v12346_v46 }
 0x3d1   :  { %10056 = vmatpush3.bf16.msra.mxu1 %v12346_v46 }
 0x3d2   :  { %10058 = vmatprep.subr.bf16.mxu1 %v12364_v58 }
 0x3d5   :  { %10060 = vmatpush3.bf16.msra.mxu1 %v12364_v58 }
 0x3d6   :  { %10062 = vmatprep.subr.bf16.mxu1 %v12676_v15 }
 0x3d8   :  { %8469 = vmatmul.mubr.f32.vlgmr.msra.gmra.mrb[6].mxu1 %v14177_v19 }
 0x3d9   :  { %8471 = vmatprep.mubr.f32.mxu1 %v14178_v24  ;;  %10064 = vmatpush3.bf16.msra.mxu1 %v12676_v15 }
 0x3da   :  { %10066 = vmatprep.subr.bf16.mxu1 %v12684_v61 }
 0x3dc   :  { %8472 = vmatmul.mubr.f32.gmra.mrb[8].mxu1 %v14182_v1  ;;  %v14200_v1 = vld [vmem:[#allocation45_spill] sm:$0xff] }
 0x3dd   :  { %8474 = vmatprep.mubr.f32.mxu1 %v1952_v7  ;;  %10068 = vmatpush3.bf16.msra.mxu1 %v12684_v61  ;;  %v12735_v7 = vpack.c.bf16 %v14194_v8, %v14193_v13 }
 0x3de   :  { %10070 = vmatprep.subr.bf16.mxu1 %v12696_v32 }
 0x3df   :  { %14195 = vst [vmem:[#allocation60_spill] sm:$0xff] %v12735_v7 }
 0x3e0   :  { %8475 = vmatmul.mubr.f32.gmra.mrb[10].mxu1 %v14186_v39 }
 0x3e1   :  { %10072 = vmatpush3.bf16.msra.mxu1 %v12696_v32  ;;  %8509 = vmatprep.mubr.f32.mxu1 %v12486_v2 }
 0x3e2   :  { %10074 = vmatprep.subr.bf16.mxu1 %v12708_v38 }
 0x3e5   :  { %10076 = vmatpush3.bf16.msra.mxu1 %v12708_v38 }
 0x3e6   :  { %10078 = vmatprep.subr.bf16.mxu1 %v12719_v62 }
 0x3e9   :  { %10080 = vmatpush3.bf16.msra.mxu1 %v12719_v62 }
 0x3ea   :  { %10082 = vmatprep.subr.bf16.mxu1 %v12727_v42 }
 0x3ed   :  { %10084 = vmatpush3.bf16.msra.mxu1 %v12727_v42 }
 0x3ee   :  { %10086 = vmatprep.subr.bf16.mxu1 %v12735_v7 }
 0x3f1   :  { %10088 = vmatpush3.bf16.msra.mxu1 %v12735_v7 }
 0x3f2   :  { %10090 = vmatprep.subr.bf16.mxu1 %v12743_v22 }
 0x3f5   :  { %10092 = vmatpush3.bf16.msra.mxu1 %v12743_v22 }
 0x3f6   :  { %10094 = vmatprep.subr.bf16.mxu1 %v12163_v23 }
 0x3f8   :  { %8510 = vmatmul.mubr.f32.vlgmr.msra.gmra.mrb[6].mxu1 %v12471_v27 }
 0x3f9   :  { %8512 = vmatprep.mubr.f32.mxu1 %v12513_v9  ;;  %10096 = vmatpush3.bf16.msra.mxu1 %v12163_v23 }
 0x3fa   :  { %10098 = vmatprep.subr.bf16.mxu1 %v12169_v54 }
 0x3fc   :  { %8513 = vmatmul.mubr.f32.gmra.mrb[8].mxu1 %v12506_v55 }
 0x3fd   :  { %8515 = vmatprep.mubr.f32.mxu1 %v12557_v48  ;;  %10100 = vmatpush3.bf16.msra.mxu1 %v12169_v54 }
 0x3fe   :  { %10102 = vmatprep.subr.bf16.mxu1 %v12184_v14 }
 0x400   :  { %8516 = vmatmul.mubr.f32.gmra.mrb[10].mxu1 %v12545_v52 }
 0x401   :  { %10104 = vmatpush3.bf16.msra.mxu1 %v12184_v14  ;;  %8550 = vmatprep.mubr.f32.mxu1 %v12486_v2 }
 0x402   :  { %10106 = vmatprep.subr.bf16.mxu1 %v12198_v53 }
 0x405   :  { %10108 = vmatpush3.bf16.msra.mxu1 %v12198_v53 }
 0x406   :  { %10110 = vmatprep.subr.bf16.mxu1 %v12208_v31 }
 0x409   :  { %10112 = vmatpush3.bf16.msra.mxu1 %v12208_v31 }
 0x40a   :  { %10114 = vmatprep.subr.bf16.mxu1 %v12340_v44 }
 0x40d   :  { %10116 = vmatpush3.bf16.msra.mxu1 %v12340_v44 }
 0x40e   :  { %10118 = vmatprep.subr.bf16.mxu1 %v12346_v46 }
 0x411   :  { %10120 = vmatpush3.bf16.msra.mxu1 %v12346_v46 }
 0x412   :  { %10122 = vmatprep.subr.bf16.mxu1 %v12364_v58 }
 0x415   :  { %10124 = vmatpush3.bf16.msra.mxu1 %v12364_v58 }
 0x418   :  { %8551 = vmatmul.mubr.f32.vlgmr.msra.gmra.mrb[6].mxu1 %v12471_v27 }
 0x419   :  { %8553 = vmatprep.mubr.f32.mxu1 %v12513_v9 }
 0x41c   :  { %8554 = vmatmul.mubr.f32.gmra.mrb[8].mxu1 %v12506_v55 }
 0x41d   :  { %8556 = vmatprep.mubr.f32.mxu1 %v12557_v48 }
 0x420   :  { %8557 = vmatmul.mubr.f32.gmra.mrb[10].mxu1 %v12545_v52 }
 0x4eb   :  { %v8552_v25 = vpop.f32.mrb[6].mxu1 }
 0x4ec   :  { %v12776_v63 = vsub.f32 %v12466_v40, %v8552_v25  ;;  %v2651_v51 = vpop.f32.mrb[7].mxu1  ;;  %v14199_v40 = vld [vmem:[#allocation43_spill] sm:$0xff] }
 0x4ed   :  { %v12779_v47 = vsub.f32 %v12473_v35, %v2651_v51 }
 0x4ee   :  { %v2692_v2 = vmul.f32 %v12776_v63, %v12776_v63 }
 0x4ef   :  { %v2691_v27 = vmul.f32 %v12779_v47, %v12779_v47  ;;  %v8555_v9 = vpop.f32.mrb[8].mxu1 }
 0x4f0   :  { %v12785_v55 = vand.u32 4294901760, %v2692_v2  ;;  %v12788_v48 = vsub.f32 %v12496_v33, %v8555_v9  ;;  %v2663_v52 = vpop.f32.mrb[9].mxu1 }
 0x4f1   :  { %v12790_v56 = vand.u32 4294901760, %v2691_v27  ;;  %v12793_v45 = vsub.f32 %v14199_v40, %v2663_v52 }
 0x4f2   :  { %v12796_v35 = vsub.f32 %v2692_v2, %v12785_v55  ;;  %v2694_v10 = vmul.f32 %v12788_v48, %v12788_v48 }
 0x4f3   :  { %v12801_v19 = vsub.f32 %v2691_v27, %v12790_v56  ;;  %v2693_v24 = vmul.f32 %v12793_v45, %v12793_v45  ;;  %v8558_v33 = vpop.f32.mrb[10].mxu1 }
 0x4f4   :  { %v2790_v60 = vand.u32 4294901760, %v12796_v35  ;;  %v12806_v49 = vand.u32 4294901760, %v2694_v10  ;;  %v12809_v59 = vsub.f32 %v14200_v1, %v8558_v33  ;;  %v2675_v16 = vpop.f32.mrb[11].mxu1 }
 0x4f5   :  { %v12811_v39 = vand.u32 4294901760, %v2693_v24  ;;  %v12814_v11 = vsub.f32 %v14201_v12, %v2675_v16  ;;  %v2780_v41 = vand.u32 4294901760, %v12801_v19 }
 0x4f6   :  { %v2791_v3 = vsub.f32 %v12796_v35, %v2790_v60  ;;  %v12821_v13 = vsub.f32 %v2694_v10, %v12806_v49  ;;  %v2696_v8 = vmul.f32 %v12809_v59, %v12809_v59 }
 0x4f7   :  { %v12826_v0 = vsub.f32 %v2693_v24, %v12811_v39  ;;  %v2695_v28 = vmul.f32 %v12814_v11, %v12814_v11  ;;  %v2781_v25 = vsub.f32 %v12801_v19, %v2780_v41 }
 0x4f8   :  { %v12833_v51 = vand.u32 4294901760, %v2696_v8  ;;  %v2810_v2 = vand.u32 4294901760, %v12821_v13  ;;  %v2792_v40 = vand.u32 4294901760, %v2791_v3 }
 0x4f9   :  { %v12836_v27 = vand.u32 4294901760, %v2695_v28  ;;  %v2782_v9 = vand.u32 4294901760, %v2781_v25  ;;  %v2800_v52 = vand.u32 4294901760, %v12826_v0 }
 0x4fa   :  { %v12840_v10 = vsub.f32 %v2696_v8, %v12833_v51  ;;  %v2811_v24 = vsub.f32 %v12821_v13, %v2810_v2 }
 0x4fb   :  { %v12846_v33 = vsub.f32 %v2695_v28, %v12836_v27  ;;  %8591 = vmatprep.mubr.f32.mxu0 %v2782_v9  ;;  %v2801_v1 = vsub.f32 %v12826_v0, %v2800_v52 }
 0x4fc   :  { %8592 = vmatmul.mubr.f32.vlgmr.msra.gmra.mrb[6].mxu0 %v2792_v40  ;;  %v2830_v16 = vand.u32 4294901760, %v12840_v10  ;;  %v2812_v8 = vand.u32 4294901760, %v2811_v24  ;;  %v3589_v24 = vld [vmem:[#allocation11 + $0x30] sm:$0xff] }
 0x4fd   :  { %10160 = vmatpush3.bf16.msra.mxu0 %v12376_v5  ;;  %v2802_v12 = vand.u32 4294901760, %v2801_v1  ;;  %v2820_v3 = vand.u32 4294901760, %v12846_v33  ;;  %v3624_v1 = vand.u32 4294901760, %v3589_v24 }
 0x4fe   :  { %10162 = vmatprep.subr.bf16.mxu0 %v12528_v43  ;;  %v2831_v28 = vsub.f32 %v12840_v10, %v2830_v16 }
 0x4ff   :  { %8594 = vmatprep.mubr.f32.mxu0 %v2802_v12  ;;  %v2821_v25 = vsub.f32 %v12846_v33, %v2820_v3 }
 0x500   :  { %8595 = vmatmul.mubr.f32.gmra.mrb[8].mxu0 %v2812_v8  ;;  %v2832_v40 = vand.u32 4294901760, %v2831_v28  ;;  %v12990_v8 = vld [vmem:[#allocation11 + $0x48] sm:$0xff] }
 0x501   :  { %10164 = vmatpush3.bf16.msra.mxu0 %v12528_v43  ;;  %v2822_v9 = vand.u32 4294901760, %v2821_v25  ;;  %v3633_v25 = vand.u32 4294901760, %v12990_v8 }
 0x502   :  { %10166 = vmatprep.subr.bf16.mxu0 %v12576_v37 }
 0x503   :  { %8597 = vmatprep.mubr.f32.mxu0 %v2822_v9 }
 0x504   :  { %8598 = vmatmul.mubr.f32.gmra.mrb[10].mxu0 %v2832_v40  ;;  %v12998_v40 = vld [vmem:[#allocation11 + $0x50] sm:$0xff] }
 0x505   :  { %10168 = vmatpush3.bf16.msra.mxu0 %v12576_v37  ;;  %8632 = vmatprep.mubr.f32.mxu0 %v12790_v56 }
 0x506   :  { %10170 = vmatprep.subr.bf16.mxu0 %v12596_v34 }
 0x509   :  { %10172 = vmatpush3.bf16.msra.mxu0 %v12596_v34 }
 0x50a   :  { %10174 = vmatprep.subr.bf16.mxu0 %v12601_v50 }
 0x50d   :  { %10176 = vmatpush3.bf16.msra.mxu0 %v12601_v50 }
 0x50e   :  { %10178 = vmatprep.subr.bf16.mxu0 %v12398_v57 }
 0x511   :  { %10180 = vmatpush3.bf16.msra.mxu0 %v12398_v57 }
 0x512   :  { %10182 = vmatprep.subr.bf16.mxu0 %v12412_v30 }
 0x515   :  { %10184 = vmatpush3.bf16.msra.mxu0 %v12412_v30 }
 0x516   :  { %10186 = vmatprep.subr.bf16.mxu0 %v12420_v4 }
 0x519   :  { %10188 = vmatpush3.bf16.msra.mxu0 %v12420_v4 }
 0x51a   :  { %10190 = vmatprep.subr.bf16.mxu0 %v12424_v17 }
 0x51c   :  { %8633 = vmatmul.mubr.f32.vlgmr.msra.gmra.mrb[6].mxu0 %v12785_v55 }
 0x51d   :  { %8635 = vmatprep.mubr.f32.mxu0 %v12811_v39  ;;  %10192 = vmatpush3.bf16.msra.mxu0 %v12424_v17 }
 0x51e   :  { %10194 = vmatprep.subr.bf16.mxu0 %v12615_v36 }
 0x520   :  { %8636 = vmatmul.mubr.f32.gmra.mrb[8].mxu0 %v12806_v49 }
 0x521   :  { %8638 = vmatprep.mubr.f32.mxu0 %v12836_v27  ;;  %10196 = vmatpush3.bf16.msra.mxu0 %v12615_v36 }
 0x522   :  { %10198 = vmatprep.subr.bf16.mxu0 %v12623_v21 }
 0x524   :  { %8639 = vmatmul.mubr.f32.gmra.mrb[10].mxu0 %v12833_v51 }
 0x525   :  { %10200 = vmatpush3.bf16.msra.mxu0 %v12623_v21  ;;  %8673 = vmatprep.mubr.f32.mxu0 %v12801_v19 }
 0x526   :  { %10202 = vmatprep.subr.bf16.mxu0 %v12631_v20 }
 0x529   :  { %10204 = vmatpush3.bf16.msra.mxu0 %v12631_v20 }
 0x52a   :  { %10206 = vmatprep.subr.bf16.mxu0 %v12639_v26 }
 0x52d   :  { %10208 = vmatpush3.bf16.msra.mxu0 %v12639_v26 }
 0x52e   :  { %10210 = vmatprep.subr.bf16.mxu0 %v12428_v18 }
 0x531   :  { %10212 = vmatpush3.bf16.msra.mxu0 %v12428_v18 }
 0x532   :  { %10214 = vmatprep.subr.bf16.mxu0 %v12432_v29 }
 0x535   :  { %10216 = vmatpush3.bf16.msra.mxu0 %v12432_v29  ;;  %v13017_v29 = vld [vmem:[#allocation11 + $0x78] sm:$0xff] }
 0x536   :  { %10218 = vmatprep.subr.bf16.mxu0 %v12436_v6  ;;  %v14059_v26 = vand.u32 4294901760, %v13017_v29 }
 0x539   :  { %10220 = vmatpush3.bf16.msra.mxu0 %v12436_v6 }
 0x53a   :  { %10222 = vmatprep.subr.bf16.mxu0 %v12163_v23 }
 0x53c   :  { %8674 = vmatmul.mubr.f32.vlgmr.msra.gmra.mrb[6].mxu0 %v12796_v35  ;;  %v3584_v35 = vld [vmem:[#allocation11 + $0x8] sm:$0xff] }
 0x53d   :  { %8676 = vmatprep.mubr.f32.mxu0 %v12826_v0  ;;  %10224 = vmatpush3.bf16.msra.mxu0 %v12163_v23  ;;  %v3586_v0 = vld [vmem:[#allocation11 + $0x18] sm:$0xff] }
 0x53e   :  { %10226 = vmatprep.subr.bf16.mxu0 %v12169_v54 }
 0x540   :  { %8677 = vmatmul.mubr.f32.gmra.mrb[8].mxu0 %v12821_v13  ;;  %v3585_v13 = vld [vmem:[#allocation11 + $0x10] sm:$0xff] }
 0x541   :  { %8679 = vmatprep.mubr.f32.mxu0 %v12846_v33  ;;  %10228 = vmatpush3.bf16.msra.mxu0 %v12169_v54  ;;  %v3590_v33 = vld [vmem:[#allocation11 + $0x38] sm:$0xff] }
 0x542   :  { %10230 = vmatprep.subr.bf16.mxu0 %v12184_v14 }
 0x544   :  { %8680 = vmatmul.mubr.f32.gmra.mrb[10].mxu0 %v12840_v10 }
 0x545   :  { %10232 = vmatpush3.bf16.msra.mxu0 %v12184_v14  ;;  %8714 = vmatprep.mubr.f32.mxu0 %v2780_v41 }
 0x546   :  { %10234 = vmatprep.subr.bf16.mxu0 %v12198_v53 }
 0x549   :  { %10236 = vmatpush3.bf16.msra.mxu0 %v12198_v53 }
 0x54a   :  { %10238 = vmatprep.subr.bf16.mxu0 %v12208_v31 }
 0x54d   :  { %10240 = vmatpush3.bf16.msra.mxu0 %v12208_v31 }
 0x54e   :  { %10242 = vmatprep.subr.bf16.mxu0 %v12340_v44 }
 0x551   :  { %10244 = vmatpush3.bf16.msra.mxu0 %v12340_v44 }
 0x552   :  { %10246 = vmatprep.subr.bf16.mxu0 %v12346_v46 }
 0x555   :  { %10248 = vmatpush3.bf16.msra.mxu0 %v12346_v46 }
 0x556   :  { %10250 = vmatprep.subr.bf16.mxu0 %v12364_v58 }
 0x559   :  { %10252 = vmatpush3.bf16.msra.mxu0 %v12364_v58 }
 0x55a   :  { %10254 = vmatprep.subr.bf16.mxu0 %v12676_v15 }
 0x55c   :  { %8715 = vmatmul.mubr.f32.vlgmr.msra.gmra.mrb[6].mxu0 %v2790_v60  ;;  %v3609_v60 = vand.u32 4294901760, %v3584_v35 }
 0x55d   :  { %8717 = vmatprep.mubr.f32.mxu0 %v2800_v52  ;;  %10256 = vmatpush3.bf16.msra.mxu0 %v12676_v15 }
 0x55e   :  { %10258 = vmatprep.subr.bf16.mxu0 %v12684_v61  ;;  %v13030_v36 = vsub.f32 %v3584_v35, %v3609_v60 }
 0x560   :  { %8718 = vmatmul.mubr.f32.gmra.mrb[8].mxu0 %v2810_v2  ;;  %v3612_v2 = vand.u32 4294901760, %v3585_v13  ;;  %v14080_v30 = vand.u32 4294901760, %v13030_v36 }
 0x561   :  { %8720 = vmatprep.mubr.f32.mxu0 %v2820_v3  ;;  %10260 = vmatpush3.bf16.msra.mxu0 %v12684_v61  ;;  %v12988_v3 = vld [vmem:[#allocation11 + $0x40] sm:$0xff]  ;;  %v13012_v61 = vld [vmem:[#allocation11 + $0x70] sm:$0xff] }
 0x562   :  { %10262 = vmatprep.subr.bf16.mxu0 %v12696_v32  ;;  %v3630_v28 = vand.u32 4294901760, %v12988_v3  ;;  %v14060_v18 = vand.u32 4294901760, %v13012_v61  ;;  %v3757_v35 = vsub.f32 %v13030_v36, %v14080_v30 }
 0x564   :  { %8721 = vmatmul.mubr.f32.gmra.mrb[10].mxu0 %v2830_v16  ;;  %v3627_v16 = vand.u32 4294901760, %v3590_v33  ;;  %v12996_v9 = vpack.c.bf16 %v3633_v25, %v3630_v28  ;;  %v13036_v17 = vpack.c.bf16 %v14059_v26, %v14060_v18  ;;  %v3758_v18 = vand.u32 4294901760, %v3757_v35 }
 0x565   :  { %10264 = vmatpush3.bf16.msra.mxu0 %v12696_v32  ;;  %8755 = vmatprep.mubr.f32.mxu0 %v12790_v56  ;;  %v13010_v32 = vld [vmem:[#allocation11 + $0x68] sm:$0xff] }
 0x566   :  { %10266 = vmatprep.subr.bf16.mxu0 %v12708_v38  ;;  %v12986_v12 = vpack.c.bf16 %v3627_v16, %v3624_v1  ;;  %v14061_v6 = vand.u32 4294901760, %v13010_v32 }
 0x569   :  { %10268 = vmatpush3.bf16.msra.mxu0 %v12708_v38  ;;  %v13008_v38 = vld [vmem:[#allocation11 + $0x60] sm:$0xff] }
 0x56a   :  { %10270 = vmatprep.subr.bf16.mxu0 %v12719_v62  ;;  %v14062_v15 = vand.u32 4294901760, %v13008_v38 }
 0x56c   :  { %v13026_v20 = vpack.c.bf16 %v14061_v6, %v14062_v15 }
 0x56d   :  { %10272 = vmatpush3.bf16.msra.mxu0 %v12719_v62 }
 0x56e   :  { %10274 = vmatprep.subr.bf16.mxu0 %v12727_v42 }
 0x571   :  { %10276 = vmatpush3.bf16.msra.mxu0 %v12727_v42 }
 0x572   :  { %10278 = vmatprep.subr.bf16.mxu0 %v12735_v7 }
 0x575   :  { %10280 = vmatpush3.bf16.msra.mxu0 %v12735_v7  ;;  %v3636_v7 = vand.u32 4294901760, %v12998_v40 }
 0x576   :  { %10282 = vmatprep.subr.bf16.mxu0 %v12743_v22 }
 0x579   :  { %10284 = vmatpush3.bf16.msra.mxu0 %v12743_v22  ;;  %v13000_v22 = vld [vmem:[#allocation11 + $0x58] sm:$0xff] }
 0x57a   :  { %10286 = vmatprep.subr.bf16.mxu0 %v12163_v23  ;;  %v3639_v42 = vand.u32 4294901760, %v13000_v22 }
 0x57c   :  { %8756 = vmatmul.mubr.f32.vlgmr.msra.gmra.mrb[6].mxu0 %v12785_v55  ;;  %v13006_v62 = vpack.c.bf16 %v3639_v42, %v3636_v7 }
 0x57d   :  { %8758 = vmatprep.mubr.f32.mxu0 %v12811_v39  ;;  %10288 = vmatpush3.bf16.msra.mxu0 %v12163_v23  ;;  %v1826_v23 = vld [vmem:[#allocation10 + $0x18] sm:$0xff] }
 0x57e   :  { %10290 = vmatprep.subr.bf16.mxu0 %v12169_v54 }
 0x580   :  { %8759 = vmatmul.mubr.f32.gmra.mrb[8].mxu0 %v12806_v49 }
 0x581   :  { %8761 = vmatprep.mubr.f32.mxu0 %v12836_v27  ;;  %10292 = vmatpush3.bf16.msra.mxu0 %v12169_v54 }
 0x582   :  { %10294 = vmatprep.subr.bf16.mxu0 %v12184_v14 }
 0x584   :  { %8762 = vmatmul.mubr.f32.gmra.mrb[10].mxu0 %v12833_v51 }
 0x585   :  { %10296 = vmatpush3.bf16.msra.mxu0 %v12184_v14  ;;  %8796 = vmatprep.mubr.f32.mxu0 %v12790_v56  ;;  %v3583_v56 = vld [vmem:[#allocation11] sm:$0xff]  ;;  %v1823_v14 = vld [vmem:[#allocation10] sm:$0xff] }
 0x586   :  { %10298 = vmatprep.subr.bf16.mxu0 %v12198_v53  ;;  %v3606_v19 = vand.u32 4294901760, %v3583_v56 }
 0x588   :  { %v12974_v41 = vpack.c.bf16 %v3609_v60, %v3606_v19  ;;  %v13028_v21 = vsub.f32 %v3583_v56, %v3606_v19  ;;  %v13049_v19 = vsub.f32 %v3585_v13, %v3612_v2 }
 0x589   :  { %10300 = vmatpush3.bf16.msra.mxu0 %v12198_v53 }
 0x58a   :  { %10302 = vmatprep.subr.bf16.mxu0 %v12208_v31  ;;  %10318 = vmatprep.subr.bf16.mxu1 %v12974_v41  ;;  %v14065_v4 = vand.u32 4294901760, %v13028_v21  ;;  %v14066_v6 = vand.u32 4294901760, %v13049_v19 }
 0x58b   :  { %10320 = vmatpush3.bf16.msra.mxu1 %v12974_v41 }
 0x58c   :  { %v3750_v56 = vsub.f32 %v13028_v21, %v14065_v4  ;;  %v3764_v4 = vsub.f32 %v13049_v19, %v14066_v6 }
 0x58d   :  { %10304 = vmatpush3.bf16.msra.mxu0 %v12208_v31  ;;  %v1818_v31 = vld [vmem:[#allocation8 + $0x8] sm:$0xff] }
 0x58e   :  { %10306 = vmatprep.subr.bf16.mxu0 %v12340_v44  ;;  %v3751_v26 = vand.u32 4294901760, %v3750_v56 }
 0x590   :  { %v13056_v57 = vpack.c.bf16 %v3758_v18, %v3751_v26 }
 0x591   :  { %10308 = vmatpush3.bf16.msra.mxu0 %v12340_v44 }
 0x592   :  { %10310 = vmatprep.subr.bf16.mxu0 %v12346_v46 }
 0x595   :  { %10312 = vmatpush3.bf16.msra.mxu0 %v12346_v46 }
 0x596   :  { %10314 = vmatprep.subr.bf16.mxu0 %v12364_v58 }
 0x599   :  { %10316 = vmatpush3.bf16.msra.mxu0 %v12364_v58 }
 0x59c   :  { %8797 = vmatmul.mubr.f32.vlgmr.msra.gmra.mrb[6].mxu0 %v12785_v55  ;;  %v3615_v55 = vand.u32 4294901760, %v3586_v0 }
 0x59d   :  { %8799 = vmatprep.mubr.f32.mxu0 %v12811_v39 }
 0x59e   :  { %v12978_v39 = vpack.c.bf16 %v3615_v55, %v3612_v2  ;;  %v13051_v60 = vsub.f32 %v3586_v0, %v3615_v55  ;;  %v3765_v55 = vand.u32 4294901760, %v3764_v4 }
 0x5a0   :  { %8800 = vmatmul.mubr.f32.gmra.mrb[8].mxu0 %v12806_v49  ;;  %v3587_v49 = vld [vmem:[#allocation11 + $0x20] sm:$0xff]  ;;  %10322 = vmatprep.subr.bf16.mxu1 %v12978_v39  ;;  %v14067_v15 = vand.u32 4294901760, %v13051_v60 }
 0x5a1   :  { %8802 = vmatprep.mubr.f32.mxu0 %v12836_v27  ;;  %v3588_v27 = vld [vmem:[#allocation11 + $0x28] sm:$0xff]  ;;  %10324 = vmatpush3.bf16.msra.mxu1 %v12978_v39 }
 0x5a2   :  { %v3621_v52 = vand.u32 4294901760, %v3588_v27  ;;  %v3771_v13 = vsub.f32 %v13051_v60, %v14067_v15 }
 0x5a4   :  { %8803 = vmatmul.mubr.f32.gmra.mrb[10].mxu0 %v12833_v51  ;;  %v3618_v51 = vand.u32 4294901760, %v3587_v49  ;;  %v13066_v2 = vsub.f32 %v3588_v27, %v3621_v52  ;;  %v3772_v56 = vand.u32 4294901760, %v3771_v13  ;;  %v13079_v27 = vsub.f32 %v3589_v24, %v3624_v1 }
 0x5a5   :  { %v13094_v24 = vsub.f32 %v12990_v8, %v3633_v25  ;;  %v13108_v8 = vsub.f32 %v12998_v40, %v3636_v7  ;;  %v14203_v40 = vand.u32 4294901760, %v13010_v32 }
 0x5a6   :  { %v12982_v10 = vpack.c.bf16 %v3621_v52, %v3618_v51  ;;  %v13064_v0 = vsub.f32 %v3587_v49, %v3618_v51  ;;  %v14079_v18 = vand.u32 4294901760, %v13066_v2  ;;  %v13071_v26 = vpack.c.bf16 %v3772_v56, %v3765_v55 }
 0x5a7   :  { %v13081_v51 = vsub.f32 %v3590_v33, %v3627_v16  ;;  %v14070_v13 = vand.u32 4294901760, %v13079_v27  ;;  %v14071_v16 = vand.u32 4294901760, %v13094_v24 }
 0x5a8   :  { %10326 = vmatprep.subr.bf16.mxu1 %v12982_v10  ;;  %v14068_v35 = vand.u32 4294901760, %v13064_v0  ;;  %v3785_v49 = vsub.f32 %v13066_v2, %v14079_v18 }
 0x5a9   :  { %10328 = vmatpush3.bf16.msra.mxu1 %v12982_v10  ;;  %v14069_v15 = vand.u32 4294901760, %v13081_v51  ;;  %v3792_v56 = vsub.f32 %v13079_v27, %v14070_v13 }
 0x5aa   :  { %10330 = vmatprep.subr.bf16.mxu1 %v12986_v12  ;;  %v3778_v6 = vsub.f32 %v13064_v0, %v14068_v35  ;;  %v3786_v52 = vand.u32 4294901760, %v3785_v49  ;;  %v13091_v35 = vsub.f32 %v12988_v3, %v3630_v28  ;;  %v3813_v3 = vsub.f32 %v13094_v24, %v14071_v16 }
 0x5ab   :  { %v3793_v33 = vand.u32 4294901760, %v3792_v56  ;;  %v13111_v28 = vsub.f32 %v13000_v22, %v3639_v42  ;;  %v14202_v42 = vand.u32 4294901760, %v13008_v38 }
 0x5ac   :  { %v3779_v4 = vand.u32 4294901760, %v3778_v6  ;;  %v3799_v6 = vsub.f32 %v13081_v51, %v14069_v15  ;;  %v14075_v1 = vand.u32 4294901760, %v13091_v35  ;;  %v3814_v56 = vand.u32 4294901760, %v3813_v3 }
 0x5ad   :  { %10332 = vmatpush3.bf16.msra.mxu1 %v12986_v12  ;;  %v14072_v15 = vand.u32 4294901760, %v13111_v28  ;;  %v13128_v22 = vsub.f32 %v13008_v38, %v14202_v42  ;;  %v14204_v38 = vand.u32 4294901760, %v13012_v61 }
 0x5ae   :  { %10334 = vmatprep.subr.bf16.mxu1 %v12996_v9  ;;  %v13085_v55 = vpack.c.bf16 %v3786_v52, %v3779_v4  ;;  %v3800_v49 = vand.u32 4294901760, %v3799_v6  ;;  %v3806_v4 = vsub.f32 %v13091_v35, %v14075_v1  ;;  %v14074_v6 = vand.u32 4294901760, %v13108_v8 }
 0x5af   :  { %v3827_v7 = vsub.f32 %v13111_v28, %v14072_v15  ;;  %v14073_v3 = vand.u32 4294901760, %v13128_v22  ;;  %v13145_v42 = vsub.f32 %v13012_v61, %v14204_v38 }
 0x5b0   :  { %v13113_v25 = vpack.c.bf16 %v3800_v49, %v3793_v33  ;;  %v3807_v52 = vand.u32 4294901760, %v3806_v4  ;;  %v3820_v16 = vsub.f32 %v13108_v8, %v14074_v6  ;;  %v13133_v33 = vsub.f32 %v13010_v32, %v14203_v40 }
 0x5b1   :  { %10336 = vmatpush3.bf16.msra.mxu1 %v12996_v9  ;;  %v3828_v4 = vand.u32 4294901760, %v3827_v7  ;;  %v3834_v15 = vsub.f32 %v13128_v22, %v14073_v3  ;;  %14205 = vst [vmem:[#allocation43_spill] sm:$0xff] %v13145_v42  ;;  %v14206_v32 = vand.u32 4294901760, %v13017_v29 }
 0x5b2   :  { %10338 = vmatprep.subr.bf16.mxu1 %v13006_v62  ;;  %v13117_v13 = vpack.c.bf16 %v3814_v56, %v3807_v52  ;;  %v3821_v49 = vand.u32 4294901760, %v3820_v16  ;;  %v14078_v52 = vand.u32 4294901760, %v13133_v33 }
 0x5b3   :  { %v13150_v16 = vsub.f32 %v13017_v29, %v14206_v32  ;;  %v3835_v40 = vand.u32 4294901760, %v3834_v15  ;;  %v13169_v15 = vpack.c.bf16 %v13030_v36, %v13028_v21 }
 0x5b4   :  { %v13137_v56 = vpack.c.bf16 %v3828_v4, %v3821_v49  ;;  %v3841_v7 = vsub.f32 %v13133_v33, %v14078_v52  ;;  %v14076_v49 = vand.u32 4294901760, %v13145_v42 }
 0x5b5   :  { %10340 = vmatpush3.bf16.msra.mxu1 %v13006_v62  ;;  %14207 = vst [vmem:[#allocation45_spill] sm:$0xff] %v13150_v16  ;;  %v14077_v4 = vand.u32 4294901760, %v13150_v16 }
 0x5b6   :  { %10342 = vmatprep.subr.bf16.mxu1 %v13026_v20  ;;  %v3842_v3 = vand.u32 4294901760, %v3841_v7  ;;  %v3848_v61 = vsub.f32 %v13145_v42, %v14076_v49  ;;  %v13173_v7 = vpack.c.bf16 %v13051_v60, %v13049_v19  ;;  %v13177_v49 = vpack.c.bf16 %v13066_v2, %v13064_v0 }
 0x5b7   :  { %v3855_v38 = vsub.f32 %v13150_v16, %v14077_v4 }
 0x5b8   :  { %v13163_v29 = vpack.c.bf16 %v3842_v3, %v3835_v40  ;;  %v3849_v32 = vand.u32 4294901760, %v3848_v61  ;;  %v13181_v3 = vpack.c.bf16 %v13081_v51, %v13079_v27  ;;  %v13189_v40 = vpack.c.bf16 %v13111_v28, %v13108_v8 }
 0x5b9   :  { %10344 = vmatpush3.bf16.msra.mxu1 %v13026_v20  ;;  %v3856_v6 = vand.u32 4294901760, %v3855_v38  ;;  %v13193_v61 = vpack.c.bf16 %v13133_v33, %v13128_v22  ;;  %v13197_v38 = vpack.c.bf16 %v13150_v16, %v13145_v42 }
 0x5ba   :  { %10346 = vmatprep.subr.bf16.mxu1 %v13036_v17 }
 0x5bb   :  { %v13165_v1 = vpack.c.bf16 %v3856_v6, %v3849_v32  ;;  %v13185_v6 = vpack.c.bf16 %v13094_v24, %v13091_v35 }
 0x5bd   :  { %10348 = vmatpush3.bf16.msra.mxu1 %v13036_v17 }
 0x5be   :  { %10350 = vmatprep.subr.bf16.mxu1 %v13056_v57 }
 0x66f   :  { %v8798_v32 = vpop.f32.mrb[6].mxu0 }
 0x670   :  { %v10965_v4 = vadd.f32 1e-05, %v8798_v32  ;;  %v3519_v52 = vpop.f32.mrb[7].mxu0 }
 0x671   :  { %v10966_v18 = vadd.f32 1e-05, %v3519_v52  ;;  %v1817_v52 = vld [vmem:[#allocation8] sm:$0xff] }
 0x672   :  { %11230 = vrsqrt.f32 %v10965_v4  ;;  %v1824_v4 = vld [vmem:[#allocation10 + $0x8] sm:$0xff] }
 0x673   :  { %11232 = vrsqrt.f32 %v10966_v18  ;;  %v8801_v30 = vpop.f32.mrb[8].mxu0 }
 0x674   :  { %v10967_v50 = vadd.f32 1e-05, %v8801_v30  ;;  %v3531_v34 = vpop.f32.mrb[9].mxu0 }
 0x675   :  { %v10968_v37 = vadd.f32 1e-05, %v3531_v34 }
 0x676   :  { %11234 = vrsqrt.f32 %v10967_v50 }
 0x677   :  { %11236 = vrsqrt.f32 %v10968_v37  ;;  %v8804_v43 = vpop.f32.mrb[10].mxu0  ;;  %v1820_v37 = vld [vmem:[#allocation8 + $0x18] sm:$0xff] }
 0x678   :  { %v10969_v5 = vadd.f32 1e-05, %v8804_v43  ;;  %v3543_v58 = vpop.f32.mrb[11].mxu0 }
 0x679   :  { %v10970_v46 = vadd.f32 1e-05, %v3543_v58 }
 0x67a   :  { %11238 = vrsqrt.f32 %v10969_v5  ;;  %v1819_v5 = vld [vmem:[#allocation8 + $0x10] sm:$0xff] }
 0x67b   :  { %11240 = vrsqrt.f32 %v10970_v46 }
 0x67c   :  { %v11231_v44 = vpop.eup %11230 }
 0x67d   :  { %v11233_v53 = vpop.eup %11232  ;;  %v3560_v32 = vmul.f32 %v11231_v44, %v12776_v63  ;;  %v1825_v63 = vld [vmem:[#allocation10 + $0x10] sm:$0xff] }
 0x67e   :  { %v3559_v18 = vmul.f32 %v11233_v53, %v12779_v47 }
 0x67f   :  { %v3566_v30 = vmul.f32 %v3560_v32, %v1818_v31  ;;  %v1822_v31 = vld [vmem:[#allocation8 + $0x28] sm:$0xff] }
 0x680   :  { %v11235_v34 = vpop.eup %11234  ;;  %v3565_v50 = vmul.f32 %v3559_v18, %v1817_v52  ;;  %v1821_v18 = vld [vmem:[#allocation8 + $0x20] sm:$0xff] }
 0x681   :  { %v11237_v54 = vpop.eup %11236  ;;  %v3572_v43 = vadd.f32 %v3566_v30, %v1824_v4  ;;  %v3562_v58 = vmul.f32 %v11235_v34, %v12788_v48  ;;  %v1828_v30 = vld [vmem:[#allocation10 + $0x28] sm:$0xff]  ;;  %v1827_v34 = vld [vmem:[#allocation10 + $0x20] sm:$0xff] }
 0x682   :  { %v3571_v46 = vadd.f32 %v3565_v50, %v1823_v14  ;;  %v3561_v16 = vmul.f32 %v11237_v54, %v12793_v45 }
 0x683   :  { %11242 = vtanh.f32 %v3572_v43  ;;  %v3568_v44 = vmul.f32 %v3562_v58, %v1820_v37 }
 0x684   :  { %v11239_v42 = vpop.eup %11238  ;;  %11244 = vtanh.f32 %v3571_v46  ;;  %v3567_v53 = vmul.f32 %v3561_v16, %v1819_v5 }
 0x685   :  { %v11241_v47 = vpop.eup %11240  ;;  %v3574_v32 = vadd.f32 %v3568_v44, %v1826_v23  ;;  %v3564_v52 = vmul.f32 %v11239_v42, %v12809_v59 }
 0x686   :  { %v3573_v4 = vadd.f32 %v3567_v53, %v1825_v63  ;;  %v3563_v48 = vmul.f32 %v11241_v47, %v12814_v11 }
 0x687   :  { %11246 = vtanh.f32 %v3574_v32  ;;  %v3570_v14 = vmul.f32 %v3564_v52, %v1822_v31 }
 0x688   :  { %11248 = vtanh.f32 %v3573_v4  ;;  %v3569_v54 = vmul.f32 %v3563_v48, %v1821_v18 }
 0x689   :  { %v3576_v45 = vadd.f32 %v3570_v14, %v1828_v30 }
 0x68a   :  { %v3575_v50 = vadd.f32 %v3569_v54, %v1827_v34 }
 0x68b   :  { %11250 = vtanh.f32 %v3576_v45 }
 0x68c   :  { %11252 = vtanh.f32 %v3575_v50 }
 0x68d   :  { %v11243_v16 = vpop.eup %11242 }
 0x68e   :  { %v11245_v37 = vpop.eup %11244  ;;  %v13205_v43 = vand.u32 4294901760, %v11243_v16 }
 0x68f   :  { %v13207_v23 = vand.u32 4294901760, %v11245_v37 }
 0x690   :  { %v13210_v59 = vsub.f32 %v11243_v16, %v13205_v43 }
 0x691   :  { %v11247_v42 = vpop.eup %11246  ;;  %v13213_v11 = vsub.f32 %v11245_v37, %v13207_v23 }
 0x692   :  { %v11249_v58 = vpop.eup %11248  ;;  %v3698_v5 = vand.u32 4294901760, %v13210_v59  ;;  %v13216_v46 = vand.u32 4294901760, %v11247_v42 }
 0x693   :  { %v3688_v44 = vand.u32 4294901760, %v13213_v11  ;;  %v13219_v63 = vand.u32 4294901760, %v11249_v58 }
 0x694   :  { %v3699_v53 = vsub.f32 %v13210_v59, %v3698_v5  ;;  %v13225_v31 = vsub.f32 %v11247_v42, %v13216_v46 }
 0x695   :  { %v11251_v47 = vpop.eup %11250  ;;  %v3689_v32 = vsub.f32 %v13213_v11, %v3688_v44  ;;  %v13231_v52 = vsub.f32 %v11249_v58, %v13219_v63 }
 0x696   :  { %v11253_v18 = vpop.eup %11252  ;;  %v3718_v4 = vand.u32 4294901760, %v13225_v31  ;;  %v13234_v30 = vand.u32 4294901760, %v11251_v47  ;;  %v3700_v54 = vand.u32 4294901760, %v3699_v53 }
 0x697   :  { %v3690_v48 = vand.u32 4294901760, %v3689_v32  ;;  %v3708_v14 = vand.u32 4294901760, %v13231_v52  ;;  %v13237_v34 = vand.u32 4294901760, %v11253_v18 }
 0x698   :  { %v3719_v45 = vsub.f32 %v13225_v31, %v3718_v4  ;;  %v13243_v50 = vsub.f32 %v11251_v47, %v13234_v30 }
 0x699   :  { %8837 = vmatprep.mubr.f32.mxu1 %v3690_v48  ;;  %v3709_v16 = vsub.f32 %v13231_v52, %v3708_v14  ;;  %v13249_v37 = vsub.f32 %v11253_v18, %v13237_v34 }
 0x69a   :  { %8838 = vmatmul.mubr.f32.vlgmr.msra.gmra.mrb[12].mxu1 %v3700_v54  ;;  %v3738_v42 = vand.u32 4294901760, %v13243_v50  ;;  %v3720_v47 = vand.u32 4294901760, %v3719_v45  ;;  %v3603_v54 = vld [vmem:[#allocation13 + $0x20] sm:$0xff] }
 0x69b   :  { %10352 = vmatpush3.bf16.msra.mxu1 %v13056_v57  ;;  %v3710_v58 = vand.u32 4294901760, %v3709_v16  ;;  %v3728_v53 = vand.u32 4294901760, %v13249_v37  ;;  %v3604_v16 = vld [vmem:[#allocation13 + $0x28] sm:$0xff] }
 0x69c   :  { %10354 = vmatprep.subr.bf16.mxu1 %v13071_v26  ;;  %v3739_v32 = vsub.f32 %v13243_v50, %v3738_v42 }
 0x69d   :  { %8840 = vmatprep.mubr.f32.mxu1 %v3710_v58  ;;  %v3729_v18 = vsub.f32 %v13249_v37, %v3728_v53 }
 0x69e   :  { %8841 = vmatmul.mubr.f32.gmra.mrb[14].mxu1 %v3720_v47  ;;  %v3740_v57 = vand.u32 4294901760, %v3739_v32 }
 0x69f   :  { %10356 = vmatpush3.bf16.msra.mxu1 %v13071_v26  ;;  %v3730_v48 = vand.u32 4294901760, %v3729_v18  ;;  %v14208_v26 = vand.u32 4294901760, %v13028_v21  ;;  %v14212_v21 = vand.u32 4294901760, %v13064_v0  ;;  %v14216_v0 = vand.u32 4294901760, %v13091_v35  ;;  %v14222_v35 = vld [vmem:[#allocation43_spill] sm:$0xff] }
 0x6a0   :  { %10358 = vmatprep.subr.bf16.mxu1 %v13085_v55 }
 0x6a1   :  { %8843 = vmatprep.mubr.f32.mxu1 %v3730_v48  ;;  %v4477_v48 = vsel %vm1072_vm0, %v3604_v16, 0 }
 0x6a2   :  { %8844 = vmatmul.mubr.f32.gmra.mrb[16].mxu1 %v3740_v57 }
 0x6a3   :  { %10360 = vmatpush3.bf16.msra.mxu1 %v13085_v55  ;;  %8878 = vmatprep.mubr.f32.mxu1 %v13207_v23 }
 0x6a4   :  { %10362 = vmatprep.subr.bf16.mxu1 %v13113_v25 }
 0x6a7   :  { %10364 = vmatpush3.bf16.msra.mxu1 %v13113_v25  ;;  %v14211_v25 = vand.u32 4294901760, %v13051_v60  ;;  %v14215_v60 = vand.u32 4294901760, %v13081_v51 }
 0x6a8   :  { %10366 = vmatprep.subr.bf16.mxu1 %v13117_v13 }
 0x6ab   :  { %10368 = vmatpush3.bf16.msra.mxu1 %v13117_v13  ;;  %v14209_v13 = vand.u32 4294901760, %v13030_v36  ;;  %v14213_v36 = vand.u32 4294901760, %v13066_v2  ;;  %v14217_v2 = vand.u32 4294901760, %v13094_v24  ;;  %v14224_v24 = vld [vmem:[#allocation45_spill] sm:$0xff] }
 0x6ac   :  { %10370 = vmatprep.subr.bf16.mxu1 %v13137_v56 }
 0x6ad   :  { %v10445_v55 = vpack.c.bf16 %v14209_v13, %v14208_v26 }
 0x6af   :  { %10372 = vmatpush3.bf16.msra.mxu1 %v13137_v56 }
 0x6b0   :  { %10374 = vmatprep.subr.bf16.mxu1 %v13163_v29 }
 0x6b3   :  { %10376 = vmatpush3.bf16.msra.mxu1 %v13163_v29 }
 0x6b4   :  { %10378 = vmatprep.subr.bf16.mxu1 %v13165_v1 }
 0x6b7   :  { %10380 = vmatpush3.bf16.msra.mxu1 %v13165_v1  ;;  %v14210_v1 = vand.u32 4294901760, %v13049_v19  ;;  %v14214_v19 = vand.u32 4294901760, %v13079_v27  ;;  %v14219_v27 = vand.u32 4294901760, %v13111_v28  ;;  %v3599_v28 = vld [vmem:[#allocation13] sm:$0xff] }
 0x6b8   :  { %10382 = vmatprep.subr.bf16.mxu1 %v13169_v15 }
 0x6b9   :  { %v10449_v56 = vpack.c.bf16 %v14211_v25, %v14210_v1  ;;  %v10457_v29 = vpack.c.bf16 %v14215_v60, %v14214_v19  ;;  %v13448_v19 = vand.u32 4294901760, %v4477_v48 }
 0x6ba   :  { %8879 = vmatmul.mubr.f32.vlgmr.msra.gmra.mrb[12].mxu1 %v13205_v43 }
 0x6bb   :  { %8881 = vmatprep.mubr.f32.mxu1 %v13219_v63  ;;  %10384 = vmatpush3.bf16.msra.mxu1 %v13169_v15  ;;  %v10461_v15 = vpack.c.bf16 %v14217_v2, %v14216_v0 }
 0x6bc   :  { %10386 = vmatprep.subr.bf16.mxu1 %v13173_v7 }
 0x6be   :  { %8882 = vmatmul.mubr.f32.gmra.mrb[14].mxu1 %v13216_v46 }
 0x6bf   :  { %8884 = vmatprep.mubr.f32.mxu1 %v13237_v34  ;;  %10388 = vmatpush3.bf16.msra.mxu1 %v13173_v7  ;;  %v14218_v7 = vand.u32 4294901760, %v13108_v8  ;;  %v14234_v8 = vld [vmem:[#allocation35_spill] sm:$0xff] }
 0x6c0   :  { %10390 = vmatprep.subr.bf16.mxu1 %v13177_v49 }
 0x6c1   :  { %v10465_v51 = vpack.c.bf16 %v14219_v27, %v14218_v7 }
 0x6c2   :  { %8885 = vmatmul.mubr.f32.gmra.mrb[16].mxu1 %v13234_v30 }
 0x6c3   :  { %10392 = vmatpush3.bf16.msra.mxu1 %v13177_v49  ;;  %8919 = vmatprep.mubr.f32.mxu1 %v13213_v11  ;;  %v10453_v49 = vpack.c.bf16 %v14213_v36, %v14212_v21 }
 0x6c4   :  { %10394 = vmatprep.subr.bf16.mxu1 %v13181_v3 }
 0x6c7   :  { %10396 = vmatpush3.bf16.msra.mxu1 %v13181_v3  ;;  %v14220_v3 = vand.u32 4294901760, %v13128_v22  ;;  %v4462_v22 = vsel %vm1072_vm0, %v3599_v28, 0 }
 0x6c8   :  { %10398 = vmatprep.subr.bf16.mxu1 %v13185_v6 }
 0x6cb   :  { %10400 = vmatpush3.bf16.msra.mxu1 %v13185_v6  ;;  %v14221_v6 = vand.u32 4294901760, %v13133_v33  ;;  %v13408_v33 = vand.u32 4294901760, %v4462_v22 }
 0x6cc   :  { %10402 = vmatprep.subr.bf16.mxu1 %v13189_v40 }
 0x6cf   :  { %10404 = vmatpush3.bf16.msra.mxu1 %v13189_v40  ;;  %v10469_v40 = vpack.c.bf16 %v14221_v6, %v14220_v3 }
 0x6d0   :  { %10406 = vmatprep.subr.bf16.mxu1 %v13193_v61 }
 0x6d3   :  { %10408 = vmatpush3.bf16.msra.mxu1 %v13193_v61  ;;  %v14223_v61 = vand.u32 4294901760, %v14222_v35 }
 0x6d4   :  { %10410 = vmatprep.subr.bf16.mxu1 %v13197_v38 }
 0x6d7   :  { %10412 = vmatpush3.bf16.msra.mxu1 %v13197_v38  ;;  %v14225_v38 = vand.u32 4294901760, %v14224_v24 }
 0x6d8   :  { %10414 = vmatprep.subr.bf16.mxu1 %v12974_v41 }
 0x6da   :  { %8920 = vmatmul.mubr.f32.vlgmr.msra.gmra.mrb[12].mxu1 %v13210_v59  ;;  %v10473_v59 = vpack.c.bf16 %v14225_v38, %v14223_v61 }
 0x6db   :  { %8922 = vmatprep.mubr.f32.mxu1 %v13231_v52  ;;  %10416 = vmatpush3.bf16.msra.mxu1 %v12974_v41  ;;  %v3602_v52 = vld [vmem:[#allocation13 + $0x18] sm:$0xff] }
 0x6dc   :  { %10418 = vmatprep.subr.bf16.mxu1 %v12978_v39 }
 0x6de   :  { %8923 = vmatmul.mubr.f32.gmra.mrb[14].mxu1 %v13225_v31  ;;  %v3601_v31 = vld [vmem:[#allocation13 + $0x10] sm:$0xff] }
 0x6df   :  { %8925 = vmatprep.mubr.f32.mxu1 %v13249_v37  ;;  %10420 = vmatpush3.bf16.msra.mxu1 %v12978_v39 }
 0x6e0   :  { %10422 = vmatprep.subr.bf16.mxu1 %v12982_v10 }
 0x6e2   :  { %8926 = vmatmul.mubr.f32.gmra.mrb[16].mxu1 %v13243_v50 }
 0x6e3   :  { %10424 = vmatpush3.bf16.msra.mxu1 %v12982_v10  ;;  %8960 = vmatprep.mubr.f32.mxu1 %v3688_v44 }
 0x6e4   :  { %10426 = vmatprep.subr.bf16.mxu1 %v12986_v12 }
 0x6e7   :  { %10428 = vmatpush3.bf16.msra.mxu1 %v12986_v12 }
 0x6e8   :  { %10430 = vmatprep.subr.bf16.mxu1 %v12996_v9 }
 0x6eb   :  { %10432 = vmatpush3.bf16.msra.mxu1 %v12996_v9 }
 0x6ec   :  { %10434 = vmatprep.subr.bf16.mxu1 %v13006_v62 }
 0x6ef   :  { %10436 = vmatpush3.bf16.msra.mxu1 %v13006_v62 }
 0x6f0   :  { %10438 = vmatprep.subr.bf16.mxu1 %v13026_v20 }
 0x6f3   :  { %10440 = vmatpush3.bf16.msra.mxu1 %v13026_v20 }
 0x6f4   :  { %10442 = vmatprep.subr.bf16.mxu1 %v13036_v17 }
 0x6f7   :  { %10444 = vmatpush3.bf16.msra.mxu1 %v13036_v17 }
 0x6f8   :  { %10446 = vmatprep.subr.bf16.mxu1 %v10445_v55 }
 0x6fa   :  { %8961 = vmatmul.mubr.f32.vlgmr.msra.gmra.mrb[12].mxu1 %v3698_v5 }
 0x6fb   :  { %8963 = vmatprep.mubr.f32.mxu1 %v3708_v14  ;;  %10448 = vmatpush3.bf16.msra.mxu1 %v10445_v55  ;;  %v4471_v14 = vsel %vm1072_vm0, %v3602_v52, 0 }
 0x6fc   :  { %10450 = vmatprep.subr.bf16.mxu1 %v10449_v56  ;;  %v13428_v50 = vand.u32 4294901760, %v4471_v14 }
 0x6fe   :  { %8964 = vmatmul.mubr.f32.gmra.mrb[14].mxu1 %v3718_v4  ;;  %v13441_v26 = vsub.f32 %v4471_v14, %v13428_v50 }
 0x6ff   :  { %8966 = vmatprep.mubr.f32.mxu1 %v3728_v53  ;;  %10452 = vmatpush3.bf16.msra.mxu1 %v10449_v56 }
 0x700   :  { %10454 = vmatprep.subr.bf16.mxu1 %v10453_v49  ;;  %v4582_v27 = vand.u32 4294901760, %v13441_v26 }
 0x702   :  { %8967 = vmatmul.mubr.f32.gmra.mrb[16].mxu1 %v3738_v42  ;;  %v4474_v42 = vsel %vm1072_vm0, %v3603_v54, 0 }
 0x703   :  { %10456 = vmatpush3.bf16.msra.mxu1 %v10453_v49  ;;  %9001 = vmatprep.mubr.f32.mxu1 %v13207_v23  ;;  %v13443_v13 = vand.u32 4294901760, %v4474_v42 }
 0x704   :  { %10458 = vmatprep.subr.bf16.mxu1 %v10457_v29 }
 0x707   :  { %10460 = vmatpush3.bf16.msra.mxu1 %v10457_v29 }
 0x708   :  { %10462 = vmatprep.subr.bf16.mxu1 %v10461_v15 }
 0x70b   :  { %10464 = vmatpush3.bf16.msra.mxu1 %v10461_v15 }
 0x70c   :  { %10466 = vmatprep.subr.bf16.mxu1 %v10465_v51 }
 0x70f   :  { %10468 = vmatpush3.bf16.msra.mxu1 %v10465_v51  ;;  %v13457_v51 = vsub.f32 %v4474_v42, %v13443_v13 }
 0x710   :  { %10470 = vmatprep.subr.bf16.mxu1 %v10469_v40 }
 0x711   :  { %v4592_v14 = vand.u32 4294901760, %v13457_v51 }
 0x713   :  { %10472 = vmatpush3.bf16.msra.mxu1 %v10469_v40 }
 0x714   :  { %10474 = vmatprep.subr.bf16.mxu1 %v10473_v59 }
 0x717   :  { %10476 = vmatpush3.bf16.msra.mxu1 %v10473_v59 }
 0x718   :  { %10478 = vmatprep.subr.bf16.mxu1 %v12974_v41 }
 0x71a   :  { %9002 = vmatmul.mubr.f32.vlgmr.msra.gmra.mrb[12].mxu1 %v13205_v43 }
 0x71b   :  { %9004 = vmatprep.mubr.f32.mxu1 %v13219_v63  ;;  %10480 = vmatpush3.bf16.msra.mxu1 %v12974_v41  ;;  %v14226_v41 = vld [vmem:[#allocation27_spill] sm:$0xff] }
 0x71c   :  { %10482 = vmatprep.subr.bf16.mxu1 %v12978_v39 }
 0x71e   :  { %9005 = vmatmul.mubr.f32.gmra.mrb[14].mxu1 %v13216_v46 }
 0x71f   :  { %9007 = vmatprep.mubr.f32.mxu1 %v13237_v34  ;;  %10484 = vmatpush3.bf16.msra.mxu1 %v12978_v39  ;;  %v14227_v39 = vld [vmem:[#allocation28_spill] sm:$0xff] }
 0x720   :  { %10486 = vmatprep.subr.bf16.mxu1 %v12982_v10 }
 0x722   :  { %9008 = vmatmul.mubr.f32.gmra.mrb[16].mxu1 %v13234_v30 }
 0x723   :  { %10488 = vmatpush3.bf16.msra.mxu1 %v12982_v10  ;;  %9042 = vmatprep.mubr.f32.mxu1 %v13207_v23  ;;  %v14231_v10 = vld [vmem:[#allocation32_spill] sm:$0xff] }
 0x724   :  { %10490 = vmatprep.subr.bf16.mxu1 %v12986_v12 }
 0x727   :  { %10492 = vmatpush3.bf16.msra.mxu1 %v12986_v12  ;;  %v14232_v12 = vld [vmem:[#allocation33_spill] sm:$0xff] }
 0x728   :  { %10494 = vmatprep.subr.bf16.mxu1 %v12996_v9 }
 0x72b   :  { %10496 = vmatpush3.bf16.msra.mxu1 %v12996_v9  ;;  %v14233_v9 = vld [vmem:[#allocation34_spill] sm:$0xff] }
 0x72c   :  { %10498 = vmatprep.subr.bf16.mxu1 %v13006_v62 }
 0x72f   :  { %10500 = vmatpush3.bf16.msra.mxu1 %v13006_v62  ;;  %v14230_v62 = vld [vmem:[#allocation31_spill] sm:$0xff] }
 0x730   :  { %10502 = vmatprep.subr.bf16.mxu1 %v13026_v20 }
 0x733   :  { %10504 = vmatpush3.bf16.msra.mxu1 %v13026_v20  ;;  %v14228_v20 = vld [vmem:[#allocation29_spill] sm:$0xff] }
 0x734   :  { %10506 = vmatprep.subr.bf16.mxu1 %v13036_v17 }
 0x737   :  { %10508 = vmatpush3.bf16.msra.mxu1 %v13036_v17  ;;  %v14229_v17 = vld [vmem:[#allocation30_spill] sm:$0xff] }
 0x738   :  { %10774 = vmatprep.subr.bf16.mxu1 %v14226_v41 }
 0x73a   :  { %9043 = vmatmul.mubr.f32.vlgmr.msra.gmra.mrb[12].mxu1 %v13205_v43  ;;  %v13411_v43 = vsub.f32 %v4462_v22, %v13408_v33  ;;  %v13464_v22 = vsub.f32 %v4477_v48, %v13448_v19 }
 0x73b   :  { %9045 = vmatprep.mubr.f32.mxu1 %v13219_v63  ;;  %10776 = vmatpush3.bf16.msra.mxu1 %v14226_v41 }
 0x73c   :  { %10778 = vmatprep.subr.bf16.mxu1 %v14227_v39  ;;  %v4552_v23 = vand.u32 4294901760, %v13411_v43 }
 0x73e   :  { %9046 = vmatmul.mubr.f32.gmra.mrb[14].mxu1 %v13216_v46  ;;  %v4553_v11 = vsub.f32 %v13411_v43, %v4552_v23  ;;  %v3600_v46 = vld [vmem:[#allocation13 + $0x8] sm:$0xff] }
 0x73f   :  { %9048 = vmatprep.mubr.f32.mxu1 %v13237_v34  ;;  %10780 = vmatpush3.bf16.msra.mxu1 %v14227_v39  ;;  %v4465_v44 = vsel %vm1072_vm0, %v3600_v46, 0 }
 0x740   :  { %10782 = vmatprep.subr.bf16.mxu1 %v14228_v20  ;;  %v4554_v5 = vand.u32 4294901760, %v4553_v11  ;;  %v13418_v63 = vand.u32 4294901760, %v4465_v44 }
 0x742   :  { %9049 = vmatmul.mubr.f32.gmra.mrb[16].mxu1 %v13234_v30  ;;  %9063 = vmatprep.mubr.f32.mxu0 %v4554_v5  ;;  %v13421_v4 = vsub.f32 %v4465_v44, %v13418_v63  ;;  %v4468_v30 = vsel %vm1072_vm0, %v3601_v31, 0 }
 0x743   :  { %10784 = vmatpush3.bf16.msra.mxu1 %v14228_v20  ;;  %v13425_v34 = vand.u32 4294901760, %v4468_v30 }
 0x744   :  { %10786 = vmatprep.subr.bf16.mxu1 %v14229_v17  ;;  %v4562_v45 = vand.u32 4294901760, %v13421_v4 }
 0x745   :  { %v13432_v47 = vsub.f32 %v4468_v30, %v13425_v34 }
 0x746   :  { %v13437_v18 = vsub.f32 %v13421_v4, %v4562_v45 }
 0x747   :  { %10788 = vmatpush3.bf16.msra.mxu1 %v14229_v17  ;;  %v4572_v49 = vand.u32 4294901760, %v13432_v47 }
 0x748   :  { %10790 = vmatprep.subr.bf16.mxu1 %v14230_v62  ;;  %v4564_v0 = vand.u32 4294901760, %v13437_v18 }
 0x749   :  { %v4573_v30 = vsub.f32 %v13432_v47, %v4572_v49 }
 0x74b   :  { %10792 = vmatpush3.bf16.msra.mxu1 %v14230_v62 }
 0x74c   :  { %10794 = vmatprep.subr.bf16.mxu1 %v14231_v10 }
 0x74f   :  { %10796 = vmatpush3.bf16.msra.mxu1 %v14231_v10 }
 0x750   :  { %10798 = vmatprep.subr.bf16.mxu1 %v14232_v12 }
 0x753   :  { %10800 = vmatpush3.bf16.msra.mxu1 %v14232_v12 }
 0x754   :  { %10802 = vmatprep.subr.bf16.mxu1 %v14233_v9 }
 0x757   :  { %10804 = vmatpush3.bf16.msra.mxu1 %v14233_v9 }
 0x758   :  { %10806 = vmatprep.subr.bf16.mxu1 %v14234_v8 }
 0x80d   :  { %v9044_v37 = vpop.f32.mrb[12].mxu1 }
 0x80e   :  { %v4483_v58 = vand.u32 4294901760, %v9044_v37  ;;  %v4427_v53 = vpop.f32.mrb[13].mxu1 }
 0x80f   :  { %v4480_v32 = vand.u32 4294901760, %v4427_v53 }
 0x810   :  { %v4619_v57 = vsub.f32 %v9044_v37, %v4483_v58 }
 0x811   :  { %v13445_v55 = vpack.c.bf16 %v4483_v58, %v4480_v32  ;;  %v4612_v1 = vsub.f32 %v4427_v53, %v4480_v32  ;;  %v9047_v25 = vpop.f32.mrb[14].mxu1  ;;  %v4583_v32 = vsub.f32 %v13441_v26, %v4582_v27 }
 0x812   :  { %v4620_v56 = vand.u32 4294901760, %v4619_v57  ;;  %v4489_v21 = vand.u32 4294901760, %v9047_v25  ;;  %v4439_v36 = vpop.f32.mrb[15].mxu1 }
 0x813   :  { %v4613_v60 = vand.u32 4294901760, %v4612_v1  ;;  %v4486_v29 = vand.u32 4294901760, %v4439_v36  ;;  %10510 = vmatprep.subr.bf16.mxu0 %v13445_v55  ;;  %v13452_v2 = vpack.c.bf16 %v4619_v57, %v4612_v1 }
 0x814   :  { %v4621_v15 = vsub.f32 %v4619_v57, %v4620_v56  ;;  %v4633_v7 = vsub.f32 %v9047_v25, %v4489_v21  ;;  %10512 = vmatpush3.bf16.msra.mxu0 %v13445_v55 }
 0x815   :  { %v4614_v3 = vsub.f32 %v4612_v1, %v4613_v60  ;;  %v13459_v6 = vpack.c.bf16 %v4489_v21, %v4486_v29  ;;  %v4626_v40 = vsub.f32 %v4439_v36, %v4486_v29  ;;  %v9050_v35 = vpop.f32.mrb[16].mxu1  ;;  %v13461_v61 = vpack.c.bf16 %v4620_v56, %v4613_v60 }
 0x816   :  { %v4634_v24 = vand.u32 4294901760, %v4633_v7  ;;  %v4495_v38 = vand.u32 4294901760, %v9050_v35  ;;  %v4451_v59 = vpop.f32.mrb[17].mxu1  ;;  %v4622_v28 = vand.u32 4294901760, %v4621_v15  ;;  %v4602_v1 = vand.u32 4294901760, %v13464_v22 }
 0x817   :  { %v4627_v11 = vand.u32 4294901760, %v4626_v40  ;;  %v4492_v5 = vand.u32 4294901760, %v4451_v59  ;;  %10514 = vmatprep.subr.bf16.mxu0 %v13459_v6  ;;  %v4615_v46 = vand.u32 4294901760, %v4614_v3  ;;  %v10537_v44 = vpack.c.bf16 %v4633_v7, %v4626_v40 }
 0x818   :  { %v4635_v31 = vsub.f32 %v4633_v7, %v4634_v24  ;;  %v4647_v52 = vsub.f32 %v9050_v35, %v4495_v38  ;;  %10516 = vmatpush3.bf16.msra.mxu0 %v13459_v6  ;;  %v4574_v21 = vand.u32 4294901760, %v4573_v30  ;;  %v4593_v36 = vsub.f32 %v13457_v51, %v4592_v14 }
 0x819   :  { %v4628_v54 = vsub.f32 %v4626_v40, %v4627_v11  ;;  %v13472_v16 = vpack.c.bf16 %v4495_v38, %v4492_v5  ;;  %v4640_v37 = vsub.f32 %v4451_v59, %v4492_v5  ;;  %v10521_v42 = vpack.c.bf16 %v4622_v28, %v4615_v46 }
 0x81a   :  { %v4648_v58 = vand.u32 4294901760, %v4647_v52  ;;  %v4636_v53 = vand.u32 4294901760, %v4635_v31  ;;  %v10561_v18 = vpack.c.bf16 %v4634_v24, %v4627_v11  ;;  %v4584_v3 = vand.u32 4294901760, %v4583_v32  ;;  %v14236_v32 = vld [vmem:[#allocation47_spill] sm:$0xff] }
 0x81b   :  { %v4641_v48 = vand.u32 4294901760, %v4640_v37  ;;  %10518 = vmatprep.subr.bf16.mxu0 %v13472_v16  ;;  %v4629_v57 = vand.u32 4294901760, %v4628_v54  ;;  %v10541_v25 = vpack.c.bf16 %v4647_v52, %v4640_v37  ;;  %v4603_v35 = vsub.f32 %v13464_v22, %v4602_v1 }
 0x81c   :  { %v4649_v56 = vsub.f32 %v4647_v52, %v4648_v58  ;;  %10520 = vmatpush3.bf16.msra.mxu0 %v13472_v16  ;;  %v4594_v24 = vand.u32 4294901760, %v4593_v36  ;;  %v14243_v36 = vld [vmem:[#allocation50_spill] sm:$0xff] }
 0x81d   :  { %v4642_v60 = vsub.f32 %v4640_v37, %v4641_v48  ;;  %10522 = vmatprep.subr.bf16.mxu0 %v10521_v42  ;;  %v10525_v29 = vpack.c.bf16 %v4636_v53, %v4629_v57  ;;  %v10565_v15 = vpack.c.bf16 %v4648_v58, %v4641_v48  ;;  %v4604_v59 = vand.u32 4294901760, %v4603_v35  ;;  %v14237_v48 = vld [vmem:[#allocation48_spill] sm:$0xff]  ;;  %v14238_v57 = vld [vmem:[#allocation49_spill] sm:$0xff]  ;;  %v14250_v35 = vld [vmem:[#allocation54_spill] sm:$0xff] }
 0x81e   :  { %v4650_v7 = vand.u32 4294901760, %v4649_v56  ;;  %v14241_v56 = vld [vmem:[#allocation38_spill] sm:$0xff] }
 0x81f   :  { %9064 = vmatmul.mubr.f32.vlgmr.msra.gmra.mrb[12].mxu0 %v4564_v0  ;;  %v4643_v40 = vand.u32 4294901760, %v4642_v60  ;;  %v14244_v60 = vld [vmem:[#allocation51_spill] sm:$0xff] }
 0x820   :  { %10524 = vmatpush3.bf16.msra.mxu0 %v10521_v42  ;;  %9066 = vmatprep.mubr.f32.mxu0 %v4574_v21  ;;  %v14242_v21 = vld [vmem:[#allocation39_spill] sm:$0xff] }
 0x821   :  { %10526 = vmatprep.subr.bf16.mxu0 %v10525_v29  ;;  %v10529_v38 = vpack.c.bf16 %v4650_v7, %v4643_v40  ;;  %v14247_v7 = vld [vmem:[#allocation40_spill] sm:$0xff]  ;;  %v14249_v40 = vld [vmem:[#allocation42_spill] sm:$0xff] }
 0x823   :  { %9067 = vmatmul.mubr.f32.gmra.mrb[14].mxu0 %v4584_v3  ;;  %v14248_v3 = vld [vmem:[#allocation41_spill] sm:$0xff] }
 0x824   :  { %10528 = vmatpush3.bf16.msra.mxu0 %v10525_v29  ;;  %9069 = vmatprep.mubr.f32.mxu0 %v4594_v24  ;;  %v14245_v29 = vld [vmem:[#allocation52_spill] sm:$0xff]  ;;  %v14251_v24 = vld [vmem:[#allocation55_spill] sm:$0xff] }
 0x825   :  { %10530 = vmatprep.subr.bf16.mxu0 %v10529_v38 }
 0x827   :  { %9070 = vmatmul.mubr.f32.gmra.mrb[16].mxu0 %v4604_v59  ;;  %v14253_v59 = vld [vmem:[#allocation57_spill] sm:$0xff] }
 0x828   :  { %10532 = vmatpush3.bf16.msra.mxu0 %v10529_v38  ;;  %9084 = vmatprep.mubr.f32.mxu0 %v13408_v33  ;;  %v14252_v38 = vld [vmem:[#allocation56_spill] sm:$0xff] }
 0x829   :  { %10534 = vmatprep.subr.bf16.mxu0 %v13452_v2 }
 0x82b   :  { %9085 = vmatmul.mubr.f32.vlgmr.msra.gmra.mrb[12].mxu0 %v13418_v63 }
 0x82c   :  { %10536 = vmatpush3.bf16.msra.mxu0 %v13452_v2  ;;  %9087 = vmatprep.mubr.f32.mxu0 %v13425_v34 }
 0x82d   :  { %10538 = vmatprep.subr.bf16.mxu0 %v10537_v44 }
 0x82f   :  { %9088 = vmatmul.mubr.f32.gmra.mrb[14].mxu0 %v13428_v50 }
 0x830   :  { %10540 = vmatpush3.bf16.msra.mxu0 %v10537_v44  ;;  %9090 = vmatprep.mubr.f32.mxu0 %v13443_v13 }
 0x831   :  { %10542 = vmatprep.subr.bf16.mxu0 %v10541_v25 }
 0x833   :  { %9091 = vmatmul.mubr.f32.gmra.mrb[16].mxu0 %v13448_v19 }
 0x834   :  { %10544 = vmatpush3.bf16.msra.mxu0 %v10541_v25  ;;  %9105 = vmatprep.mubr.f32.mxu0 %v13411_v43  ;;  %v14240_v25 = vld [vmem:[#allocation37_spill] sm:$0xff] }
 0x835   :  { %10546 = vmatprep.subr.bf16.mxu0 %v13445_v55 }
 0x837   :  { %9106 = vmatmul.mubr.f32.vlgmr.msra.gmra.mrb[12].mxu0 %v13421_v4 }
 0x838   :  { %10548 = vmatpush3.bf16.msra.mxu0 %v13445_v55  ;;  %9108 = vmatprep.mubr.f32.mxu0 %v13432_v47 }
 0x839   :  { %10550 = vmatprep.subr.bf16.mxu0 %v13459_v6 }
 0x83b   :  { %9109 = vmatmul.mubr.f32.gmra.mrb[14].mxu0 %v13441_v26 }
 0x83c   :  { %10552 = vmatpush3.bf16.msra.mxu0 %v13459_v6  ;;  %9111 = vmatprep.mubr.f32.mxu0 %v13457_v51 }
 0x83d   :  { %10554 = vmatprep.subr.bf16.mxu0 %v13472_v16 }
 0x83f   :  { %9112 = vmatmul.mubr.f32.gmra.mrb[16].mxu0 %v13464_v22 }
 0x840   :  { %10556 = vmatpush3.bf16.msra.mxu0 %v13472_v16  ;;  %9126 = vmatprep.mubr.f32.mxu0 %v4552_v23 }
 0x841   :  { %10558 = vmatprep.subr.bf16.mxu0 %v13461_v61 }
 0x843   :  { %9127 = vmatmul.mubr.f32.vlgmr.msra.gmra.mrb[12].mxu0 %v4562_v45 }
 0x844   :  { %10560 = vmatpush3.bf16.msra.mxu0 %v13461_v61  ;;  %9129 = vmatprep.mubr.f32.mxu0 %v4572_v49 }
 0x845   :  { %10562 = vmatprep.subr.bf16.mxu0 %v10561_v18 }
 0x847   :  { %9130 = vmatmul.mubr.f32.gmra.mrb[14].mxu0 %v4582_v27 }
 0x848   :  { %10564 = vmatpush3.bf16.msra.mxu0 %v10561_v18  ;;  %9132 = vmatprep.mubr.f32.mxu0 %v4592_v14 }
 0x849   :  { %10566 = vmatprep.subr.bf16.mxu0 %v10565_v15 }
 0x84b   :  { %9133 = vmatmul.mubr.f32.gmra.mrb[16].mxu0 %v4602_v1  ;;  %v14239_v1 = vld [vmem:[#allocation36_spill] sm:$0xff] }
 0x84c   :  { %10568 = vmatpush3.bf16.msra.mxu0 %v10565_v15  ;;  %9147 = vmatprep.mubr.f32.mxu0 %v13408_v33  ;;  %v14246_v15 = vld [vmem:[#allocation53_spill] sm:$0xff] }
 0x84d   :  { %10570 = vmatprep.subr.bf16.mxu0 %v13445_v55 }
 0x84f   :  { %9148 = vmatmul.mubr.f32.vlgmr.msra.gmra.mrb[12].mxu0 %v13418_v63 }
 0x850   :  { %10572 = vmatpush3.bf16.msra.mxu0 %v13445_v55  ;;  %9150 = vmatprep.mubr.f32.mxu0 %v13425_v34 }
 0x851   :  { %10574 = vmatprep.subr.bf16.mxu0 %v13459_v6 }
 0x853   :  { %9151 = vmatmul.mubr.f32.gmra.mrb[14].mxu0 %v13428_v50 }
 0x854   :  { %10576 = vmatpush3.bf16.msra.mxu0 %v13459_v6  ;;  %9153 = vmatprep.mubr.f32.mxu0 %v13443_v13 }
 0x855   :  { %10578 = vmatprep.subr.bf16.mxu0 %v13472_v16 }
 0x857   :  { %9154 = vmatmul.mubr.f32.gmra.mrb[16].mxu0 %v13448_v19 }
 0x858   :  { %10580 = vmatpush3.bf16.msra.mxu0 %v13472_v16  ;;  %9168 = vmatprep.mubr.f32.mxu0 %v13408_v33  ;;  %v14235_v16 = vld [vmem:[#allocation44_spill] sm:$0xff] }
 0x859   :  { %10582 = vmatprep.subr.bf16.mxu0 %v14226_v41 }
 0x85b   :  { %9169 = vmatmul.mubr.f32.vlgmr.msra.gmra.mrb[12].mxu0 %v13418_v63 }
 0x85c   :  { %9171 = vmatprep.mubr.f32.mxu0 %v13425_v34  ;;  %10584 = vmatpush3.bf16.msra.mxu0 %v14226_v41 }
 0x85d   :  { %10586 = vmatprep.subr.bf16.mxu0 %v14227_v39 }
 0x85f   :  { %9172 = vmatmul.mubr.f32.gmra.mrb[14].mxu0 %v13428_v50 }
 0x860   :  { %9174 = vmatprep.mubr.f32.mxu0 %v13443_v13  ;;  %10588 = vmatpush3.bf16.msra.mxu0 %v14227_v39 }
 0x861   :  { %10590 = vmatprep.subr.bf16.mxu0 %v14228_v20 }
 0x863   :  { %9175 = vmatmul.mubr.f32.gmra.mrb[16].mxu0 %v13448_v19 }
 0x864   :  { %10592 = vmatpush3.bf16.msra.mxu0 %v14228_v20 }
 0x865   :  { %10594 = vmatprep.subr.bf16.mxu0 %v14229_v17 }
 0x868   :  { %10596 = vmatpush3.bf16.msra.mxu0 %v14229_v17 }
 0x869   :  { %10598 = vmatprep.subr.bf16.mxu0 %v14230_v62 }
 0x86c   :  { %10600 = vmatpush3.bf16.msra.mxu0 %v14230_v62 }
 0x86d   :  { %10602 = vmatprep.subr.bf16.mxu0 %v14231_v10 }
 0x870   :  { %10604 = vmatpush3.bf16.msra.mxu0 %v14231_v10 }
 0x871   :  { %10606 = vmatprep.subr.bf16.mxu0 %v14232_v12 }
 0x874   :  { %10608 = vmatpush3.bf16.msra.mxu0 %v14232_v12 }
 0x875   :  { %10610 = vmatprep.subr.bf16.mxu0 %v14233_v9 }
 0x878   :  { %10612 = vmatpush3.bf16.msra.mxu0 %v14233_v9 }
 0x879   :  { %10614 = vmatprep.subr.bf16.mxu0 %v14234_v8 }
 0x92e   :  { %v13551_v33 = vpop.f32.mrb[12].mxu0 }
 0x92f   :  { %v13554_v43 = vand.u32 4294901760, %v13551_v33  ;;  %v13556_v23 = vpop.f32.mrb[13].mxu0 }
 0x930   :  { %v13559_v63 = vand.u32 4294901760, %v13556_v23 }
 0x931   :  { %v13563_v4 = vsub.f32 %v13551_v33, %v13554_v43 }
 0x932   :  { %v13567_v34 = vsub.f32 %v13556_v23, %v13559_v63  ;;  %v13569_v45 = vpop.f32.mrb[14].mxu0 }
 0x933   :  { %v5310_v50 = vand.u32 4294901760, %v13563_v4  ;;  %v13573_v47 = vand.u32 4294901760, %v13569_v45  ;;  %v13575_v26 = vpop.f32.mrb[15].mxu0 }
 0x934   :  { %v13578_v13 = vand.u32 4294901760, %v13575_v26  ;;  %v5300_v55 = vand.u32 4294901760, %v13567_v34 }
 0x935   :  { %v5311_v49 = vsub.f32 %v13563_v4, %v5310_v50  ;;  %v13586_v19 = vsub.f32 %v13569_v45, %v13573_v47 }
 0x936   :  { %v13590_v0 = vsub.f32 %v13575_v26, %v13578_v13  ;;  %v13592_v2 = vpop.f32.mrb[16].mxu0  ;;  %v5301_v27 = vsub.f32 %v13567_v34, %v5300_v55 }
 0x937   :  { %v13598_v51 = vand.u32 4294901760, %v13592_v2  ;;  %v13600_v6 = vpop.f32.mrb[17].mxu0  ;;  %v5330_v61 = vand.u32 4294901760, %v13586_v19  ;;  %v5312_v5 = vand.u32 4294901760, %v5311_v49 }
 0x938   :  { %v13604_v28 = vand.u32 4294901760, %v13600_v6  ;;  %v5302_v22 = vand.u32 4294901760, %v5301_v27  ;;  %v5320_v11 = vand.u32 4294901760, %v13590_v0 }
 0x939   :  { %v13609_v46 = vsub.f32 %v13592_v2, %v13598_v51  ;;  %v5331_v44 = vsub.f32 %v13586_v19, %v5330_v61 }
 0x93a   :  { %v13616_v31 = vsub.f32 %v13600_v6, %v13604_v28  ;;  %9209 = vmatprep.mubr.f32.mxu0 %v5302_v22  ;;  %v5321_v52 = vsub.f32 %v13590_v0, %v5320_v11 }
 0x93b   :  { %9210 = vmatmul.mubr.f32.vlgmr.msra.gmra.mrb[18].mxu0 %v5312_v5  ;;  %v5350_v30 = vand.u32 4294901760, %v13609_v46  ;;  %v5332_v37 = vand.u32 4294901760, %v5331_v44 }
 0x93c   :  { %10616 = vmatpush3.bf16.msra.mxu0 %v14234_v8  ;;  %v5322_v14 = vand.u32 4294901760, %v5321_v52  ;;  %v5340_v54 = vand.u32 4294901760, %v13616_v31 }
 0x93d   :  { %10618 = vmatprep.subr.bf16.mxu0 %v14235_v16  ;;  %v5351_v42 = vsub.f32 %v13609_v46, %v5350_v30 }
 0x93e   :  { %9212 = vmatprep.mubr.f32.mxu0 %v5322_v14  ;;  %v5341_v58 = vsub.f32 %v13616_v31, %v5340_v54 }
 0x93f   :  { %9213 = vmatmul.mubr.f32.gmra.mrb[20].mxu0 %v5332_v37  ;;  %v5352_v18 = vand.u32 4294901760, %v5351_v42 }
 0x940   :  { %10620 = vmatpush3.bf16.msra.mxu0 %v14235_v16  ;;  %v5342_v53 = vand.u32 4294901760, %v5341_v58 }
 0x941   :  { %10622 = vmatprep.subr.bf16.mxu0 %v14236_v32 }
 0x942   :  { %9215 = vmatprep.mubr.f32.mxu0 %v5342_v53 }
 0x943   :  { %9216 = vmatmul.mubr.f32.gmra.mrb[22].mxu0 %v5352_v18 }
 0x944   :  { %10624 = vmatpush3.bf16.msra.mxu0 %v14236_v32  ;;  %9250 = vmatprep.mubr.f32.mxu0 %v13559_v63 }
 0x945   :  { %10626 = vmatprep.subr.bf16.mxu0 %v14237_v48 }
 0x948   :  { %10628 = vmatpush3.bf16.msra.mxu0 %v14237_v48 }
 0x949   :  { %10630 = vmatprep.subr.bf16.mxu0 %v14238_v57 }
 0x94c   :  { %10632 = vmatpush3.bf16.msra.mxu0 %v14238_v57 }
 0x94d   :  { %10634 = vmatprep.subr.bf16.mxu0 %v14239_v1 }
 0x950   :  { %10636 = vmatpush3.bf16.msra.mxu0 %v14239_v1 }
 0x951   :  { %10638 = vmatprep.subr.bf16.mxu0 %v14240_v25 }
 0x954   :  { %10640 = vmatpush3.bf16.msra.mxu0 %v14240_v25 }
 0x955   :  { %10642 = vmatprep.subr.bf16.mxu0 %v14241_v56 }
 0x958   :  { %10644 = vmatpush3.bf16.msra.mxu0 %v14241_v56 }
 0x959   :  { %10646 = vmatprep.subr.bf16.mxu0 %v14242_v21 }
 0x95b   :  { %9251 = vmatmul.mubr.f32.vlgmr.msra.gmra.mrb[18].mxu0 %v13554_v43 }
 0x95c   :  { %9253 = vmatprep.mubr.f32.mxu0 %v13578_v13  ;;  %10648 = vmatpush3.bf16.msra.mxu0 %v14242_v21 }
 0x95d   :  { %10650 = vmatprep.subr.bf16.mxu0 %v14243_v36 }
 0x95f   :  { %9254 = vmatmul.mubr.f32.gmra.mrb[20].mxu0 %v13573_v47 }
 0x960   :  { %9256 = vmatprep.mubr.f32.mxu0 %v13604_v28  ;;  %10652 = vmatpush3.bf16.msra.mxu0 %v14243_v36 }
 0x961   :  { %10654 = vmatprep.subr.bf16.mxu0 %v14244_v60 }
 0x963   :  { %9257 = vmatmul.mubr.f32.gmra.mrb[22].mxu0 %v13598_v51 }
 0x964   :  { %10656 = vmatpush3.bf16.msra.mxu0 %v14244_v60  ;;  %9291 = vmatprep.mubr.f32.mxu0 %v13567_v34  ;;  %v14255_v34 = vld [vmem:[#allocation59_spill] sm:$0xff] }
 0x965   :  { %10658 = vmatprep.subr.bf16.mxu0 %v14245_v29 }
 0x968   :  { %10660 = vmatpush3.bf16.msra.mxu0 %v14245_v29 }
 0x969   :  { %10662 = vmatprep.subr.bf16.mxu0 %v14246_v15 }
 0x96c   :  { %10664 = vmatpush3.bf16.msra.mxu0 %v14246_v15 }
 0x96d   :  { %10666 = vmatprep.subr.bf16.mxu0 %v14247_v7 }
 0x970   :  { %10668 = vmatpush3.bf16.msra.mxu0 %v14247_v7 }
 0x971   :  { %10670 = vmatprep.subr.bf16.mxu0 %v14248_v3 }
 0x974   :  { %10672 = vmatpush3.bf16.msra.mxu0 %v14248_v3 }
 0x975   :  { %10674 = vmatprep.subr.bf16.mxu0 %v14249_v40 }
 0x978   :  { %10676 = vmatpush3.bf16.msra.mxu0 %v14249_v40 }
 0x979   :  { %10678 = vmatprep.subr.bf16.mxu0 %v14226_v41 }
 0x97b   :  { %9292 = vmatmul.mubr.f32.vlgmr.msra.gmra.mrb[18].mxu0 %v13563_v4  ;;  %v14254_v4 = vld [vmem:[#allocation58_spill] sm:$0xff] }
 0x97c   :  { %9294 = vmatprep.mubr.f32.mxu0 %v13590_v0  ;;  %10680 = vmatpush3.bf16.msra.mxu0 %v14226_v41 }
 0x97d   :  { %10682 = vmatprep.subr.bf16.mxu0 %v14227_v39 }
 0x97f   :  { %9295 = vmatmul.mubr.f32.gmra.mrb[20].mxu0 %v13586_v19 }
 0x980   :  { %9297 = vmatprep.mubr.f32.mxu0 %v13616_v31  ;;  %10684 = vmatpush3.bf16.msra.mxu0 %v14227_v39 }
 0x981   :  { %10686 = vmatprep.subr.bf16.mxu0 %v14228_v20 }
 0x983   :  { %9298 = vmatmul.mubr.f32.gmra.mrb[22].mxu0 %v13609_v46 }
 0x984   :  { %10688 = vmatpush3.bf16.msra.mxu0 %v14228_v20  ;;  %9332 = vmatprep.mubr.f32.mxu0 %v5300_v55  ;;  %v14257_v55 = vld [vmem:[#allocation61_spill] sm:$0xff] }
 0x985   :  { %10690 = vmatprep.subr.bf16.mxu0 %v14229_v17 }
 0x988   :  { %10692 = vmatpush3.bf16.msra.mxu0 %v14229_v17 }
 0x989   :  { %10694 = vmatprep.subr.bf16.mxu0 %v14230_v62 }
 0x98c   :  { %10696 = vmatpush3.bf16.msra.mxu0 %v14230_v62 }
 0x98d   :  { %10698 = vmatprep.subr.bf16.mxu0 %v14231_v10 }
 0x990   :  { %10700 = vmatpush3.bf16.msra.mxu0 %v14231_v10 }
 0x991   :  { %10702 = vmatprep.subr.bf16.mxu0 %v14232_v12 }
 0x994   :  { %10704 = vmatpush3.bf16.msra.mxu0 %v14232_v12 }
 0x995   :  { %10706 = vmatprep.subr.bf16.mxu0 %v14233_v9 }
 0x998   :  { %10708 = vmatpush3.bf16.msra.mxu0 %v14233_v9 }
 0x999   :  { %10710 = vmatprep.subr.bf16.mxu0 %v14250_v35 }
 0x99b   :  { %9333 = vmatmul.mubr.f32.vlgmr.msra.gmra.mrb[18].mxu0 %v5310_v50  ;;  %v14256_v50 = vld [vmem:[#allocation60_spill] sm:$0xff] }
 0x99c   :  { %9335 = vmatprep.mubr.f32.mxu0 %v5320_v11  ;;  %10712 = vmatpush3.bf16.msra.mxu0 %v14250_v35 }
 0x99d   :  { %10714 = vmatprep.subr.bf16.mxu0 %v14251_v24 }
 0x99f   :  { %9336 = vmatmul.mubr.f32.gmra.mrb[20].mxu0 %v5330_v61 }
 0x9a0   :  { %9338 = vmatprep.mubr.f32.mxu0 %v5340_v54  ;;  %10716 = vmatpush3.bf16.msra.mxu0 %v14251_v24 }
 0x9a1   :  { %10718 = vmatprep.subr.bf16.mxu0 %v14252_v38 }
 0x9a3   :  { %9339 = vmatmul.mubr.f32.gmra.mrb[22].mxu0 %v5350_v30 }
 0x9a4   :  { %10720 = vmatpush3.bf16.msra.mxu0 %v14252_v38  ;;  %9373 = vmatprep.mubr.f32.mxu0 %v13559_v63 }
 0x9a5   :  { %10722 = vmatprep.subr.bf16.mxu0 %v14253_v59 }
 0x9a8   :  { %10724 = vmatpush3.bf16.msra.mxu0 %v14253_v59 }
 0x9a9   :  { %10726 = vmatprep.subr.bf16.mxu0 %v14254_v4 }
 0x9ac   :  { %10728 = vmatpush3.bf16.msra.mxu0 %v14254_v4 }
 0x9ad   :  { %10730 = vmatprep.subr.bf16.mxu0 %v14255_v34 }
 0x9b0   :  { %10732 = vmatpush3.bf16.msra.mxu0 %v14255_v34 }
 0x9b1   :  { %10734 = vmatprep.subr.bf16.mxu0 %v14256_v50 }
 0x9b4   :  { %10736 = vmatpush3.bf16.msra.mxu0 %v14256_v50 }
 0x9b5   :  { %10738 = vmatprep.subr.bf16.mxu0 %v14257_v55 }
 0x9b8   :  { %10740 = vmatpush3.bf16.msra.mxu0 %v14257_v55 }
 0x9b9   :  { %10742 = vmatprep.subr.bf16.mxu0 %v14226_v41 }
 0x9bb   :  { %9374 = vmatmul.mubr.f32.vlgmr.msra.gmra.mrb[18].mxu0 %v13554_v43 }
 0x9bc   :  { %9376 = vmatprep.mubr.f32.mxu0 %v13578_v13  ;;  %10744 = vmatpush3.bf16.msra.mxu0 %v14226_v41 }
 0x9bd   :  { %10746 = vmatprep.subr.bf16.mxu0 %v14227_v39 }
 0x9bf   :  { %9377 = vmatmul.mubr.f32.gmra.mrb[20].mxu0 %v13573_v47 }
 0x9c0   :  { %9379 = vmatprep.mubr.f32.mxu0 %v13604_v28  ;;  %10748 = vmatpush3.bf16.msra.mxu0 %v14227_v39 }
 0x9c1   :  { %10750 = vmatprep.subr.bf16.mxu0 %v14228_v20 }
 0x9c3   :  { %9380 = vmatmul.mubr.f32.gmra.mrb[22].mxu0 %v13598_v51 }
 0x9c4   :  { %10752 = vmatpush3.bf16.msra.mxu0 %v14228_v20  ;;  %9414 = vmatprep.mubr.f32.mxu0 %v13559_v63 }
 0x9c5   :  { %10754 = vmatprep.subr.bf16.mxu0 %v14229_v17 }
 0x9c8   :  { %10756 = vmatpush3.bf16.msra.mxu0 %v14229_v17 }
 0x9c9   :  { %10758 = vmatprep.subr.bf16.mxu0 %v14230_v62 }
 0x9cc   :  { %10760 = vmatpush3.bf16.msra.mxu0 %v14230_v62 }
 0x9cd   :  { %10762 = vmatprep.subr.bf16.mxu0 %v14231_v10 }
 0x9d0   :  { %10764 = vmatpush3.bf16.msra.mxu0 %v14231_v10 }
 0x9d1   :  { %10766 = vmatprep.subr.bf16.mxu0 %v14232_v12 }
 0x9d4   :  { %10768 = vmatpush3.bf16.msra.mxu0 %v14232_v12 }
 0x9d5   :  { %10770 = vmatprep.subr.bf16.mxu0 %v14233_v9 }
 0x9d8   :  { %10772 = vmatpush3.bf16.msra.mxu0 %v14233_v9 }
 0x9db   :  { %9415 = vmatmul.mubr.f32.vlgmr.msra.gmra.mrb[18].mxu0 %v13554_v43 }
 0x9dc   :  { %9417 = vmatprep.mubr.f32.mxu0 %v13578_v13 }
 0x9df   :  { %9418 = vmatmul.mubr.f32.gmra.mrb[20].mxu0 %v13573_v47 }
 0x9e0   :  { %9420 = vmatprep.mubr.f32.mxu0 %v13604_v28 }
 0x9e3   :  { %9421 = vmatmul.mubr.f32.gmra.mrb[22].mxu0 %v13598_v51 }
 0xaae   :  { %v9416_v63 = vpop.f32.mrb[18].mxu0 }
 0xaaf   :  { %v13745_v49 = vsub.f32 %v13551_v33, %v9416_v63  ;;  %v6039_v19 = vpop.f32.mrb[19].mxu0 }
 0xab0   :  { %v13748_v0 = vsub.f32 %v13556_v23, %v6039_v19 }
 0xab1   :  { %v6080_v27 = vmul.f32 %v13745_v49, %v13745_v49 }
 0xab2   :  { %v6079_v43 = vmul.f32 %v13748_v0, %v13748_v0  ;;  %v9419_v13 = vpop.f32.mrb[20].mxu0 }
 0xab3   :  { %v13754_v47 = vand.u32 4294901760, %v6080_v27  ;;  %v13757_v61 = vsub.f32 %v13569_v45, %v9419_v13  ;;  %v6051_v51 = vpop.f32.mrb[21].mxu0 }
 0xab4   :  { %v13759_v28 = vand.u32 4294901760, %v6079_v43  ;;  %v13762_v33 = vsub.f32 %v13575_v26, %v6051_v51 }
 0xab5   :  { %v13765_v23 = vsub.f32 %v6080_v27, %v13754_v47  ;;  %v6082_v22 = vmul.f32 %v13757_v61, %v13757_v61 }
 0xab6   :  { %v13770_v11 = vsub.f32 %v6079_v43, %v13759_v28  ;;  %v6081_v5 = vmul.f32 %v13762_v33, %v13762_v33  ;;  %v9422_v45 = vpop.f32.mrb[22].mxu0 }
 0xab7   :  { %v6178_v46 = vand.u32 4294901760, %v13765_v23  ;;  %v13775_v44 = vand.u32 4294901760, %v6082_v22  ;;  %v13778_v26 = vsub.f32 %v13592_v2, %v9422_v45  ;;  %v6063_v31 = vpop.f32.mrb[23].mxu0 }
 0xab8   :  { %v13780_v52 = vand.u32 4294901760, %v6081_v5  ;;  %v13783_v30 = vsub.f32 %v13600_v6, %v6063_v31  ;;  %v6168_v14 = vand.u32 4294901760, %v13770_v11 }
 0xab9   :  { %v6179_v54 = vsub.f32 %v13765_v23, %v6178_v46  ;;  %v13790_v37 = vsub.f32 %v6082_v22, %v13775_v44  ;;  %v6084_v42 = vmul.f32 %v13778_v26, %v13778_v26 }
 0xaba   :  { %v13795_v2 = vsub.f32 %v6081_v5, %v13780_v52  ;;  %v6083_v58 = vmul.f32 %v13783_v30, %v13783_v30  ;;  %v6169_v6 = vsub.f32 %v13770_v11, %v6168_v14 }
 0xabb   :  { %v13802_v53 = vand.u32 4294901760, %v6084_v42  ;;  %v6198_v18 = vand.u32 4294901760, %v13790_v37  ;;  %v6180_v43 = vand.u32 4294901760, %v6179_v54 }
 0xabc   :  { %v13805_v63 = vand.u32 4294901760, %v6083_v58  ;;  %v6170_v19 = vand.u32 4294901760, %v6169_v6  ;;  %v6188_v27 = vand.u32 4294901760, %v13795_v2 }
 0xabd   :  { %v13809_v13 = vsub.f32 %v6084_v42, %v13802_v53  ;;  %v6199_v51 = vsub.f32 %v13790_v37, %v6198_v18 }
 0xabe   :  { %v13815_v22 = vsub.f32 %v6083_v58, %v13805_v63  ;;  %9455 = vmatprep.mubr.f32.mxu1 %v6170_v19  ;;  %v6189_v5 = vsub.f32 %v13795_v2, %v6188_v27 }
 0xabf   :  { %9456 = vmatmul.mubr.f32.vlgmr.msra.gmra.mrb[18].mxu1 %v6180_v43  ;;  %v6218_v45 = vand.u32 4294901760, %v13809_v13  ;;  %v6200_v42 = vand.u32 4294901760, %v6199_v51 }
 0xac0   :  { %10808 = vmatpush3.bf16.msra.mxu1 %v14234_v8  ;;  %v6190_v31 = vand.u32 4294901760, %v6189_v5  ;;  %v6208_v54 = vand.u32 4294901760, %v13815_v22 }
 0xac1   :  { %10810 = vmatprep.subr.bf16.mxu1 %v14235_v16  ;;  %v6219_v58 = vsub.f32 %v13809_v13, %v6218_v45 }
 0xac2   :  { %9458 = vmatprep.mubr.f32.mxu1 %v6190_v31  ;;  %v6209_v6 = vsub.f32 %v13815_v22, %v6208_v54 }
 0xac3   :  { %9459 = vmatmul.mubr.f32.gmra.mrb[20].mxu1 %v6200_v42  ;;  %v6220_v8 = vand.u32 4294901760, %v6219_v58 }
 0xac4   :  { %10812 = vmatpush3.bf16.msra.mxu1 %v14235_v16  ;;  %v6210_v19 = vand.u32 4294901760, %v6209_v6 }
 0xac5   :  { %10814 = vmatprep.subr.bf16.mxu1 %v14236_v32 }
 0xac6   :  { %9461 = vmatprep.mubr.f32.mxu1 %v6210_v19  ;;  %v11282_v19 = vld [vmem:[#allocation2 + $0x28] sm:$0xff] }
 0xac7   :  { %9462 = vmatmul.mubr.f32.gmra.mrb[22].mxu1 %v6220_v8 }
 0xac8   :  { %10816 = vmatpush3.bf16.msra.mxu1 %v14236_v32  ;;  %9496 = vmatprep.mubr.f32.mxu1 %v13759_v28 }
 0xac9   :  { %10818 = vmatprep.subr.bf16.mxu1 %v14237_v48 }
 0xacc   :  { %10820 = vmatpush3.bf16.msra.mxu1 %v14237_v48 }
 0xacd   :  { %10822 = vmatprep.subr.bf16.mxu1 %v14238_v57 }
 0xad0   :  { %10824 = vmatpush3.bf16.msra.mxu1 %v14238_v57 }
 0xad1   :  { %10826 = vmatprep.subr.bf16.mxu1 %v14239_v1 }
 0xad4   :  { %10828 = vmatpush3.bf16.msra.mxu1 %v14239_v1 }
 0xad5   :  { %10830 = vmatprep.subr.bf16.mxu1 %v14240_v25 }
 0xad8   :  { %10832 = vmatpush3.bf16.msra.mxu1 %v14240_v25  ;;  %v5206_v25 = vld [vmem:[#allocation14 + $0x8] sm:$0xff] }
 0xad9   :  { %10834 = vmatprep.subr.bf16.mxu1 %v14241_v56 }
 0xadc   :  { %10836 = vmatpush3.bf16.msra.mxu1 %v14241_v56 }
 0xadd   :  { %10838 = vmatprep.subr.bf16.mxu1 %v14242_v21 }
 0xadf   :  { %9497 = vmatmul.mubr.f32.vlgmr.msra.gmra.mrb[18].mxu1 %v13754_v47 }
 0xae0   :  { %9499 = vmatprep.mubr.f32.mxu1 %v13780_v52  ;;  %10840 = vmatpush3.bf16.msra.mxu1 %v14242_v21 }
 0xae1   :  { %10842 = vmatprep.subr.bf16.mxu1 %v14243_v36 }
 0xae3   :  { %9500 = vmatmul.mubr.f32.gmra.mrb[20].mxu1 %v13775_v44 }
 0xae4   :  { %9502 = vmatprep.mubr.f32.mxu1 %v13805_v63  ;;  %10844 = vmatpush3.bf16.msra.mxu1 %v14243_v36  ;;  %v5205_v36 = vld [vmem:[#allocation14] sm:$0xff] }
 0xae5   :  { %10846 = vmatprep.subr.bf16.mxu1 %v14244_v60 }
 0xae7   :  { %9503 = vmatmul.mubr.f32.gmra.mrb[22].mxu1 %v13802_v53 }
 0xae8   :  { %10848 = vmatpush3.bf16.msra.mxu1 %v14244_v60  ;;  %9537 = vmatprep.mubr.f32.mxu1 %v13770_v11  ;;  %v5212_v60 = vld [vmem:[#allocation16 + $0x8] sm:$0xff] }
 0xae9   :  { %10850 = vmatprep.subr.bf16.mxu1 %v14245_v29 }
 0xaec   :  { %10852 = vmatpush3.bf16.msra.mxu1 %v14245_v29 }
 0xaed   :  { %10854 = vmatprep.subr.bf16.mxu1 %v14246_v15 }
 0xaf0   :  { %10856 = vmatpush3.bf16.msra.mxu1 %v14246_v15 }
 0xaf1   :  { %10858 = vmatprep.subr.bf16.mxu1 %v14247_v7 }
 0xaf4   :  { %10860 = vmatpush3.bf16.msra.mxu1 %v14247_v7  ;;  %v5211_v7 = vld [vmem:[#allocation16] sm:$0xff] }
 0xaf5   :  { %10862 = vmatprep.subr.bf16.mxu1 %v14248_v3 }
 0xaf8   :  { %10864 = vmatpush3.bf16.msra.mxu1 %v14248_v3 }
 0xaf9   :  { %10866 = vmatprep.subr.bf16.mxu1 %v14249_v40 }
 0xafc   :  { %10868 = vmatpush3.bf16.msra.mxu1 %v14249_v40 }
 0xafd   :  { %10870 = vmatprep.subr.bf16.mxu1 %v14226_v41 }
 0xaff   :  { %9538 = vmatmul.mubr.f32.vlgmr.msra.gmra.mrb[18].mxu1 %v13765_v23  ;;  %v5210_v23 = vld [vmem:[#allocation14 + $0x28] sm:$0xff] }
 0xb00   :  { %9540 = vmatprep.mubr.f32.mxu1 %v13795_v2  ;;  %10872 = vmatpush3.bf16.msra.mxu1 %v14226_v41 }
 0xb01   :  { %10874 = vmatprep.subr.bf16.mxu1 %v14227_v39 }
 0xb03   :  { %9541 = vmatmul.mubr.f32.gmra.mrb[20].mxu1 %v13790_v37  ;;  %v5216_v37 = vld [vmem:[#allocation16 + $0x28] sm:$0xff] }
 0xb04   :  { %9543 = vmatprep.mubr.f32.mxu1 %v13815_v22  ;;  %10876 = vmatpush3.bf16.msra.mxu1 %v14227_v39  ;;  %v11279_v22 = vld [vmem:[#allocation2] sm:$0xff] }
 0xb05   :  { %10878 = vmatprep.subr.bf16.mxu1 %v14228_v20 }
 0xb07   :  { %9544 = vmatmul.mubr.f32.gmra.mrb[22].mxu1 %v13809_v13  ;;  %v11278_v13 = vld [vmem:[#allocation2 + $0x8] sm:$0xff] }
 0xb08   :  { %10880 = vmatpush3.bf16.msra.mxu1 %v14228_v20  ;;  %9578 = vmatprep.mubr.f32.mxu1 %v6168_v14 }
 0xb09   :  { %10882 = vmatprep.subr.bf16.mxu1 %v14229_v17 }
 0xb0c   :  { %10884 = vmatpush3.bf16.msra.mxu1 %v14229_v17 }
 0xb0d   :  { %10886 = vmatprep.subr.bf16.mxu1 %v14230_v62 }
 0xb10   :  { %10888 = vmatpush3.bf16.msra.mxu1 %v14230_v62 }
 0xb11   :  { %10890 = vmatprep.subr.bf16.mxu1 %v14231_v10 }
 0xb14   :  { %10892 = vmatpush3.bf16.msra.mxu1 %v14231_v10 }
 0xb15   :  { %10894 = vmatprep.subr.bf16.mxu1 %v14232_v12 }
 0xb18   :  { %10896 = vmatpush3.bf16.msra.mxu1 %v14232_v12 }
 0xb19   :  { %10898 = vmatprep.subr.bf16.mxu1 %v14233_v9 }
 0xb1c   :  { %10900 = vmatpush3.bf16.msra.mxu1 %v14233_v9 }
 0xb1d   :  { %10902 = vmatprep.subr.bf16.mxu1 %v14250_v35 }
 0xb1f   :  { %9579 = vmatmul.mubr.f32.vlgmr.msra.gmra.mrb[18].mxu1 %v6178_v46 }
 0xb20   :  { %9581 = vmatprep.mubr.f32.mxu1 %v6188_v27  ;;  %10904 = vmatpush3.bf16.msra.mxu1 %v14250_v35  ;;  %v5208_v35 = vld [vmem:[#allocation14 + $0x18] sm:$0xff] }
 0xb21   :  { %10906 = vmatprep.subr.bf16.mxu1 %v14251_v24 }
 0xb23   :  { %9582 = vmatmul.mubr.f32.gmra.mrb[20].mxu1 %v6198_v18 }
 0xb24   :  { %9584 = vmatprep.mubr.f32.mxu1 %v6208_v54  ;;  %10908 = vmatpush3.bf16.msra.mxu1 %v14251_v24  ;;  %v11281_v54 = vld [vmem:[#allocation2 + $0x10] sm:$0xff] }
 0xb25   :  { %10910 = vmatprep.subr.bf16.mxu1 %v14252_v38 }
 0xb27   :  { %9585 = vmatmul.mubr.f32.gmra.mrb[22].mxu1 %v6218_v45 }
 0xb28   :  { %10912 = vmatpush3.bf16.msra.mxu1 %v14252_v38  ;;  %9619 = vmatprep.mubr.f32.mxu1 %v13759_v28 }
 0xb29   :  { %10914 = vmatprep.subr.bf16.mxu1 %v14253_v59 }
 0xb2c   :  { %10916 = vmatpush3.bf16.msra.mxu1 %v14253_v59 }
 0xb2d   :  { %10918 = vmatprep.subr.bf16.mxu1 %v14254_v4 }
 0xb30   :  { %10920 = vmatpush3.bf16.msra.mxu1 %v14254_v4  ;;  %v5207_v4 = vld [vmem:[#allocation14 + $0x10] sm:$0xff] }
 0xb31   :  { %10922 = vmatprep.subr.bf16.mxu1 %v14255_v34 }
 0xb34   :  { %10924 = vmatpush3.bf16.msra.mxu1 %v14255_v34 }
 0xb35   :  { %10926 = vmatprep.subr.bf16.mxu1 %v14256_v50 }
 0xb38   :  { %10928 = vmatpush3.bf16.msra.mxu1 %v14256_v50  ;;  %v5214_v50 = vld [vmem:[#allocation16 + $0x18] sm:$0xff] }
 0xb39   :  { %10930 = vmatprep.subr.bf16.mxu1 %v14257_v55 }
 0xb3c   :  { %10932 = vmatpush3.bf16.msra.mxu1 %v14257_v55 }
 0xb3d   :  { %10934 = vmatprep.subr.bf16.mxu1 %v14226_v41 }
 0xb3f   :  { %9620 = vmatmul.mubr.f32.vlgmr.msra.gmra.mrb[18].mxu1 %v13754_v47 }
 0xb40   :  { %9622 = vmatprep.mubr.f32.mxu1 %v13780_v52  ;;  %10936 = vmatpush3.bf16.msra.mxu1 %v14226_v41 }
 0xb41   :  { %10938 = vmatprep.subr.bf16.mxu1 %v14227_v39 }
 0xb43   :  { %9623 = vmatmul.mubr.f32.gmra.mrb[20].mxu1 %v13775_v44 }
 0xb44   :  { %9625 = vmatprep.mubr.f32.mxu1 %v13805_v63  ;;  %10940 = vmatpush3.bf16.msra.mxu1 %v14227_v39 }
 0xb45   :  { %10942 = vmatprep.subr.bf16.mxu1 %v14228_v20 }
 0xb47   :  { %9626 = vmatmul.mubr.f32.gmra.mrb[22].mxu1 %v13802_v53 }
 0xb48   :  { %10944 = vmatpush3.bf16.msra.mxu1 %v14228_v20  ;;  %9660 = vmatprep.mubr.f32.mxu1 %v13759_v28 }
 0xb49   :  { %10946 = vmatprep.subr.bf16.mxu1 %v14229_v17 }
 0xb4c   :  { %10948 = vmatpush3.bf16.msra.mxu1 %v14229_v17 }
 0xb4d   :  { %10950 = vmatprep.subr.bf16.mxu1 %v14230_v62 }
 0xb50   :  { %10952 = vmatpush3.bf16.msra.mxu1 %v14230_v62 }
 0xb51   :  { %10954 = vmatprep.subr.bf16.mxu1 %v14231_v10 }
 0xb54   :  { %10956 = vmatpush3.bf16.msra.mxu1 %v14231_v10 }
 0xb55   :  { %10958 = vmatprep.subr.bf16.mxu1 %v14232_v12 }
 0xb58   :  { %10960 = vmatpush3.bf16.msra.mxu1 %v14232_v12 }
 0xb59   :  { %10962 = vmatprep.subr.bf16.mxu1 %v14233_v9 }
 0xb5c   :  { %10964 = vmatpush3.bf16.msra.mxu1 %v14233_v9 }
 0xb5f   :  { %9661 = vmatmul.mubr.f32.vlgmr.msra.gmra.mrb[18].mxu1 %v13754_v47  ;;  %v5213_v47 = vld [vmem:[#allocation16 + $0x10] sm:$0xff] }
 0xb60   :  { %9663 = vmatprep.mubr.f32.mxu1 %v13780_v52  ;;  %v5209_v52 = vld [vmem:[#allocation14 + $0x20] sm:$0xff] }
 0xb63   :  { %9664 = vmatmul.mubr.f32.gmra.mrb[20].mxu1 %v13775_v44 }
 0xb64   :  { %9666 = vmatprep.mubr.f32.mxu1 %v13805_v63 }
 0xb67   :  { %9667 = vmatmul.mubr.f32.gmra.mrb[22].mxu1 %v13802_v53  ;;  %v5215_v53 = vld [vmem:[#allocation16 + $0x20] sm:$0xff] }
 0xc32   :  { %v9662_v41 = vpop.f32.mrb[18].mxu1 }
 0xc33   :  { %v10971_v39 = vadd.f32 1e-05, %v9662_v41  ;;  %v6907_v20 = vpop.f32.mrb[19].mxu1  ;;  %v11283_v41 = vld [vmem:[#allocation2 + $0x20] sm:$0xff] }
 0xc34   :  { %v10972_v17 = vadd.f32 1e-05, %v6907_v20 }
 0xc35   :  { %11254 = vrsqrt.f32 %v10971_v39 }
 0xc36   :  { %11256 = vrsqrt.f32 %v10972_v17  ;;  %v9665_v62 = vpop.f32.mrb[20].mxu1 }
 0xc37   :  { %v10973_v10 = vadd.f32 1e-05, %v9665_v62  ;;  %v6919_v12 = vpop.f32.mrb[21].mxu1 }
 0xc38   :  { %v10974_v9 = vadd.f32 1e-05, %v6919_v12 }
 0xc39   :  { %11258 = vrsqrt.f32 %v10973_v10 }
 0xc3a   :  { %11260 = vrsqrt.f32 %v10974_v9  ;;  %v9668_v16 = vpop.f32.mrb[22].mxu1 }
 0xc3b   :  { %v10975_v32 = vadd.f32 1e-05, %v9668_v16  ;;  %v6931_v48 = vpop.f32.mrb[23].mxu1 }
 0xc3c   :  { %v10976_v57 = vadd.f32 1e-05, %v6931_v48 }
 0xc3d   :  { %11262 = vrsqrt.f32 %v10975_v32 }
 0xc3e   :  { %11264 = vrsqrt.f32 %v10976_v57 }
 0xc3f   :  { %v11255_v1 = vpop.eup %11254 }
 0xc40   :  { %v11257_v56 = vpop.eup %11256  ;;  %v6948_v21 = vmul.f32 %v11255_v1, %v13745_v49 }
 0xc41   :  { %v6947_v29 = vmul.f32 %v11257_v56, %v13748_v0 }
 0xc42   :  { %v6954_v15 = vmul.f32 %v6948_v21, %v5206_v25 }
 0xc43   :  { %v11259_v3 = vpop.eup %11258  ;;  %v6953_v40 = vmul.f32 %v6947_v29, %v5205_v36 }
 0xc44   :  { %v11261_v24 = vpop.eup %11260  ;;  %v6960_v38 = vadd.f32 %v6954_v15, %v5212_v60  ;;  %v6950_v59 = vmul.f32 %v11259_v3, %v13757_v61 }
 0xc45   :  { %v6959_v34 = vadd.f32 %v6953_v40, %v5211_v7  ;;  %v6949_v55 = vmul.f32 %v11261_v24, %v13762_v33 }
 0xc46   :  { %11266 = vtanh.f32 %v6960_v38  ;;  %v6956_v49 = vmul.f32 %v6950_v59, %v5208_v35 }
 0xc47   :  { %v11263_v28 = vpop.eup %11262  ;;  %11268 = vtanh.f32 %v6959_v34  ;;  %v6955_v0 = vmul.f32 %v6949_v55, %v5207_v4 }
 0xc48   :  { %v11265_v11 = vpop.eup %11264  ;;  %v6962_v46 = vadd.f32 %v6956_v49, %v5214_v50  ;;  %v6952_v44 = vmul.f32 %v11263_v28, %v13778_v26 }
 0xc49   :  { %v6961_v14 = vadd.f32 %v6955_v0, %v5213_v47  ;;  %v6951_v61 = vmul.f32 %v11265_v11, %v13783_v30  ;;  %v11280_v30 = vld [vmem:[#allocation2 + $0x18] sm:$0xff] }
 0xc4a   :  { %11270 = vtanh.f32 %v6962_v46  ;;  %v6958_v2 = vmul.f32 %v6952_v44, %v5210_v23 }
 0xc4b   :  { %11272 = vtanh.f32 %v6961_v14  ;;  %v6957_v33 = vmul.f32 %v6951_v61, %v5209_v52 }
 0xc4c   :  { %v6964_v18 = vadd.f32 %v6958_v2, %v5216_v37 }
 0xc4d   :  { %v6963_v63 = vadd.f32 %v6957_v33, %v5215_v53 }
 0xc4e   :  { %11274 = vtanh.f32 %v6964_v18 }
 0xc4f   :  { %11276 = vtanh.f32 %v6963_v63 }
 0xc50   :  { %v11267_v27 = vpop.eup %11266 }
 0xc51   :  { %v11269_v43 = vpop.eup %11268  ;;  %v6972_v51 = vadd.f32 %v11278_v13, %v11267_v27 }
 0xc52   :  { %v6971_v26 = vadd.f32 %v11279_v22, %v11269_v43 }
 0xc53   :  { %6978 = vst [vmem:[#allocation19 + $0x8] sm:$0xff] %v6972_v51 }
 0xc54   :  { %v11271_v5 = vpop.eup %11270  ;;  %6977 = vst [vmem:[#allocation19] sm:$0xff] %v6971_v26 }
 0xc55   :  { %v11273_v45 = vpop.eup %11272  ;;  %v6974_v31 = vadd.f32 %v11280_v30, %v11271_v5 }
 0xc56   :  { %v6973_v42 = vadd.f32 %v11281_v54, %v11273_v45 }
 0xc57   :  { %6980 = vst [vmem:[#allocation19 + $0x18] sm:$0xff] %v6974_v31 }
 0xc58   :  { %v11275_v58 = vpop.eup %11274  ;;  %6979 = vst [vmem:[#allocation19 + $0x10] sm:$0xff] %v6973_v42 }
 0xc59   :  { %v11277_v6 = vpop.eup %11276  ;;  %v6976_v8 = vadd.f32 %v11282_v19, %v11275_v58 }
 0xc5a   :  { %v6975_v39 = vadd.f32 %v11283_v41, %v11277_v6 }
 0xc5b   :  { %6982 = vst [vmem:[#allocation19 + $0x28] sm:$0xff] %v6976_v8 }
 0xc5c   :  { %6981 = vst [vmem:[#allocation19 + $0x20] sm:$0xff] %v6975_v39 }
 0xc5d   :  { %11515 = shalt.err (!%p11512_p0)
}
 0xc5e   :  { %s11516_s24 = scalar_lea.hbm %s13974_s10, 768 }
 0xc5f   :  { %p11517_p1 = scmp.ne.s32.totalorder %s13974_s10, %s11516_s24  ;;  %p11520_p2 = scmp.lt.u32.totalorder %s11516_s24, %s13974_s10 }
 0xc61   :  { %p11522_p3 = pnand %p11520_p2, %p11517_p1 }
 0xc63   :  { %11525 = shalt.err (!%p11522_p3)
}
 0xc64   :  { %6994 = dma.vmem_to_hbm [thread:$0]  %s6989_s20, 768, %s13974_s10, [#allocation4], %s11542_s25, %s11542_s25, %s11543_s26  }
 0xc65   :  { %11538 = dma.done.wait [#allocation4], 768  }
 0xc66   :  { %11539 = vsyncadd [#allocation4], 4294966528 }
 0xc67   :  { %6998 = vsyncpa [#allocation3], 1 }
 0xc68   :  { %6999 = vsyncpa [#allocation6], 1 }
 0xc69   :  { %7000 = vsyncpa [#allocation9], 1 }
 0xc6a   :  { %7001 = vsyncpa [#allocation12], 1 }
 0xc6b   :  { %7002 = vsyncpa [#allocation15], 1 }
 0xc6c   :  { %7003 = vsyncpa [#allocation18], 1 }
 0xc6d   :  { %7004 = vsyncpa [#allocation4], 1 }

</bundles_post_ra>
